<compile_context>
chip_gen: v7x
topology: tpu7x:2x2x1
jax: 0.10.0
libtpu: 0.0.40
codegen_flags: <defaults>
</compile_context>

<pallas_src>
import jax
import jax.numpy as jnp
from jax.experimental import pallas as pl
from jax.experimental.pallas import tpu as pltpu


# ----------------------------- config (small) ------------------------------
VOCAB = 100                 # logical vocab size (ids < VOCAB)
VOCAB_PAD = 128             # embedding table rows padded to a lane-friendly size
MAX_POS = 32
HIDDEN = 64
N_HEADS = 4
HEAD_DIM = HIDDEN // N_HEADS
FFN_DIM = 128
N_LAYERS = 2
NUM_LABELS = 3
LN_EPS = 1e-12

BATCH = 2
SEQ = 8
SEQ_LOG2 = SEQ.bit_length() - 1
assert (1 << SEQ_LOG2) == SEQ, "SEQ must be a power of two (shift/and index tricks)"
BS = BATCH * SEQ
NEG_BIG = -1e30             # additive mask bias (finite, no -inf/NaN edge cases)


# ------------------------------- fused kernel -------------------------------
def _layer_norm(h, g, b):
    # independent E[x] and E[x^2] row reductions (they pipeline on the XLU
    # instead of var serializing behind mu)
    mean = jnp.mean(h, axis=-1, keepdims=True)
    mean_sq = jnp.mean(h * h, axis=-1, keepdims=True)
    var = jnp.maximum(mean_sq - mean * mean, 0.0)
    return (h - mean) * jax.lax.rsqrt(var + LN_EPS) * g + b


def _fused_forward_kernel(
    ids_ref, amask_ref,
    wemb_ref, pemb_ref, emb_g_ref, emb_b_ref,
    wq_ref, wk_ref, wv_ref, bq_ref, bk_ref, bv_ref,
    wo_ref, bo_ref, ln1g_ref, ln1b_ref,
    w1_ref, b1_ref, w2_ref, b2_ref, ln2g_ref, ln2b_ref,
    wc_ref, bc_ref,
    out_ref,
):
    f32 = jnp.float32
    bf16 = jnp.bfloat16
    scale = 1.0 / (HEAD_DIM ** 0.5)

    # ---- embeddings: in-kernel gather via one-hot bf16 matmuls ----
    ids = ids_ref[...]                                               # (BS, 1) i32
    vcol = jax.lax.broadcasted_iota(jnp.int32, (BS, VOCAB_PAD), 1)
    word_oh = jnp.where(vcol == ids, 1.0, 0.0).astype(bf16)          # (BS, 128)
    word = jnp.dot(word_oh, wemb_ref[...], preferred_element_type=f32)

    prow = jax.lax.broadcasted_iota(jnp.int32, (BS, MAX_POS), 0)
    pcol = jax.lax.broadcasted_iota(jnp.int32, (BS, MAX_POS), 1)
    pos_oh = jnp.where(pcol == (prow & (SEQ - 1)), 1.0, 0.0).astype(bf16)
    pos = jnp.dot(pos_oh, pemb_ref[...], preferred_element_type=f32)

    # word + position -> LayerNorm (dropout = identity)
    h = _layer_norm(word + pos, emb_g_ref[...], emb_b_ref[...])      # (BS, H) f32

    # ---- additive attention bias (0 keep / -1e30 mask), built once ----
    # row i may attend key j iff same batch and attention_mask[key j] == 1
    ridx = jax.lax.broadcasted_iota(jnp.int32, (BS, BS), 0)
    cidx = jax.lax.broadcasted_iota(jnp.int32, (BS, BS), 1)
    same_batch = (ridx >> SEQ_LOG2) == (cidx >> SEQ_LOG2)
    key_ok = amask_ref[...] > 0.5                                    # (1, BS)
    bias = jnp.where(same_batch & key_ok, 0.0, NEG_BIG).astype(f32)  # (BS, BS)

    for li in range(N_LAYERS):                 # static unroll (2 layers)
        x = h                                  # (BS, H) f32
        x16 = x.astype(bf16)
        sa = None
        for hh in range(N_HEADS):              # static unroll, leading-axis weights
            qh = jnp.dot(x16, wq_ref[li, hh], preferred_element_type=f32) + bq_ref[li, hh]
            kh = jnp.dot(x16, wk_ref[li, hh], preferred_element_type=f32) + bk_ref[li, hh]
            vh = jnp.dot(x16, wv_ref[li, hh], preferred_element_type=f32) + bv_ref[li, hh]
            # q @ k^T via dot_general (no explicit transpose op)
            s = jax.lax.dot_general(
                qh.astype(bf16), kh.astype(bf16),
                (((1,), (1,)), ((), ())), preferred_element_type=f32)   # (BS, BS)
            s = s * scale + bias
            s = s - jnp.max(s, axis=-1, keepdims=True)
            p = jnp.exp(s)
            p = p * pl.reciprocal(jnp.sum(p, axis=-1, keepdims=True), approx=True)
            ctx = jnp.dot(p.astype(bf16), vh.astype(bf16), preferred_element_type=f32)
            # head merge folded into per-head partial output projection
            part = jnp.dot(ctx.astype(bf16), wo_ref[li, hh], preferred_element_type=f32)
            sa = part if sa is None else sa + part
        sa = sa + bo_ref[li]
        h1 = _layer_norm(sa + x, ln1g_ref[li], ln1b_ref[li])          # post-attn LN

        # FFN: lin1 + GELU + lin2 + residual + LN, all fused
        f = jnp.dot(h1.astype(bf16), w1_ref[li], preferred_element_type=f32) + b1_ref[li]
        # TODO(synk): HF DistilBERT uses exact (erf) GELU; tanh approximation
        # kept here for robust Mosaic lowering (~1e-3 logit deviation).
        f = jax.nn.gelu(f, approximate=True)
        f = jnp.dot(f.astype(bf16), w2_ref[li], preferred_element_type=f32) + b2_ref[li]
        h = _layer_norm(f + h1, ln2g_ref[li], ln2b_ref[li])           # post-FFN LN

    # ---- classifier on CLS token of each sequence (rows 0 and 8: sublane-aligned)
    pooled = jnp.concatenate(
        [h[b * SEQ:b * SEQ + 1, :] for b in range(BATCH)], axis=0)    # (B, H)
    # nn.Dropout(0.1) -> identity at inference
    logits = jnp.dot(pooled.astype(bf16), wc_ref[...], preferred_element_type=f32) + bc_ref[...]
    out_ref[...] = logits.astype(out_ref.dtype)


# --------------------------- parameter creation -----------------------------
def init_params(key):
    def normal(k, shape, dtype=jnp.float32):
        return (jax.random.normal(k, shape, jnp.float32) * 0.02).astype(dtype)

    bf16 = jnp.bfloat16
    keys = jax.random.split(key, 16)
    return {
        # matmul weights stored bf16 (MXU-native); biases / LN params stay f32
        "word_emb": normal(keys[0], (VOCAB_PAD, HIDDEN), bf16),   # rows >= VOCAB unused
        "pos_emb": normal(keys[1], (MAX_POS, HIDDEN), bf16),
        "emb_ln_g": jnp.ones((1, HIDDEN), jnp.float32),
        "emb_ln_b": jnp.zeros((1, HIDDEN), jnp.float32),
        # per-layer, per-head weights with leading (layer, head) axes
        "wq": normal(keys[2], (N_LAYERS, N_HEADS, HIDDEN, HEAD_DIM), bf16),
        "wk": normal(keys[3], (N_LAYERS, N_HEADS, HIDDEN, HEAD_DIM), bf16),
        "wv": normal(keys[4], (N_LAYERS, N_HEADS, HIDDEN, HEAD_DIM), bf16),
        "bq": normal(keys[5], (N_LAYERS, N_HEADS, 1, HEAD_DIM)),
        "bk": normal(keys[6], (N_LAYERS, N_HEADS, 1, HEAD_DIM)),
        "bv": normal(keys[7], (N_LAYERS, N_HEADS, 1, HEAD_DIM)),
        "wo": normal(keys[8], (N_LAYERS, N_HEADS, HEAD_DIM, HIDDEN), bf16),
        "bo": normal(keys[9], (N_LAYERS, 1, HIDDEN)),
        "ln1_g": jnp.ones((N_LAYERS, 1, HIDDEN), jnp.float32),
        "ln1_b": jnp.zeros((N_LAYERS, 1, HIDDEN), jnp.float32),
        "w1": normal(keys[10], (N_LAYERS, HIDDEN, FFN_DIM), bf16),
        "b1": normal(keys[11], (N_LAYERS, 1, FFN_DIM)),
        "w2": normal(keys[12], (N_LAYERS, FFN_DIM, HIDDEN), bf16),
        "b2": normal(keys[13], (N_LAYERS, 1, HIDDEN)),
        "ln2_g": jnp.ones((N_LAYERS, 1, HIDDEN), jnp.float32),
        "ln2_b": jnp.zeros((N_LAYERS, 1, HIDDEN), jnp.float32),
        "wc": normal(keys[14], (HIDDEN, NUM_LABELS), bf16),
        "bc": normal(keys[15], (1, NUM_LABELS)),
    }


# ------------------------------ forward pass --------------------------------
@jax.jit
def distilbert_model_forward(params, input_ids, attention_mask):
    B, S = input_ids.shape
    # tiny layout-only reshapes; everything else (gather, mask) is in-kernel
    ids = input_ids.reshape(B * S, 1).astype(jnp.int32)
    amask = attention_mask.reshape(1, B * S).astype(jnp.float32)

    return pl.pallas_call(
        _fused_forward_kernel,
        out_shape=jax.ShapeDtypeStruct((B, NUM_LABELS), jnp.float32),
        compiler_params=pltpu.CompilerParams(vmem_limit_bytes=4 * 1024 * 1024),
    )(
        ids, amask,
        params["word_emb"], params["pos_emb"],
        params["emb_ln_g"], params["emb_ln_b"],
        params["wq"], params["wk"], params["wv"],
        params["bq"], params["bk"], params["bv"],
        params["wo"], params["bo"],
        params["ln1_g"], params["ln1_b"],
        params["w1"], params["b1"], params["w2"], params["b2"],
        params["ln2_g"], params["ln2_b"],
        params["wc"], params["bc"],
    )


# --------------------------------- main -------------------------------------
if __name__ == "__main__":
    root = jax.random.PRNGKey(0)
    k_par, k_ids = jax.random.split(root)

    params = init_params(k_par)
    input_ids = jax.random.randint(k_ids, (BATCH, SEQ), 0, VOCAB, dtype=jnp.int32)
    # last two tokens of second example are padding
    attention_mask = jnp.ones((BATCH, SEQ), jnp.int32).at[1, SEQ - 2:].set(0)

    logits = distilbert_model_forward(params, input_ids, attention_mask)
    jax.block_until_ready(logits)
    assert logits.shape == (BATCH, NUM_LABELS)
    assert bool(jnp.all(jnp.isfinite(logits)))
    print("KERNEL_OK")
</pallas_src>

<mosaic_0001>
module attributes {stable_mosaic.version = 11 : i64} {
  func.func @_fused_forward_kernel(%arg0: memref<16x1xi32, #tpu.memory_space<vmem>>, %arg1: memref<1x16xf32, #tpu.memory_space<vmem>>, %arg2: memref<128x64xbf16, #tpu.memory_space<vmem>>, %arg3: memref<32x64xbf16, #tpu.memory_space<vmem>>, %arg4: memref<1x64xf32, #tpu.memory_space<vmem>>, %arg5: memref<1x64xf32, #tpu.memory_space<vmem>>, %arg6: memref<2x4x64x16xbf16, #tpu.memory_space<vmem>>, %arg7: memref<2x4x64x16xbf16, #tpu.memory_space<vmem>>, %arg8: memref<2x4x64x16xbf16, #tpu.memory_space<vmem>>, %arg9: memref<2x4x1x16xf32, #tpu.memory_space<vmem>>, %arg10: memref<2x4x1x16xf32, #tpu.memory_space<vmem>>, %arg11: memref<2x4x1x16xf32, #tpu.memory_space<vmem>>, %arg12: memref<2x4x16x64xbf16, #tpu.memory_space<vmem>>, %arg13: memref<2x1x64xf32, #tpu.memory_space<vmem>>, %arg14: memref<2x1x64xf32, #tpu.memory_space<vmem>>, %arg15: memref<2x1x64xf32, #tpu.memory_space<vmem>>, %arg16: memref<2x64x128xbf16, #tpu.memory_space<vmem>>, %arg17: memref<2x1x128xf32, #tpu.memory_space<vmem>>, %arg18: memref<2x128x64xbf16, #tpu.memory_space<vmem>>, %arg19: memref<2x1x64xf32, #tpu.memory_space<vmem>>, %arg20: memref<2x1x64xf32, #tpu.memory_space<vmem>>, %arg21: memref<2x1x64xf32, #tpu.memory_space<vmem>>, %arg22: memref<64x3xbf16, #tpu.memory_space<vmem>>, %arg23: memref<1x3xf32, #tpu.memory_space<vmem>>, %arg24: memref<2x3xf32, #tpu.memory_space<vmem>>) attributes {dimension_semantics = [], scalar_prefetch = 0 : i64, scratch_operands = 0 : i64, tpu.core_type = #tpu.core_type<tc>} {
    %c0 = arith.constant 0 : index
    %c0_0 = arith.constant 0 : index
    %0 = vector.load %arg0[%c0, %c0_0] : memref<16x1xi32, #tpu.memory_space<vmem>>, vector<16x1xi32>
    %1 = tpu.iota {dimensions = array<i32: 1>} : vector<16x128xi32>
    %2 = vector.broadcast %0 : vector<16x1xi32> to vector<16x128xi32>
    %3 = arith.cmpi eq, %1, %2 : vector<16x128xi32>
    %cst = arith.constant 1.000000e+00 : f32
    %cst_1 = arith.constant 0.000000e+00 : f32
    %4 = vector.broadcast %cst : f32 to vector<16x128xf32>
    %5 = vector.broadcast %cst_1 : f32 to vector<16x128xf32>
    %6 = arith.select %3, %4, %5 : vector<16x128xi1>, vector<16x128xf32>
    %7 = arith.truncf %6 : vector<16x128xf32> to vector<16x128xbf16>
    %c0_2 = arith.constant 0 : index
    %c0_3 = arith.constant 0 : index
    %8 = vector.load %arg2[%c0_2, %c0_3] : memref<128x64xbf16, #tpu.memory_space<vmem>>, vector<128x64xbf16>
    %cst_4 = arith.constant dense<0.000000e+00> : vector<16x64xf32>
    %9 = tpu.matmul %7, %8, %cst_4 {dimension_numbers = #tpu.dot_dimension_numbers<[1], [0], [0], [1], [0, 0, 1, 1], [], []>} : vector<16x128xbf16>, vector<128x64xbf16>, vector<16x64xf32> -> vector<16x64xf32>
    %10 = tpu.iota {dimensions = array<i32: 0>} : vector<16x32xi32>
    %11 = tpu.iota {dimensions = array<i32: 1>} : vector<16x32xi32>
    %c7_i32 = arith.constant 7 : i32
    %12 = vector.broadcast %c7_i32 : i32 to vector<16x32xi32>
    %13 = arith.andi %10, %12 : vector<16x32xi32>
    %14 = arith.cmpi eq, %11, %13 : vector<16x32xi32>
    %cst_5 = arith.constant 1.000000e+00 : f32
    %cst_6 = arith.constant 0.000000e+00 : f32
    %15 = vector.broadcast %cst_5 : f32 to vector<16x32xf32>
    %16 = vector.broadcast %cst_6 : f32 to vector<16x32xf32>
    %17 = arith.select %14, %15, %16 : vector<16x32xi1>, vector<16x32xf32>
    %18 = arith.truncf %17 : vector<16x32xf32> to vector<16x32xbf16>
    %c0_7 = arith.constant 0 : index
    %c0_8 = arith.constant 0 : index
    %19 = vector.load %arg3[%c0_7, %c0_8] : memref<32x64xbf16, #tpu.memory_space<vmem>>, vector<32x64xbf16>
    %cst_9 = arith.constant dense<0.000000e+00> : vector<16x64xf32>
    %20 = tpu.matmul %18, %19, %cst_9 {dimension_numbers = #tpu.dot_dimension_numbers<[1], [0], [0], [1], [0, 0, 1, 1], [], []>} : vector<16x32xbf16>, vector<32x64xbf16>, vector<16x64xf32> -> vector<16x64xf32>
    %21 = arith.addf %9, %20 : vector<16x64xf32>
    %c0_10 = arith.constant 0 : index
    %c0_11 = arith.constant 0 : index
    %22 = vector.load %arg4[%c0_10, %c0_11] : memref<1x64xf32, #tpu.memory_space<vmem>>, vector<1x64xf32>
    %c0_12 = arith.constant 0 : index
    %c0_13 = arith.constant 0 : index
    %23 = vector.load %arg5[%c0_12, %c0_13] : memref<1x64xf32, #tpu.memory_space<vmem>>, vector<1x64xf32>
    %cst_14 = arith.constant dense<0.000000e+00> : vector<16xf32>
    %24 = vector.multi_reduction <add>, %21, %cst_14 [1] : vector<16x64xf32> to vector<16xf32>
    %25 = vector.shape_cast %24 : vector<16xf32> to vector<16x1xf32>
    %cst_15 = arith.constant 6.400000e+01 : f32
    %26 = vector.broadcast %cst_15 : f32 to vector<16x1xf32>
    %27 = arith.divf %25, %26 : vector<16x1xf32>
    %28 = arith.mulf %21, %21 : vector<16x64xf32>
    %cst_16 = arith.constant dense<0.000000e+00> : vector<16xf32>
    %29 = vector.multi_reduction <add>, %28, %cst_16 [1] : vector<16x64xf32> to vector<16xf32>
    %30 = vector.shape_cast %29 : vector<16xf32> to vector<16x1xf32>
    %cst_17 = arith.constant 6.400000e+01 : f32
    %31 = vector.broadcast %cst_17 : f32 to vector<16x1xf32>
    %32 = arith.divf %30, %31 : vector<16x1xf32>
    %33 = arith.mulf %27, %27 : vector<16x1xf32>
    %34 = arith.subf %32, %33 : vector<16x1xf32>
    %cst_18 = arith.constant 0.000000e+00 : f32
    %35 = vector.broadcast %cst_18 : f32 to vector<16x1xf32>
    %36 = arith.maximumf %34, %35 : vector<16x1xf32>
    %37 = vector.broadcast %27 : vector<16x1xf32> to vector<16x64xf32>
    %38 = arith.subf %21, %37 : vector<16x64xf32>
    %cst_19 = arith.constant 9.99999996E-13 : f32
    %39 = vector.broadcast %cst_19 : f32 to vector<16x1xf32>
    %40 = arith.addf %36, %39 : vector<16x1xf32>
    %41 = math.rsqrt %40 : vector<16x1xf32>
    %42 = vector.broadcast %41 : vector<16x1xf32> to vector<16x64xf32>
    %43 = arith.mulf %38, %42 : vector<16x64xf32>
    %44 = vector.broadcast %22 : vector<1x64xf32> to vector<16x64xf32>
    %45 = arith.mulf %43, %44 : vector<16x64xf32>
    %46 = vector.broadcast %23 : vector<1x64xf32> to vector<16x64xf32>
    %47 = arith.addf %45, %46 : vector<16x64xf32>
    %48 = tpu.iota {dimensions = array<i32: 0>} : vector<16x16xi32>
    %49 = tpu.iota {dimensions = array<i32: 1>} : vector<16x16xi32>
    %c3_i32 = arith.constant 3 : i32
    %50 = vector.broadcast %c3_i32 : i32 to vector<16x16xi32>
    %51 = arith.shrsi %48, %50 : vector<16x16xi32>
    %c3_i32_20 = arith.constant 3 : i32
    %52 = vector.broadcast %c3_i32_20 : i32 to vector<16x16xi32>
    %53 = arith.shrsi %49, %52 : vector<16x16xi32>
    %54 = arith.cmpi eq, %51, %53 : vector<16x16xi32>
    %c0_21 = arith.constant 0 : index
    %c0_22 = arith.constant 0 : index
    %55 = vector.load %arg1[%c0_21, %c0_22] : memref<1x16xf32, #tpu.memory_space<vmem>>, vector<1x16xf32>
    %cst_23 = arith.constant 5.000000e-01 : f32
    %56 = vector.broadcast %cst_23 : f32 to vector<1x16xf32>
    %57 = arith.cmpf ogt, %55, %56 : vector<1x16xf32>
    %58 = vector.broadcast %57 : vector<1x16xi1> to vector<16x16xi1>
    %59 = arith.andi %54, %58 : vector<16x16xi1>
    %cst_24 = arith.constant 0.000000e+00 : f32
    %cst_25 = arith.constant -1.000000e+30 : f32
    %60 = vector.broadcast %cst_24 : f32 to vector<16x16xf32>
    %61 = vector.broadcast %cst_25 : f32 to vector<16x16xf32>
    %62 = arith.select %59, %60, %61 : vector<16x16xi1>, vector<16x16xf32>
    %63 = arith.truncf %47 : vector<16x64xf32> to vector<16x64xbf16>
    %c0_26 = arith.constant 0 : index
    %c0_27 = arith.constant 0 : index
    %c0_28 = arith.constant 0 : index
    %c0_29 = arith.constant 0 : index
    %64 = vector.load %arg6[%c0_26, %c0_27, %c0_28, %c0_29] : memref<2x4x64x16xbf16, #tpu.memory_space<vmem>>, vector<1x1x64x16xbf16>
    %65 = vector.shape_cast %64 : vector<1x1x64x16xbf16> to vector<64x16xbf16>
    %cst_30 = arith.constant dense<0.000000e+00> : vector<16x16xf32>
    %66 = tpu.matmul %63, %65, %cst_30 {dimension_numbers = #tpu.dot_dimension_numbers<[1], [0], [0], [1], [0, 0, 1, 1], [], []>} : vector<16x64xbf16>, vector<64x16xbf16>, vector<16x16xf32> -> vector<16x16xf32>
    %c0_31 = arith.constant 0 : index
    %c0_32 = arith.constant 0 : index
    %c0_33 = arith.constant 0 : index
    %c0_34 = arith.constant 0 : index
    %67 = vector.load %arg9[%c0_31, %c0_32, %c0_33, %c0_34] : memref<2x4x1x16xf32, #tpu.memory_space<vmem>>, vector<1x1x1x16xf32>
    %68 = vector.shape_cast %67 : vector<1x1x1x16xf32> to vector<1x16xf32>
    %69 = vector.broadcast %68 : vector<1x16xf32> to vector<16x16xf32>
    %70 = arith.addf %66, %69 : vector<16x16xf32>
    %c0_35 = arith.constant 0 : index
    %c0_36 = arith.constant 0 : index
    %c0_37 = arith.constant 0 : index
    %c0_38 = arith.constant 0 : index
    %71 = vector.load %arg7[%c0_35, %c0_36, %c0_37, %c0_38] : memref<2x4x64x16xbf16, #tpu.memory_space<vmem>>, vector<1x1x64x16xbf16>
    %72 = vector.shape_cast %71 : vector<1x1x64x16xbf16> to vector<64x16xbf16>
    %cst_39 = arith.constant dense<0.000000e+00> : vector<16x16xf32>
    %73 = tpu.matmul %63, %72, %cst_39 {dimension_numbers = #tpu.dot_dimension_numbers<[1], [0], [0], [1], [0, 0, 1, 1], [], []>} : vector<16x64xbf16>, vector<64x16xbf16>, vector<16x16xf32> -> vector<16x16xf32>
    %c0_40 = arith.constant 0 : index
    %c0_41 = arith.constant 0 : index
    %c0_42 = arith.constant 0 : index
    %c0_43 = arith.constant 0 : index
    %74 = vector.load %arg10[%c0_40, %c0_41, %c0_42, %c0_43] : memref<2x4x1x16xf32, #tpu.memory_space<vmem>>, vector<1x1x1x16xf32>
    %75 = vector.shape_cast %74 : vector<1x1x1x16xf32> to vector<1x16xf32>
    %76 = vector.broadcast %75 : vector<1x16xf32> to vector<16x16xf32>
    %77 = arith.addf %73, %76 : vector<16x16xf32>
    %c0_44 = arith.constant 0 : index
    %c0_45 = arith.constant 0 : index
    %c0_46 = arith.constant 0 : index
    %c0_47 = arith.constant 0 : index
    %78 = vector.load %arg8[%c0_44, %c0_45, %c0_46, %c0_47] : memref<2x4x64x16xbf16, #tpu.memory_space<vmem>>, vector<1x1x64x16xbf16>
    %79 = vector.shape_cast %78 : vector<1x1x64x16xbf16> to vector<64x16xbf16>
    %cst_48 = arith.constant dense<0.000000e+00> : vector<16x16xf32>
    %80 = tpu.matmul %63, %79, %cst_48 {dimension_numbers = #tpu.dot_dimension_numbers<[1], [0], [0], [1], [0, 0, 1, 1], [], []>} : vector<16x64xbf16>, vector<64x16xbf16>, vector<16x16xf32> -> vector<16x16xf32>
    %c0_49 = arith.constant 0 : index
    %c0_50 = arith.constant 0 : index
    %c0_51 = arith.constant 0 : index
    %c0_52 = arith.constant 0 : index
    %81 = vector.load %arg11[%c0_49, %c0_50, %c0_51, %c0_52] : memref<2x4x1x16xf32, #tpu.memory_space<vmem>>, vector<1x1x1x16xf32>
    %82 = vector.shape_cast %81 : vector<1x1x1x16xf32> to vector<1x16xf32>
    %83 = vector.broadcast %82 : vector<1x16xf32> to vector<16x16xf32>
    %84 = arith.addf %80, %83 : vector<16x16xf32>
    %85 = arith.truncf %70 : vector<16x16xf32> to vector<16x16xbf16>
    %86 = arith.truncf %77 : vector<16x16xf32> to vector<16x16xbf16>
    %cst_53 = arith.constant dense<0.000000e+00> : vector<16x16xf32>
    %87 = tpu.matmul %85, %86, %cst_53 {dimension_numbers = #tpu.dot_dimension_numbers<[1], [1], [0], [0], [0, 0, 1, 0], [], []>} : vector<16x16xbf16>, vector<16x16xbf16>, vector<16x16xf32> -> vector<16x16xf32>
    %cst_54 = arith.constant 2.500000e-01 : f32
    %88 = vector.broadcast %cst_54 : f32 to vector<16x16xf32>
    %89 = arith.mulf %87, %88 : vector<16x16xf32>
    %90 = arith.addf %89, %62 : vector<16x16xf32>
    %cst_55 = arith.constant dense<0xFF800000> : vector<16xf32>
    %91 = vector.multi_reduction <maximumf>, %90, %cst_55 [1] : vector<16x16xf32> to vector<16xf32>
    %92 = vector.shape_cast %91 : vector<16xf32> to vector<16x1xf32>
    %93 = vector.broadcast %92 : vector<16x1xf32> to vector<16x16xf32>
    %94 = arith.subf %90, %93 : vector<16x16xf32>
    %95 = math.exp %94 : vector<16x16xf32>
    %cst_56 = arith.constant dense<0.000000e+00> : vector<16xf32>
    %96 = vector.multi_reduction <add>, %95, %cst_56 [1] : vector<16x16xf32> to vector<16xf32>
    %97 = vector.shape_cast %96 : vector<16xf32> to vector<16x1xf32>
    %98 = tpu.reciprocal %97 {approx = true} : vector<16x1xf32> -> vector<16x1xf32>
    %99 = vector.broadcast %98 : vector<16x1xf32> to vector<16x16xf32>
    %100 = arith.mulf %95, %99 : vector<16x16xf32>
    %101 = arith.truncf %100 : vector<16x16xf32> to vector<16x16xbf16>
    %102 = arith.truncf %84 : vector<16x16xf32> to vector<16x16xbf16>
    %cst_57 = arith.constant dense<0.000000e+00> : vector<16x16xf32>
    %103 = tpu.matmul %101, %102, %cst_57 {dimension_numbers = #tpu.dot_dimension_numbers<[1], [0], [0], [1], [0, 0, 1, 1], [], []>} : vector<16x16xbf16>, vector<16x16xbf16>, vector<16x16xf32> -> vector<16x16xf32>
    %104 = arith.truncf %103 : vector<16x16xf32> to vector<16x16xbf16>
    %c0_58 = arith.constant 0 : index
    %c0_59 = arith.constant 0 : index
    %c0_60 = arith.constant 0 : index
    %c0_61 = arith.constant 0 : index
    %105 = vector.load %arg12[%c0_58, %c0_59, %c0_60, %c0_61] : memref<2x4x16x64xbf16, #tpu.memory_space<vmem>>, vector<1x1x16x64xbf16>
    %106 = vector.shape_cast %105 : vector<1x1x16x64xbf16> to vector<16x64xbf16>
    %cst_62 = arith.constant dense<0.000000e+00> : vector<16x64xf32>
    %107 = tpu.matmul %104, %106, %cst_62 {dimension_numbers = #tpu.dot_dimension_numbers<[1], [0], [0], [1], [0, 0, 1, 1], [], []>} : vector<16x16xbf16>, vector<16x64xbf16>, vector<16x64xf32> -> vector<16x64xf32>
    %c0_63 = arith.constant 0 : index
    %c1 = arith.constant 1 : index
    %c0_64 = arith.constant 0 : index
    %c0_65 = arith.constant 0 : index
    %108 = vector.load %arg6[%c0_63, %c1, %c0_64, %c0_65] : memref<2x4x64x16xbf16, #tpu.memory_space<vmem>>, vector<1x1x64x16xbf16>
    %109 = vector.shape_cast %108 : vector<1x1x64x16xbf16> to vector<64x16xbf16>
    %cst_66 = arith.constant dense<0.000000e+00> : vector<16x16xf32>
    %110 = tpu.matmul %63, %109, %cst_66 {dimension_numbers = #tpu.dot_dimension_numbers<[1], [0], [0], [1], [0, 0, 1, 1], [], []>} : vector<16x64xbf16>, vector<64x16xbf16>, vector<16x16xf32> -> vector<16x16xf32>
    %c0_67 = arith.constant 0 : index
    %c1_68 = arith.constant 1 : index
    %c0_69 = arith.constant 0 : index
    %c0_70 = arith.constant 0 : index
    %111 = vector.load %arg9[%c0_67, %c1_68, %c0_69, %c0_70] : memref<2x4x1x16xf32, #tpu.memory_space<vmem>>, vector<1x1x1x16xf32>
    %112 = vector.shape_cast %111 : vector<1x1x1x16xf32> to vector<1x16xf32>
    %113 = vector.broadcast %112 : vector<1x16xf32> to vector<16x16xf32>
    %114 = arith.addf %110, %113 : vector<16x16xf32>
    %c0_71 = arith.constant 0 : index
    %c1_72 = arith.constant 1 : index
    %c0_73 = arith.constant 0 : index
    %c0_74 = arith.constant 0 : index
    %115 = vector.load %arg7[%c0_71, %c1_72, %c0_73, %c0_74] : memref<2x4x64x16xbf16, #tpu.memory_space<vmem>>, vector<1x1x64x16xbf16>
    %116 = vector.shape_cast %115 : vector<1x1x64x16xbf16> to vector<64x16xbf16>
    %cst_75 = arith.constant dense<0.000000e+00> : vector<16x16xf32>
    %117 = tpu.matmul %63, %116, %cst_75 {dimension_numbers = #tpu.dot_dimension_numbers<[1], [0], [0], [1], [0, 0, 1, 1], [], []>} : vector<16x64xbf16>, vector<64x16xbf16>, vector<16x16xf32> -> vector<16x16xf32>
    %c0_76 = arith.constant 0 : index
    %c1_77 = arith.constant 1 : index
    %c0_78 = arith.constant 0 : index
    %c0_79 = arith.constant 0 : index
    %118 = vector.load %arg10[%c0_76, %c1_77, %c0_78, %c0_79] : memref<2x4x1x16xf32, #tpu.memory_space<vmem>>, vector<1x1x1x16xf32>
    %119 = vector.shape_cast %118 : vector<1x1x1x16xf32> to vector<1x16xf32>
    %120 = vector.broadcast %119 : vector<1x16xf32> to vector<16x16xf32>
    %121 = arith.addf %117, %120 : vector<16x16xf32>
    %c0_80 = arith.constant 0 : index
    %c1_81 = arith.constant 1 : index
    %c0_82 = arith.constant 0 : index
    %c0_83 = arith.constant 0 : index
    %122 = vector.load %arg8[%c0_80, %c1_81, %c0_82, %c0_83] : memref<2x4x64x16xbf16, #tpu.memory_space<vmem>>, vector<1x1x64x16xbf16>
    %123 = vector.shape_cast %122 : vector<1x1x64x16xbf16> to vector<64x16xbf16>
    %cst_84 = arith.constant dense<0.000000e+00> : vector<16x16xf32>
    %124 = tpu.matmul %63, %123, %cst_84 {dimension_numbers = #tpu.dot_dimension_numbers<[1], [0], [0], [1], [0, 0, 1, 1], [], []>} : vector<16x64xbf16>, vector<64x16xbf16>, vector<16x16xf32> -> vector<16x16xf32>
    %c0_85 = arith.constant 0 : index
    %c1_86 = arith.constant 1 : index
    %c0_87 = arith.constant 0 : index
    %c0_88 = arith.constant 0 : index
    %125 = vector.load %arg11[%c0_85, %c1_86, %c0_87, %c0_88] : memref<2x4x1x16xf32, #tpu.memory_space<vmem>>, vector<1x1x1x16xf32>
    %126 = vector.shape_cast %125 : vector<1x1x1x16xf32> to vector<1x16xf32>
    %127 = vector.broadcast %126 : vector<1x16xf32> to vector<16x16xf32>
    %128 = arith.addf %124, %127 : vector<16x16xf32>
    %129 = arith.truncf %114 : vector<16x16xf32> to vector<16x16xbf16>
    %130 = arith.truncf %121 : vector<16x16xf32> to vector<16x16xbf16>
    %cst_89 = arith.constant dense<0.000000e+00> : vector<16x16xf32>
    %131 = tpu.matmul %129, %130, %cst_89 {dimension_numbers = #tpu.dot_dimension_numbers<[1], [1], [0], [0], [0, 0, 1, 0], [], []>} : vector<16x16xbf16>, vector<16x16xbf16>, vector<16x16xf32> -> vector<16x16xf32>
    %cst_90 = arith.constant 2.500000e-01 : f32
    %132 = vector.broadcast %cst_90 : f32 to vector<16x16xf32>
    %133 = arith.mulf %131, %132 : vector<16x16xf32>
    %134 = arith.addf %133, %62 : vector<16x16xf32>
    %cst_91 = arith.constant dense<0xFF800000> : vector<16xf32>
    %135 = vector.multi_reduction <maximumf>, %134, %cst_91 [1] : vector<16x16xf32> to vector<16xf32>
    %136 = vector.shape_cast %135 : vector<16xf32> to vector<16x1xf32>
    %137 = vector.broadcast %136 : vector<16x1xf32> to vector<16x16xf32>
    %138 = arith.subf %134, %137 : vector<16x16xf32>
    %139 = math.exp %138 : vector<16x16xf32>
    %cst_92 = arith.constant dense<0.000000e+00> : vector<16xf32>
    %140 = vector.multi_reduction <add>, %139, %cst_92 [1] : vector<16x16xf32> to vector<16xf32>
    %141 = vector.shape_cast %140 : vector<16xf32> to vector<16x1xf32>
    %142 = tpu.reciprocal %141 {approx = true} : vector<16x1xf32> -> vector<16x1xf32>
    %143 = vector.broadcast %142 : vector<16x1xf32> to vector<16x16xf32>
    %144 = arith.mulf %139, %143 : vector<16x16xf32>
    %145 = arith.truncf %144 : vector<16x16xf32> to vector<16x16xbf16>
    %146 = arith.truncf %128 : vector<16x16xf32> to vector<16x16xbf16>
    %cst_93 = arith.constant dense<0.000000e+00> : vector<16x16xf32>
    %147 = tpu.matmul %145, %146, %cst_93 {dimension_numbers = #tpu.dot_dimension_numbers<[1], [0], [0], [1], [0, 0, 1, 1], [], []>} : vector<16x16xbf16>, vector<16x16xbf16>, vector<16x16xf32> -> vector<16x16xf32>
    %148 = arith.truncf %147 : vector<16x16xf32> to vector<16x16xbf16>
    %c0_94 = arith.constant 0 : index
    %c1_95 = arith.constant 1 : index
    %c0_96 = arith.constant 0 : index
    %c0_97 = arith.constant 0 : index
    %149 = vector.load %arg12[%c0_94, %c1_95, %c0_96, %c0_97] : memref<2x4x16x64xbf16, #tpu.memory_space<vmem>>, vector<1x1x16x64xbf16>
    %150 = vector.shape_cast %149 : vector<1x1x16x64xbf16> to vector<16x64xbf16>
    %cst_98 = arith.constant dense<0.000000e+00> : vector<16x64xf32>
    %151 = tpu.matmul %148, %150, %cst_98 {dimension_numbers = #tpu.dot_dimension_numbers<[1], [0], [0], [1], [0, 0, 1, 1], [], []>} : vector<16x16xbf16>, vector<16x64xbf16>, vector<16x64xf32> -> vector<16x64xf32>
    %152 = arith.addf %107, %151 : vector<16x64xf32>
    %c0_99 = arith.constant 0 : index
    %c2 = arith.constant 2 : index
    %c0_100 = arith.constant 0 : index
    %c0_101 = arith.constant 0 : index
    %153 = vector.load %arg6[%c0_99, %c2, %c0_100, %c0_101] : memref<2x4x64x16xbf16, #tpu.memory_space<vmem>>, vector<1x1x64x16xbf16>
    %154 = vector.shape_cast %153 : vector<1x1x64x16xbf16> to vector<64x16xbf16>
    %cst_102 = arith.constant dense<0.000000e+00> : vector<16x16xf32>
    %155 = tpu.matmul %63, %154, %cst_102 {dimension_numbers = #tpu.dot_dimension_numbers<[1], [0], [0], [1], [0, 0, 1, 1], [], []>} : vector<16x64xbf16>, vector<64x16xbf16>, vector<16x16xf32> -> vector<16x16xf32>
    %c0_103 = arith.constant 0 : index
    %c2_104 = arith.constant 2 : index
    %c0_105 = arith.constant 0 : index
    %c0_106 = arith.constant 0 : index
    %156 = vector.load %arg9[%c0_103, %c2_104, %c0_105, %c0_106] : memref<2x4x1x16xf32, #tpu.memory_space<vmem>>, vector<1x1x1x16xf32>
    %157 = vector.shape_cast %156 : vector<1x1x1x16xf32> to vector<1x16xf32>
    %158 = vector.broadcast %157 : vector<1x16xf32> to vector<16x16xf32>
    %159 = arith.addf %155, %158 : vector<16x16xf32>
    %c0_107 = arith.constant 0 : index
    %c2_108 = arith.constant 2 : index
    %c0_109 = arith.constant 0 : index
    %c0_110 = arith.constant 0 : index
    %160 = vector.load %arg7[%c0_107, %c2_108, %c0_109, %c0_110] : memref<2x4x64x16xbf16, #tpu.memory_space<vmem>>, vector<1x1x64x16xbf16>
    %161 = vector.shape_cast %160 : vector<1x1x64x16xbf16> to vector<64x16xbf16>
    %cst_111 = arith.constant dense<0.000000e+00> : vector<16x16xf32>
    %162 = tpu.matmul %63, %161, %cst_111 {dimension_numbers = #tpu.dot_dimension_numbers<[1], [0], [0], [1], [0, 0, 1, 1], [], []>} : vector<16x64xbf16>, vector<64x16xbf16>, vector<16x16xf32> -> vector<16x16xf32>
    %c0_112 = arith.constant 0 : index
    %c2_113 = arith.constant 2 : index
    %c0_114 = arith.constant 0 : index
    %c0_115 = arith.constant 0 : index
    %163 = vector.load %arg10[%c0_112, %c2_113, %c0_114, %c0_115] : memref<2x4x1x16xf32, #tpu.memory_space<vmem>>, vector<1x1x1x16xf32>
    %164 = vector.shape_cast %163 : vector<1x1x1x16xf32> to vector<1x16xf32>
    %165 = vector.broadcast %164 : vector<1x16xf32> to vector<16x16xf32>
    %166 = arith.addf %162, %165 : vector<16x16xf32>
    %c0_116 = arith.constant 0 : index
    %c2_117 = arith.constant 2 : index
    %c0_118 = arith.constant 0 : index
    %c0_119 = arith.constant 0 : index
    %167 = vector.load %arg8[%c0_116, %c2_117, %c0_118, %c0_119] : memref<2x4x64x16xbf16, #tpu.memory_space<vmem>>, vector<1x1x64x16xbf16>
    %168 = vector.shape_cast %167 : vector<1x1x64x16xbf16> to vector<64x16xbf16>
    %cst_120 = arith.constant dense<0.000000e+00> : vector<16x16xf32>
    %169 = tpu.matmul %63, %168, %cst_120 {dimension_numbers = #tpu.dot_dimension_numbers<[1], [0], [0], [1], [0, 0, 1, 1], [], []>} : vector<16x64xbf16>, vector<64x16xbf16>, vector<16x16xf32> -> vector<16x16xf32>
    %c0_121 = arith.constant 0 : index
    %c2_122 = arith.constant 2 : index
    %c0_123 = arith.constant 0 : index
    %c0_124 = arith.constant 0 : index
    %170 = vector.load %arg11[%c0_121, %c2_122, %c0_123, %c0_124] : memref<2x4x1x16xf32, #tpu.memory_space<vmem>>, vector<1x1x1x16xf32>
    %171 = vector.shape_cast %170 : vector<1x1x1x16xf32> to vector<1x16xf32>
    %172 = vector.broadcast %171 : vector<1x16xf32> to vector<16x16xf32>
    %173 = arith.addf %169, %172 : vector<16x16xf32>
    %174 = arith.truncf %159 : vector<16x16xf32> to vector<16x16xbf16>
    %175 = arith.truncf %166 : vector<16x16xf32> to vector<16x16xbf16>
    %cst_125 = arith.constant dense<0.000000e+00> : vector<16x16xf32>
    %176 = tpu.matmul %174, %175, %cst_125 {dimension_numbers = #tpu.dot_dimension_numbers<[1], [1], [0], [0], [0, 0, 1, 0], [], []>} : vector<16x16xbf16>, vector<16x16xbf16>, vector<16x16xf32> -> vector<16x16xf32>
    %cst_126 = arith.constant 2.500000e-01 : f32
    %177 = vector.broadcast %cst_126 : f32 to vector<16x16xf32>
    %178 = arith.mulf %176, %177 : vector<16x16xf32>
    %179 = arith.addf %178, %62 : vector<16x16xf32>
    %cst_127 = arith.constant dense<0xFF800000> : vector<16xf32>
    %180 = vector.multi_reduction <maximumf>, %179, %cst_127 [1] : vector<16x16xf32> to vector<16xf32>
    %181 = vector.shape_cast %180 : vector<16xf32> to vector<16x1xf32>
    %182 = vector.broadcast %181 : vector<16x1xf32> to vector<16x16xf32>
    %183 = arith.subf %179, %182 : vector<16x16xf32>
    %184 = math.exp %183 : vector<16x16xf32>
    %cst_128 = arith.constant dense<0.000000e+00> : vector<16xf32>
    %185 = vector.multi_reduction <add>, %184, %cst_128 [1] : vector<16x16xf32> to vector<16xf32>
    %186 = vector.shape_cast %185 : vector<16xf32> to vector<16x1xf32>
    %187 = tpu.reciprocal %186 {approx = true} : vector<16x1xf32> -> vector<16x1xf32>
    %188 = vector.broadcast %187 : vector<16x1xf32> to vector<16x16xf32>
    %189 = arith.mulf %184, %188 : vector<16x16xf32>
    %190 = arith.truncf %189 : vector<16x16xf32> to vector<16x16xbf16>
    %191 = arith.truncf %173 : vector<16x16xf32> to vector<16x16xbf16>
    %cst_129 = arith.constant dense<0.000000e+00> : vector<16x16xf32>
    %192 = tpu.matmul %190, %191, %cst_129 {dimension_numbers = #tpu.dot_dimension_numbers<[1], [0], [0], [1], [0, 0, 1, 1], [], []>} : vector<16x16xbf16>, vector<16x16xbf16>, vector<16x16xf32> -> vector<16x16xf32>
    %193 = arith.truncf %192 : vector<16x16xf32> to vector<16x16xbf16>
    %c0_130 = arith.constant 0 : index
    %c2_131 = arith.constant 2 : index
    %c0_132 = arith.constant 0 : index
    %c0_133 = arith.constant 0 : index
    %194 = vector.load %arg12[%c0_130, %c2_131, %c0_132, %c0_133] : memref<2x4x16x64xbf16, #tpu.memory_space<vmem>>, vector<1x1x16x64xbf16>
    %195 = vector.shape_cast %194 : vector<1x1x16x64xbf16> to vector<16x64xbf16>
    %cst_134 = arith.constant dense<0.000000e+00> : vector<16x64xf32>
    %196 = tpu.matmul %193, %195, %cst_134 {dimension_numbers = #tpu.dot_dimension_numbers<[1], [0], [0], [1], [0, 0, 1, 1], [], []>} : vector<16x16xbf16>, vector<16x64xbf16>, vector<16x64xf32> -> vector<16x64xf32>
    %197 = arith.addf %152, %196 : vector<16x64xf32>
    %c0_135 = arith.constant 0 : index
    %c3 = arith.constant 3 : index
    %c0_136 = arith.constant 0 : index
    %c0_137 = arith.constant 0 : index
    %198 = vector.load %arg6[%c0_135, %c3, %c0_136, %c0_137] : memref<2x4x64x16xbf16, #tpu.memory_space<vmem>>, vector<1x1x64x16xbf16>
    %199 = vector.shape_cast %198 : vector<1x1x64x16xbf16> to vector<64x16xbf16>
    %cst_138 = arith.constant dense<0.000000e+00> : vector<16x16xf32>
    %200 = tpu.matmul %63, %199, %cst_138 {dimension_numbers = #tpu.dot_dimension_numbers<[1], [0], [0], [1], [0, 0, 1, 1], [], []>} : vector<16x64xbf16>, vector<64x16xbf16>, vector<16x16xf32> -> vector<16x16xf32>
    %c0_139 = arith.constant 0 : index
    %c3_140 = arith.constant 3 : index
    %c0_141 = arith.constant 0 : index
    %c0_142 = arith.constant 0 : index
    %201 = vector.load %arg9[%c0_139, %c3_140, %c0_141, %c0_142] : memref<2x4x1x16xf32, #tpu.memory_space<vmem>>, vector<1x1x1x16xf32>
    %202 = vector.shape_cast %201 : vector<1x1x1x16xf32> to vector<1x16xf32>
    %203 = vector.broadcast %202 : vector<1x16xf32> to vector<16x16xf32>
    %204 = arith.addf %200, %203 : vector<16x16xf32>
    %c0_143 = arith.constant 0 : index
    %c3_144 = arith.constant 3 : index
    %c0_145 = arith.constant 0 : index
    %c0_146 = arith.constant 0 : index
    %205 = vector.load %arg7[%c0_143, %c3_144, %c0_145, %c0_146] : memref<2x4x64x16xbf16, #tpu.memory_space<vmem>>, vector<1x1x64x16xbf16>
    %206 = vector.shape_cast %205 : vector<1x1x64x16xbf16> to vector<64x16xbf16>
    %cst_147 = arith.constant dense<0.000000e+00> : vector<16x16xf32>
    %207 = tpu.matmul %63, %206, %cst_147 {dimension_numbers = #tpu.dot_dimension_numbers<[1], [0], [0], [1], [0, 0, 1, 1], [], []>} : vector<16x64xbf16>, vector<64x16xbf16>, vector<16x16xf32> -> vector<16x16xf32>
    %c0_148 = arith.constant 0 : index
    %c3_149 = arith.constant 3 : index
    %c0_150 = arith.constant 0 : index
    %c0_151 = arith.constant 0 : index
    %208 = vector.load %arg10[%c0_148, %c3_149, %c0_150, %c0_151] : memref<2x4x1x16xf32, #tpu.memory_space<vmem>>, vector<1x1x1x16xf32>
    %209 = vector.shape_cast %208 : vector<1x1x1x16xf32> to vector<1x16xf32>
    %210 = vector.broadcast %209 : vector<1x16xf32> to vector<16x16xf32>
    %211 = arith.addf %207, %210 : vector<16x16xf32>
    %c0_152 = arith.constant 0 : index
    %c3_153 = arith.constant 3 : index
    %c0_154 = arith.constant 0 : index
    %c0_155 = arith.constant 0 : index
    %212 = vector.load %arg8[%c0_152, %c3_153, %c0_154, %c0_155] : memref<2x4x64x16xbf16, #tpu.memory_space<vmem>>, vector<1x1x64x16xbf16>
    %213 = vector.shape_cast %212 : vector<1x1x64x16xbf16> to vector<64x16xbf16>
    %cst_156 = arith.constant dense<0.000000e+00> : vector<16x16xf32>
    %214 = tpu.matmul %63, %213, %cst_156 {dimension_numbers = #tpu.dot_dimension_numbers<[1], [0], [0], [1], [0, 0, 1, 1], [], []>} : vector<16x64xbf16>, vector<64x16xbf16>, vector<16x16xf32> -> vector<16x16xf32>
    %c0_157 = arith.constant 0 : index
    %c3_158 = arith.constant 3 : index
    %c0_159 = arith.constant 0 : index
    %c0_160 = arith.constant 0 : index
    %215 = vector.load %arg11[%c0_157, %c3_158, %c0_159, %c0_160] : memref<2x4x1x16xf32, #tpu.memory_space<vmem>>, vector<1x1x1x16xf32>
    %216 = vector.shape_cast %215 : vector<1x1x1x16xf32> to vector<1x16xf32>
    %217 = vector.broadcast %216 : vector<1x16xf32> to vector<16x16xf32>
    %218 = arith.addf %214, %217 : vector<16x16xf32>
    %219 = arith.truncf %204 : vector<16x16xf32> to vector<16x16xbf16>
    %220 = arith.truncf %211 : vector<16x16xf32> to vector<16x16xbf16>
    %cst_161 = arith.constant dense<0.000000e+00> : vector<16x16xf32>
    %221 = tpu.matmul %219, %220, %cst_161 {dimension_numbers = #tpu.dot_dimension_numbers<[1], [1], [0], [0], [0, 0, 1, 0], [], []>} : vector<16x16xbf16>, vector<16x16xbf16>, vector<16x16xf32> -> vector<16x16xf32>
    %cst_162 = arith.constant 2.500000e-01 : f32
    %222 = vector.broadcast %cst_162 : f32 to vector<16x16xf32>
    %223 = arith.mulf %221, %222 : vector<16x16xf32>
    %224 = arith.addf %223, %62 : vector<16x16xf32>
    %cst_163 = arith.constant dense<0xFF800000> : vector<16xf32>
    %225 = vector.multi_reduction <maximumf>, %224, %cst_163 [1] : vector<16x16xf32> to vector<16xf32>
    %226 = vector.shape_cast %225 : vector<16xf32> to vector<16x1xf32>
    %227 = vector.broadcast %226 : vector<16x1xf32> to vector<16x16xf32>
    %228 = arith.subf %224, %227 : vector<16x16xf32>
    %229 = math.exp %228 : vector<16x16xf32>
    %cst_164 = arith.constant dense<0.000000e+00> : vector<16xf32>
    %230 = vector.multi_reduction <add>, %229, %cst_164 [1] : vector<16x16xf32> to vector<16xf32>
    %231 = vector.shape_cast %230 : vector<16xf32> to vector<16x1xf32>
    %232 = tpu.reciprocal %231 {approx = true} : vector<16x1xf32> -> vector<16x1xf32>
    %233 = vector.broadcast %232 : vector<16x1xf32> to vector<16x16xf32>
    %234 = arith.mulf %229, %233 : vector<16x16xf32>
    %235 = arith.truncf %234 : vector<16x16xf32> to vector<16x16xbf16>
    %236 = arith.truncf %218 : vector<16x16xf32> to vector<16x16xbf16>
    %cst_165 = arith.constant dense<0.000000e+00> : vector<16x16xf32>
    %237 = tpu.matmul %235, %236, %cst_165 {dimension_numbers = #tpu.dot_dimension_numbers<[1], [0], [0], [1], [0, 0, 1, 1], [], []>} : vector<16x16xbf16>, vector<16x16xbf16>, vector<16x16xf32> -> vector<16x16xf32>
    %238 = arith.truncf %237 : vector<16x16xf32> to vector<16x16xbf16>
    %c0_166 = arith.constant 0 : index
    %c3_167 = arith.constant 3 : index
    %c0_168 = arith.constant 0 : index
    %c0_169 = arith.constant 0 : index
    %239 = vector.load %arg12[%c0_166, %c3_167, %c0_168, %c0_169] : memref<2x4x16x64xbf16, #tpu.memory_space<vmem>>, vector<1x1x16x64xbf16>
    %240 = vector.shape_cast %239 : vector<1x1x16x64xbf16> to vector<16x64xbf16>
    %cst_170 = arith.constant dense<0.000000e+00> : vector<16x64xf32>
    %241 = tpu.matmul %238, %240, %cst_170 {dimension_numbers = #tpu.dot_dimension_numbers<[1], [0], [0], [1], [0, 0, 1, 1], [], []>} : vector<16x16xbf16>, vector<16x64xbf16>, vector<16x64xf32> -> vector<16x64xf32>
    %242 = arith.addf %197, %241 : vector<16x64xf32>
    %c0_171 = arith.constant 0 : index
    %c0_172 = arith.constant 0 : index
    %c0_173 = arith.constant 0 : index
    %243 = vector.load %arg13[%c0_171, %c0_172, %c0_173] : memref<2x1x64xf32, #tpu.memory_space<vmem>>, vector<1x1x64xf32>
    %244 = vector.shape_cast %243 : vector<1x1x64xf32> to vector<1x64xf32>
    %245 = vector.broadcast %244 : vector<1x64xf32> to vector<16x64xf32>
    %246 = arith.addf %242, %245 : vector<16x64xf32>
    %247 = arith.addf %246, %47 : vector<16x64xf32>
    %c0_174 = arith.constant 0 : index
    %c0_175 = arith.constant 0 : index
    %c0_176 = arith.constant 0 : index
    %248 = vector.load %arg14[%c0_174, %c0_175, %c0_176] : memref<2x1x64xf32, #tpu.memory_space<vmem>>, vector<1x1x64xf32>
    %249 = vector.shape_cast %248 : vector<1x1x64xf32> to vector<1x64xf32>
    %c0_177 = arith.constant 0 : index
    %c0_178 = arith.constant 0 : index
    %c0_179 = arith.constant 0 : index
    %250 = vector.load %arg15[%c0_177, %c0_178, %c0_179] : memref<2x1x64xf32, #tpu.memory_space<vmem>>, vector<1x1x64xf32>
    %251 = vector.shape_cast %250 : vector<1x1x64xf32> to vector<1x64xf32>
    %cst_180 = arith.constant dense<0.000000e+00> : vector<16xf32>
    %252 = vector.multi_reduction <add>, %247, %cst_180 [1] : vector<16x64xf32> to vector<16xf32>
    %253 = vector.shape_cast %252 : vector<16xf32> to vector<16x1xf32>
    %cst_181 = arith.constant 6.400000e+01 : f32
    %254 = vector.broadcast %cst_181 : f32 to vector<16x1xf32>
    %255 = arith.divf %253, %254 : vector<16x1xf32>
    %256 = arith.mulf %247, %247 : vector<16x64xf32>
    %cst_182 = arith.constant dense<0.000000e+00> : vector<16xf32>
    %257 = vector.multi_reduction <add>, %256, %cst_182 [1] : vector<16x64xf32> to vector<16xf32>
    %258 = vector.shape_cast %257 : vector<16xf32> to vector<16x1xf32>
    %cst_183 = arith.constant 6.400000e+01 : f32
    %259 = vector.broadcast %cst_183 : f32 to vector<16x1xf32>
    %260 = arith.divf %258, %259 : vector<16x1xf32>
    %261 = arith.mulf %255, %255 : vector<16x1xf32>
    %262 = arith.subf %260, %261 : vector<16x1xf32>
    %cst_184 = arith.constant 0.000000e+00 : f32
    %263 = vector.broadcast %cst_184 : f32 to vector<16x1xf32>
    %264 = arith.maximumf %262, %263 : vector<16x1xf32>
    %265 = vector.broadcast %255 : vector<16x1xf32> to vector<16x64xf32>
    %266 = arith.subf %247, %265 : vector<16x64xf32>
    %cst_185 = arith.constant 9.99999996E-13 : f32
    %267 = vector.broadcast %cst_185 : f32 to vector<16x1xf32>
    %268 = arith.addf %264, %267 : vector<16x1xf32>
    %269 = math.rsqrt %268 : vector<16x1xf32>
    %270 = vector.broadcast %269 : vector<16x1xf32> to vector<16x64xf32>
    %271 = arith.mulf %266, %270 : vector<16x64xf32>
    %272 = vector.broadcast %249 : vector<1x64xf32> to vector<16x64xf32>
    %273 = arith.mulf %271, %272 : vector<16x64xf32>
    %274 = vector.broadcast %251 : vector<1x64xf32> to vector<16x64xf32>
    %275 = arith.addf %273, %274 : vector<16x64xf32>
    %276 = arith.truncf %275 : vector<16x64xf32> to vector<16x64xbf16>
    %c0_186 = arith.constant 0 : index
    %c0_187 = arith.constant 0 : index
    %c0_188 = arith.constant 0 : index
    %277 = vector.load %arg16[%c0_186, %c0_187, %c0_188] : memref<2x64x128xbf16, #tpu.memory_space<vmem>>, vector<1x64x128xbf16>
    %278 = vector.shape_cast %277 : vector<1x64x128xbf16> to vector<64x128xbf16>
    %cst_189 = arith.constant dense<0.000000e+00> : vector<16x128xf32>
    %279 = tpu.matmul %276, %278, %cst_189 {dimension_numbers = #tpu.dot_dimension_numbers<[1], [0], [0], [1], [0, 0, 1, 1], [], []>} : vector<16x64xbf16>, vector<64x128xbf16>, vector<16x128xf32> -> vector<16x128xf32>
    %c0_190 = arith.constant 0 : index
    %c0_191 = arith.constant 0 : index
    %c0_192 = arith.constant 0 : index
    %280 = vector.load %arg17[%c0_190, %c0_191, %c0_192] : memref<2x1x128xf32, #tpu.memory_space<vmem>>, vector<1x1x128xf32>
    %281 = vector.shape_cast %280 : vector<1x1x128xf32> to vector<1x128xf32>
    %282 = vector.broadcast %281 : vector<1x128xf32> to vector<16x128xf32>
    %283 = arith.addf %279, %282 : vector<16x128xf32>
    %284 = arith.mulf %283, %283 : vector<16x128xf32>
    %285 = arith.mulf %283, %284 : vector<16x128xf32>
    %cst_193 = arith.constant 4.471500e-02 : f32
    %286 = vector.broadcast %cst_193 : f32 to vector<16x128xf32>
    %287 = arith.mulf %286, %285 : vector<16x128xf32>
    %288 = arith.addf %283, %287 : vector<16x128xf32>
    %cst_194 = arith.constant 0.797884583 : f32
    %289 = vector.broadcast %cst_194 : f32 to vector<16x128xf32>
    %290 = arith.mulf %289, %288 : vector<16x128xf32>
    %291 = math.tanh %290 : vector<16x128xf32>
    %cst_195 = arith.constant 1.000000e+00 : f32
    %292 = vector.broadcast %cst_195 : f32 to vector<16x128xf32>
    %293 = arith.addf %292, %291 : vector<16x128xf32>
    %cst_196 = arith.constant 5.000000e-01 : f32
    %294 = vector.broadcast %cst_196 : f32 to vector<16x128xf32>
    %295 = arith.mulf %294, %293 : vector<16x128xf32>
    %296 = arith.mulf %283, %295 : vector<16x128xf32>
    %297 = arith.truncf %296 : vector<16x128xf32> to vector<16x128xbf16>
    %c0_197 = arith.constant 0 : index
    %c0_198 = arith.constant 0 : index
    %c0_199 = arith.constant 0 : index
    %298 = vector.load %arg18[%c0_197, %c0_198, %c0_199] : memref<2x128x64xbf16, #tpu.memory_space<vmem>>, vector<1x128x64xbf16>
    %299 = vector.shape_cast %298 : vector<1x128x64xbf16> to vector<128x64xbf16>
    %cst_200 = arith.constant dense<0.000000e+00> : vector<16x64xf32>
    %300 = tpu.matmul %297, %299, %cst_200 {dimension_numbers = #tpu.dot_dimension_numbers<[1], [0], [0], [1], [0, 0, 1, 1], [], []>} : vector<16x128xbf16>, vector<128x64xbf16>, vector<16x64xf32> -> vector<16x64xf32>
    %c0_201 = arith.constant 0 : index
    %c0_202 = arith.constant 0 : index
    %c0_203 = arith.constant 0 : index
    %301 = vector.load %arg19[%c0_201, %c0_202, %c0_203] : memref<2x1x64xf32, #tpu.memory_space<vmem>>, vector<1x1x64xf32>
    %302 = vector.shape_cast %301 : vector<1x1x64xf32> to vector<1x64xf32>
    %303 = vector.broadcast %302 : vector<1x64xf32> to vector<16x64xf32>
    %304 = arith.addf %300, %303 : vector<16x64xf32>
    %305 = arith.addf %304, %275 : vector<16x64xf32>
    %c0_204 = arith.constant 0 : index
    %c0_205 = arith.constant 0 : index
    %c0_206 = arith.constant 0 : index
    %306 = vector.load %arg20[%c0_204, %c0_205, %c0_206] : memref<2x1x64xf32, #tpu.memory_space<vmem>>, vector<1x1x64xf32>
    %307 = vector.shape_cast %306 : vector<1x1x64xf32> to vector<1x64xf32>
    %c0_207 = arith.constant 0 : index
    %c0_208 = arith.constant 0 : index
    %c0_209 = arith.constant 0 : index
    %308 = vector.load %arg21[%c0_207, %c0_208, %c0_209] : memref<2x1x64xf32, #tpu.memory_space<vmem>>, vector<1x1x64xf32>
    %309 = vector.shape_cast %308 : vector<1x1x64xf32> to vector<1x64xf32>
    %cst_210 = arith.constant dense<0.000000e+00> : vector<16xf32>
    %310 = vector.multi_reduction <add>, %305, %cst_210 [1] : vector<16x64xf32> to vector<16xf32>
    %311 = vector.shape_cast %310 : vector<16xf32> to vector<16x1xf32>
    %cst_211 = arith.constant 6.400000e+01 : f32
    %312 = vector.broadcast %cst_211 : f32 to vector<16x1xf32>
    %313 = arith.divf %311, %312 : vector<16x1xf32>
    %314 = arith.mulf %305, %305 : vector<16x64xf32>
    %cst_212 = arith.constant dense<0.000000e+00> : vector<16xf32>
    %315 = vector.multi_reduction <add>, %314, %cst_212 [1] : vector<16x64xf32> to vector<16xf32>
    %316 = vector.shape_cast %315 : vector<16xf32> to vector<16x1xf32>
    %cst_213 = arith.constant 6.400000e+01 : f32
    %317 = vector.broadcast %cst_213 : f32 to vector<16x1xf32>
    %318 = arith.divf %316, %317 : vector<16x1xf32>
    %319 = arith.mulf %313, %313 : vector<16x1xf32>
    %320 = arith.subf %318, %319 : vector<16x1xf32>
    %cst_214 = arith.constant 0.000000e+00 : f32
    %321 = vector.broadcast %cst_214 : f32 to vector<16x1xf32>
    %322 = arith.maximumf %320, %321 : vector<16x1xf32>
    %323 = vector.broadcast %313 : vector<16x1xf32> to vector<16x64xf32>
    %324 = arith.subf %305, %323 : vector<16x64xf32>
    %cst_215 = arith.constant 9.99999996E-13 : f32
    %325 = vector.broadcast %cst_215 : f32 to vector<16x1xf32>
    %326 = arith.addf %322, %325 : vector<16x1xf32>
    %327 = math.rsqrt %326 : vector<16x1xf32>
    %328 = vector.broadcast %327 : vector<16x1xf32> to vector<16x64xf32>
    %329 = arith.mulf %324, %328 : vector<16x64xf32>
    %330 = vector.broadcast %307 : vector<1x64xf32> to vector<16x64xf32>
    %331 = arith.mulf %329, %330 : vector<16x64xf32>
    %332 = vector.broadcast %309 : vector<1x64xf32> to vector<16x64xf32>
    %333 = arith.addf %331, %332 : vector<16x64xf32>
    %334 = arith.truncf %333 : vector<16x64xf32> to vector<16x64xbf16>
    %c1_216 = arith.constant 1 : index
    %c0_217 = arith.constant 0 : index
    %c0_218 = arith.constant 0 : index
    %c0_219 = arith.constant 0 : index
    %335 = vector.load %arg6[%c1_216, %c0_217, %c0_218, %c0_219] : memref<2x4x64x16xbf16, #tpu.memory_space<vmem>>, vector<1x1x64x16xbf16>
    %336 = vector.shape_cast %335 : vector<1x1x64x16xbf16> to vector<64x16xbf16>
    %cst_220 = arith.constant dense<0.000000e+00> : vector<16x16xf32>
    %337 = tpu.matmul %334, %336, %cst_220 {dimension_numbers = #tpu.dot_dimension_numbers<[1], [0], [0], [1], [0, 0, 1, 1], [], []>} : vector<16x64xbf16>, vector<64x16xbf16>, vector<16x16xf32> -> vector<16x16xf32>
    %c1_221 = arith.constant 1 : index
    %c0_222 = arith.constant 0 : index
    %c0_223 = arith.constant 0 : index
    %c0_224 = arith.constant 0 : index
    %338 = vector.load %arg9[%c1_221, %c0_222, %c0_223, %c0_224] : memref<2x4x1x16xf32, #tpu.memory_space<vmem>>, vector<1x1x1x16xf32>
    %339 = vector.shape_cast %338 : vector<1x1x1x16xf32> to vector<1x16xf32>
    %340 = vector.broadcast %339 : vector<1x16xf32> to vector<16x16xf32>
    %341 = arith.addf %337, %340 : vector<16x16xf32>
    %c1_225 = arith.constant 1 : index
    %c0_226 = arith.constant 0 : index
    %c0_227 = arith.constant 0 : index
    %c0_228 = arith.constant 0 : index
    %342 = vector.load %arg7[%c1_225, %c0_226, %c0_227, %c0_228] : memref<2x4x64x16xbf16, #tpu.memory_space<vmem>>, vector<1x1x64x16xbf16>
    %343 = vector.shape_cast %342 : vector<1x1x64x16xbf16> to vector<64x16xbf16>
    %cst_229 = arith.constant dense<0.000000e+00> : vector<16x16xf32>
    %344 = tpu.matmul %334, %343, %cst_229 {dimension_numbers = #tpu.dot_dimension_numbers<[1], [0], [0], [1], [0, 0, 1, 1], [], []>} : vector<16x64xbf16>, vector<64x16xbf16>, vector<16x16xf32> -> vector<16x16xf32>
    %c1_230 = arith.constant 1 : index
    %c0_231 = arith.constant 0 : index
    %c0_232 = arith.constant 0 : index
    %c0_233 = arith.constant 0 : index
    %345 = vector.load %arg10[%c1_230, %c0_231, %c0_232, %c0_233] : memref<2x4x1x16xf32, #tpu.memory_space<vmem>>, vector<1x1x1x16xf32>
    %346 = vector.shape_cast %345 : vector<1x1x1x16xf32> to vector<1x16xf32>
    %347 = vector.broadcast %346 : vector<1x16xf32> to vector<16x16xf32>
    %348 = arith.addf %344, %347 : vector<16x16xf32>
    %c1_234 = arith.constant 1 : index
    %c0_235 = arith.constant 0 : index
    %c0_236 = arith.constant 0 : index
    %c0_237 = arith.constant 0 : index
    %349 = vector.load %arg8[%c1_234, %c0_235, %c0_236, %c0_237] : memref<2x4x64x16xbf16, #tpu.memory_space<vmem>>, vector<1x1x64x16xbf16>
    %350 = vector.shape_cast %349 : vector<1x1x64x16xbf16> to vector<64x16xbf16>
    %cst_238 = arith.constant dense<0.000000e+00> : vector<16x16xf32>
    %351 = tpu.matmul %334, %350, %cst_238 {dimension_numbers = #tpu.dot_dimension_numbers<[1], [0], [0], [1], [0, 0, 1, 1], [], []>} : vector<16x64xbf16>, vector<64x16xbf16>, vector<16x16xf32> -> vector<16x16xf32>
    %c1_239 = arith.constant 1 : index
    %c0_240 = arith.constant 0 : index
    %c0_241 = arith.constant 0 : index
    %c0_242 = arith.constant 0 : index
    %352 = vector.load %arg11[%c1_239, %c0_240, %c0_241, %c0_242] : memref<2x4x1x16xf32, #tpu.memory_space<vmem>>, vector<1x1x1x16xf32>
    %353 = vector.shape_cast %352 : vector<1x1x1x16xf32> to vector<1x16xf32>
    %354 = vector.broadcast %353 : vector<1x16xf32> to vector<16x16xf32>
    %355 = arith.addf %351, %354 : vector<16x16xf32>
    %356 = arith.truncf %341 : vector<16x16xf32> to vector<16x16xbf16>
    %357 = arith.truncf %348 : vector<16x16xf32> to vector<16x16xbf16>
    %cst_243 = arith.constant dense<0.000000e+00> : vector<16x16xf32>
    %358 = tpu.matmul %356, %357, %cst_243 {dimension_numbers = #tpu.dot_dimension_numbers<[1], [1], [0], [0], [0, 0, 1, 0], [], []>} : vector<16x16xbf16>, vector<16x16xbf16>, vector<16x16xf32> -> vector<16x16xf32>
    %cst_244 = arith.constant 2.500000e-01 : f32
    %359 = vector.broadcast %cst_244 : f32 to vector<16x16xf32>
    %360 = arith.mulf %358, %359 : vector<16x16xf32>
    %361 = arith.addf %360, %62 : vector<16x16xf32>
    %cst_245 = arith.constant dense<0xFF800000> : vector<16xf32>
    %362 = vector.multi_reduction <maximumf>, %361, %cst_245 [1] : vector<16x16xf32> to vector<16xf32>
    %363 = vector.shape_cast %362 : vector<16xf32> to vector<16x1xf32>
    %364 = vector.broadcast %363 : vector<16x1xf32> to vector<16x16xf32>
    %365 = arith.subf %361, %364 : vector<16x16xf32>
    %366 = math.exp %365 : vector<16x16xf32>
    %cst_246 = arith.constant dense<0.000000e+00> : vector<16xf32>
    %367 = vector.multi_reduction <add>, %366, %cst_246 [1] : vector<16x16xf32> to vector<16xf32>
    %368 = vector.shape_cast %367 : vector<16xf32> to vector<16x1xf32>
    %369 = tpu.reciprocal %368 {approx = true} : vector<16x1xf32> -> vector<16x1xf32>
    %370 = vector.broadcast %369 : vector<16x1xf32> to vector<16x16xf32>
    %371 = arith.mulf %366, %370 : vector<16x16xf32>
    %372 = arith.truncf %371 : vector<16x16xf32> to vector<16x16xbf16>
    %373 = arith.truncf %355 : vector<16x16xf32> to vector<16x16xbf16>
    %cst_247 = arith.constant dense<0.000000e+00> : vector<16x16xf32>
    %374 = tpu.matmul %372, %373, %cst_247 {dimension_numbers = #tpu.dot_dimension_numbers<[1], [0], [0], [1], [0, 0, 1, 1], [], []>} : vector<16x16xbf16>, vector<16x16xbf16>, vector<16x16xf32> -> vector<16x16xf32>
    %375 = arith.truncf %374 : vector<16x16xf32> to vector<16x16xbf16>
    %c1_248 = arith.constant 1 : index
    %c0_249 = arith.constant 0 : index
    %c0_250 = arith.constant 0 : index
    %c0_251 = arith.constant 0 : index
    %376 = vector.load %arg12[%c1_248, %c0_249, %c0_250, %c0_251] : memref<2x4x16x64xbf16, #tpu.memory_space<vmem>>, vector<1x1x16x64xbf16>
    %377 = vector.shape_cast %376 : vector<1x1x16x64xbf16> to vector<16x64xbf16>
    %cst_252 = arith.constant dense<0.000000e+00> : vector<16x64xf32>
    %378 = tpu.matmul %375, %377, %cst_252 {dimension_numbers = #tpu.dot_dimension_numbers<[1], [0], [0], [1], [0, 0, 1, 1], [], []>} : vector<16x16xbf16>, vector<16x64xbf16>, vector<16x64xf32> -> vector<16x64xf32>
    %c1_253 = arith.constant 1 : index
    %c1_254 = arith.constant 1 : index
    %c0_255 = arith.constant 0 : index
    %c0_256 = arith.constant 0 : index
    %379 = vector.load %arg6[%c1_253, %c1_254, %c0_255, %c0_256] : memref<2x4x64x16xbf16, #tpu.memory_space<vmem>>, vector<1x1x64x16xbf16>
    %380 = vector.shape_cast %379 : vector<1x1x64x16xbf16> to vector<64x16xbf16>
    %cst_257 = arith.constant dense<0.000000e+00> : vector<16x16xf32>
    %381 = tpu.matmul %334, %380, %cst_257 {dimension_numbers = #tpu.dot_dimension_numbers<[1], [0], [0], [1], [0, 0, 1, 1], [], []>} : vector<16x64xbf16>, vector<64x16xbf16>, vector<16x16xf32> -> vector<16x16xf32>
    %c1_258 = arith.constant 1 : index
    %c1_259 = arith.constant 1 : index
    %c0_260 = arith.constant 0 : index
    %c0_261 = arith.constant 0 : index
    %382 = vector.load %arg9[%c1_258, %c1_259, %c0_260, %c0_261] : memref<2x4x1x16xf32, #tpu.memory_space<vmem>>, vector<1x1x1x16xf32>
    %383 = vector.shape_cast %382 : vector<1x1x1x16xf32> to vector<1x16xf32>
    %384 = vector.broadcast %383 : vector<1x16xf32> to vector<16x16xf32>
    %385 = arith.addf %381, %384 : vector<16x16xf32>
    %c1_262 = arith.constant 1 : index
    %c1_263 = arith.constant 1 : index
    %c0_264 = arith.constant 0 : index
    %c0_265 = arith.constant 0 : index
    %386 = vector.load %arg7[%c1_262, %c1_263, %c0_264, %c0_265] : memref<2x4x64x16xbf16, #tpu.memory_space<vmem>>, vector<1x1x64x16xbf16>
    %387 = vector.shape_cast %386 : vector<1x1x64x16xbf16> to vector<64x16xbf16>
    %cst_266 = arith.constant dense<0.000000e+00> : vector<16x16xf32>
    %388 = tpu.matmul %334, %387, %cst_266 {dimension_numbers = #tpu.dot_dimension_numbers<[1], [0], [0], [1], [0, 0, 1, 1], [], []>} : vector<16x64xbf16>, vector<64x16xbf16>, vector<16x16xf32> -> vector<16x16xf32>
    %c1_267 = arith.constant 1 : index
    %c1_268 = arith.constant 1 : index
    %c0_269 = arith.constant 0 : index
    %c0_270 = arith.constant 0 : index
    %389 = vector.load %arg10[%c1_267, %c1_268, %c0_269, %c0_270] : memref<2x4x1x16xf32, #tpu.memory_space<vmem>>, vector<1x1x1x16xf32>
    %390 = vector.shape_cast %389 : vector<1x1x1x16xf32> to vector<1x16xf32>
    %391 = vector.broadcast %390 : vector<1x16xf32> to vector<16x16xf32>
    %392 = arith.addf %388, %391 : vector<16x16xf32>
    %c1_271 = arith.constant 1 : index
    %c1_272 = arith.constant 1 : index
    %c0_273 = arith.constant 0 : index
    %c0_274 = arith.constant 0 : index
    %393 = vector.load %arg8[%c1_271, %c1_272, %c0_273, %c0_274] : memref<2x4x64x16xbf16, #tpu.memory_space<vmem>>, vector<1x1x64x16xbf16>
    %394 = vector.shape_cast %393 : vector<1x1x64x16xbf16> to vector<64x16xbf16>
    %cst_275 = arith.constant dense<0.000000e+00> : vector<16x16xf32>
    %395 = tpu.matmul %334, %394, %cst_275 {dimension_numbers = #tpu.dot_dimension_numbers<[1], [0], [0], [1], [0, 0, 1, 1], [], []>} : vector<16x64xbf16>, vector<64x16xbf16>, vector<16x16xf32> -> vector<16x16xf32>
    %c1_276 = arith.constant 1 : index
    %c1_277 = arith.constant 1 : index
    %c0_278 = arith.constant 0 : index
    %c0_279 = arith.constant 0 : index
    %396 = vector.load %arg11[%c1_276, %c1_277, %c0_278, %c0_279] : memref<2x4x1x16xf32, #tpu.memory_space<vmem>>, vector<1x1x1x16xf32>
    %397 = vector.shape_cast %396 : vector<1x1x1x16xf32> to vector<1x16xf32>
    %398 = vector.broadcast %397 : vector<1x16xf32> to vector<16x16xf32>
    %399 = arith.addf %395, %398 : vector<16x16xf32>
    %400 = arith.truncf %385 : vector<16x16xf32> to vector<16x16xbf16>
    %401 = arith.truncf %392 : vector<16x16xf32> to vector<16x16xbf16>
    %cst_280 = arith.constant dense<0.000000e+00> : vector<16x16xf32>
    %402 = tpu.matmul %400, %401, %cst_280 {dimension_numbers = #tpu.dot_dimension_numbers<[1], [1], [0], [0], [0, 0, 1, 0], [], []>} : vector<16x16xbf16>, vector<16x16xbf16>, vector<16x16xf32> -> vector<16x16xf32>
    %cst_281 = arith.constant 2.500000e-01 : f32
    %403 = vector.broadcast %cst_281 : f32 to vector<16x16xf32>
    %404 = arith.mulf %402, %403 : vector<16x16xf32>
    %405 = arith.addf %404, %62 : vector<16x16xf32>
    %cst_282 = arith.constant dense<0xFF800000> : vector<16xf32>
    %406 = vector.multi_reduction <maximumf>, %405, %cst_282 [1] : vector<16x16xf32> to vector<16xf32>
    %407 = vector.shape_cast %406 : vector<16xf32> to vector<16x1xf32>
    %408 = vector.broadcast %407 : vector<16x1xf32> to vector<16x16xf32>
    %409 = arith.subf %405, %408 : vector<16x16xf32>
    %410 = math.exp %409 : vector<16x16xf32>
    %cst_283 = arith.constant dense<0.000000e+00> : vector<16xf32>
    %411 = vector.multi_reduction <add>, %410, %cst_283 [1] : vector<16x16xf32> to vector<16xf32>
    %412 = vector.shape_cast %411 : vector<16xf32> to vector<16x1xf32>
    %413 = tpu.reciprocal %412 {approx = true} : vector<16x1xf32> -> vector<16x1xf32>
    %414 = vector.broadcast %413 : vector<16x1xf32> to vector<16x16xf32>
    %415 = arith.mulf %410, %414 : vector<16x16xf32>
    %416 = arith.truncf %415 : vector<16x16xf32> to vector<16x16xbf16>
    %417 = arith.truncf %399 : vector<16x16xf32> to vector<16x16xbf16>
    %cst_284 = arith.constant dense<0.000000e+00> : vector<16x16xf32>
    %418 = tpu.matmul %416, %417, %cst_284 {dimension_numbers = #tpu.dot_dimension_numbers<[1], [0], [0], [1], [0, 0, 1, 1], [], []>} : vector<16x16xbf16>, vector<16x16xbf16>, vector<16x16xf32> -> vector<16x16xf32>
    %419 = arith.truncf %418 : vector<16x16xf32> to vector<16x16xbf16>
    %c1_285 = arith.constant 1 : index
    %c1_286 = arith.constant 1 : index
    %c0_287 = arith.constant 0 : index
    %c0_288 = arith.constant 0 : index
    %420 = vector.load %arg12[%c1_285, %c1_286, %c0_287, %c0_288] : memref<2x4x16x64xbf16, #tpu.memory_space<vmem>>, vector<1x1x16x64xbf16>
    %421 = vector.shape_cast %420 : vector<1x1x16x64xbf16> to vector<16x64xbf16>
    %cst_289 = arith.constant dense<0.000000e+00> : vector<16x64xf32>
    %422 = tpu.matmul %419, %421, %cst_289 {dimension_numbers = #tpu.dot_dimension_numbers<[1], [0], [0], [1], [0, 0, 1, 1], [], []>} : vector<16x16xbf16>, vector<16x64xbf16>, vector<16x64xf32> -> vector<16x64xf32>
    %423 = arith.addf %378, %422 : vector<16x64xf32>
    %c1_290 = arith.constant 1 : index
    %c2_291 = arith.constant 2 : index
    %c0_292 = arith.constant 0 : index
    %c0_293 = arith.constant 0 : index
    %424 = vector.load %arg6[%c1_290, %c2_291, %c0_292, %c0_293] : memref<2x4x64x16xbf16, #tpu.memory_space<vmem>>, vector<1x1x64x16xbf16>
    %425 = vector.shape_cast %424 : vector<1x1x64x16xbf16> to vector<64x16xbf16>
    %cst_294 = arith.constant dense<0.000000e+00> : vector<16x16xf32>
    %426 = tpu.matmul %334, %425, %cst_294 {dimension_numbers = #tpu.dot_dimension_numbers<[1], [0], [0], [1], [0, 0, 1, 1], [], []>} : vector<16x64xbf16>, vector<64x16xbf16>, vector<16x16xf32> -> vector<16x16xf32>
    %c1_295 = arith.constant 1 : index
    %c2_296 = arith.constant 2 : index
    %c0_297 = arith.constant 0 : index
    %c0_298 = arith.constant 0 : index
    %427 = vector.load %arg9[%c1_295, %c2_296, %c0_297, %c0_298] : memref<2x4x1x16xf32, #tpu.memory_space<vmem>>, vector<1x1x1x16xf32>
    %428 = vector.shape_cast %427 : vector<1x1x1x16xf32> to vector<1x16xf32>
    %429 = vector.broadcast %428 : vector<1x16xf32> to vector<16x16xf32>
    %430 = arith.addf %426, %429 : vector<16x16xf32>
    %c1_299 = arith.constant 1 : index
    %c2_300 = arith.constant 2 : index
    %c0_301 = arith.constant 0 : index
    %c0_302 = arith.constant 0 : index
    %431 = vector.load %arg7[%c1_299, %c2_300, %c0_301, %c0_302] : memref<2x4x64x16xbf16, #tpu.memory_space<vmem>>, vector<1x1x64x16xbf16>
    %432 = vector.shape_cast %431 : vector<1x1x64x16xbf16> to vector<64x16xbf16>
    %cst_303 = arith.constant dense<0.000000e+00> : vector<16x16xf32>
    %433 = tpu.matmul %334, %432, %cst_303 {dimension_numbers = #tpu.dot_dimension_numbers<[1], [0], [0], [1], [0, 0, 1, 1], [], []>} : vector<16x64xbf16>, vector<64x16xbf16>, vector<16x16xf32> -> vector<16x16xf32>
    %c1_304 = arith.constant 1 : index
    %c2_305 = arith.constant 2 : index
    %c0_306 = arith.constant 0 : index
    %c0_307 = arith.constant 0 : index
    %434 = vector.load %arg10[%c1_304, %c2_305, %c0_306, %c0_307] : memref<2x4x1x16xf32, #tpu.memory_space<vmem>>, vector<1x1x1x16xf32>
    %435 = vector.shape_cast %434 : vector<1x1x1x16xf32> to vector<1x16xf32>
    %436 = vector.broadcast %435 : vector<1x16xf32> to vector<16x16xf32>
    %437 = arith.addf %433, %436 : vector<16x16xf32>
    %c1_308 = arith.constant 1 : index
    %c2_309 = arith.constant 2 : index
    %c0_310 = arith.constant 0 : index
    %c0_311 = arith.constant 0 : index
    %438 = vector.load %arg8[%c1_308, %c2_309, %c0_310, %c0_311] : memref<2x4x64x16xbf16, #tpu.memory_space<vmem>>, vector<1x1x64x16xbf16>
    %439 = vector.shape_cast %438 : vector<1x1x64x16xbf16> to vector<64x16xbf16>
    %cst_312 = arith.constant dense<0.000000e+00> : vector<16x16xf32>
    %440 = tpu.matmul %334, %439, %cst_312 {dimension_numbers = #tpu.dot_dimension_numbers<[1], [0], [0], [1], [0, 0, 1, 1], [], []>} : vector<16x64xbf16>, vector<64x16xbf16>, vector<16x16xf32> -> vector<16x16xf32>
    %c1_313 = arith.constant 1 : index
    %c2_314 = arith.constant 2 : index
    %c0_315 = arith.constant 0 : index
    %c0_316 = arith.constant 0 : index
    %441 = vector.load %arg11[%c1_313, %c2_314, %c0_315, %c0_316] : memref<2x4x1x16xf32, #tpu.memory_space<vmem>>, vector<1x1x1x16xf32>
    %442 = vector.shape_cast %441 : vector<1x1x1x16xf32> to vector<1x16xf32>
    %443 = vector.broadcast %442 : vector<1x16xf32> to vector<16x16xf32>
    %444 = arith.addf %440, %443 : vector<16x16xf32>
    %445 = arith.truncf %430 : vector<16x16xf32> to vector<16x16xbf16>
    %446 = arith.truncf %437 : vector<16x16xf32> to vector<16x16xbf16>
    %cst_317 = arith.constant dense<0.000000e+00> : vector<16x16xf32>
    %447 = tpu.matmul %445, %446, %cst_317 {dimension_numbers = #tpu.dot_dimension_numbers<[1], [1], [0], [0], [0, 0, 1, 0], [], []>} : vector<16x16xbf16>, vector<16x16xbf16>, vector<16x16xf32> -> vector<16x16xf32>
    %cst_318 = arith.constant 2.500000e-01 : f32
    %448 = vector.broadcast %cst_318 : f32 to vector<16x16xf32>
    %449 = arith.mulf %447, %448 : vector<16x16xf32>
    %450 = arith.addf %449, %62 : vector<16x16xf32>
    %cst_319 = arith.constant dense<0xFF800000> : vector<16xf32>
    %451 = vector.multi_reduction <maximumf>, %450, %cst_319 [1] : vector<16x16xf32> to vector<16xf32>
    %452 = vector.shape_cast %451 : vector<16xf32> to vector<16x1xf32>
    %453 = vector.broadcast %452 : vector<16x1xf32> to vector<16x16xf32>
    %454 = arith.subf %450, %453 : vector<16x16xf32>
    %455 = math.exp %454 : vector<16x16xf32>
    %cst_320 = arith.constant dense<0.000000e+00> : vector<16xf32>
    %456 = vector.multi_reduction <add>, %455, %cst_320 [1] : vector<16x16xf32> to vector<16xf32>
    %457 = vector.shape_cast %456 : vector<16xf32> to vector<16x1xf32>
    %458 = tpu.reciprocal %457 {approx = true} : vector<16x1xf32> -> vector<16x1xf32>
    %459 = vector.broadcast %458 : vector<16x1xf32> to vector<16x16xf32>
    %460 = arith.mulf %455, %459 : vector<16x16xf32>
    %461 = arith.truncf %460 : vector<16x16xf32> to vector<16x16xbf16>
    %462 = arith.truncf %444 : vector<16x16xf32> to vector<16x16xbf16>
    %cst_321 = arith.constant dense<0.000000e+00> : vector<16x16xf32>
    %463 = tpu.matmul %461, %462, %cst_321 {dimension_numbers = #tpu.dot_dimension_numbers<[1], [0], [0], [1], [0, 0, 1, 1], [], []>} : vector<16x16xbf16>, vector<16x16xbf16>, vector<16x16xf32> -> vector<16x16xf32>
    %464 = arith.truncf %463 : vector<16x16xf32> to vector<16x16xbf16>
    %c1_322 = arith.constant 1 : index
    %c2_323 = arith.constant 2 : index
    %c0_324 = arith.constant 0 : index
    %c0_325 = arith.constant 0 : index
    %465 = vector.load %arg12[%c1_322, %c2_323, %c0_324, %c0_325] : memref<2x4x16x64xbf16, #tpu.memory_space<vmem>>, vector<1x1x16x64xbf16>
    %466 = vector.shape_cast %465 : vector<1x1x16x64xbf16> to vector<16x64xbf16>
    %cst_326 = arith.constant dense<0.000000e+00> : vector<16x64xf32>
    %467 = tpu.matmul %464, %466, %cst_326 {dimension_numbers = #tpu.dot_dimension_numbers<[1], [0], [0], [1], [0, 0, 1, 1], [], []>} : vector<16x16xbf16>, vector<16x64xbf16>, vector<16x64xf32> -> vector<16x64xf32>
    %468 = arith.addf %423, %467 : vector<16x64xf32>
    %c1_327 = arith.constant 1 : index
    %c3_328 = arith.constant 3 : index
    %c0_329 = arith.constant 0 : index
    %c0_330 = arith.constant 0 : index
    %469 = vector.load %arg6[%c1_327, %c3_328, %c0_329, %c0_330] : memref<2x4x64x16xbf16, #tpu.memory_space<vmem>>, vector<1x1x64x16xbf16>
    %470 = vector.shape_cast %469 : vector<1x1x64x16xbf16> to vector<64x16xbf16>
    %cst_331 = arith.constant dense<0.000000e+00> : vector<16x16xf32>
    %471 = tpu.matmul %334, %470, %cst_331 {dimension_numbers = #tpu.dot_dimension_numbers<[1], [0], [0], [1], [0, 0, 1, 1], [], []>} : vector<16x64xbf16>, vector<64x16xbf16>, vector<16x16xf32> -> vector<16x16xf32>
    %c1_332 = arith.constant 1 : index
    %c3_333 = arith.constant 3 : index
    %c0_334 = arith.constant 0 : index
    %c0_335 = arith.constant 0 : index
    %472 = vector.load %arg9[%c1_332, %c3_333, %c0_334, %c0_335] : memref<2x4x1x16xf32, #tpu.memory_space<vmem>>, vector<1x1x1x16xf32>
    %473 = vector.shape_cast %472 : vector<1x1x1x16xf32> to vector<1x16xf32>
    %474 = vector.broadcast %473 : vector<1x16xf32> to vector<16x16xf32>
    %475 = arith.addf %471, %474 : vector<16x16xf32>
    %c1_336 = arith.constant 1 : index
    %c3_337 = arith.constant 3 : index
    %c0_338 = arith.constant 0 : index
    %c0_339 = arith.constant 0 : index
    %476 = vector.load %arg7[%c1_336, %c3_337, %c0_338, %c0_339] : memref<2x4x64x16xbf16, #tpu.memory_space<vmem>>, vector<1x1x64x16xbf16>
    %477 = vector.shape_cast %476 : vector<1x1x64x16xbf16> to vector<64x16xbf16>
    %cst_340 = arith.constant dense<0.000000e+00> : vector<16x16xf32>
    %478 = tpu.matmul %334, %477, %cst_340 {dimension_numbers = #tpu.dot_dimension_numbers<[1], [0], [0], [1], [0, 0, 1, 1], [], []>} : vector<16x64xbf16>, vector<64x16xbf16>, vector<16x16xf32> -> vector<16x16xf32>
    %c1_341 = arith.constant 1 : index
    %c3_342 = arith.constant 3 : index
    %c0_343 = arith.constant 0 : index
    %c0_344 = arith.constant 0 : index
    %479 = vector.load %arg10[%c1_341, %c3_342, %c0_343, %c0_344] : memref<2x4x1x16xf32, #tpu.memory_space<vmem>>, vector<1x1x1x16xf32>
    %480 = vector.shape_cast %479 : vector<1x1x1x16xf32> to vector<1x16xf32>
    %481 = vector.broadcast %480 : vector<1x16xf32> to vector<16x16xf32>
    %482 = arith.addf %478, %481 : vector<16x16xf32>
    %c1_345 = arith.constant 1 : index
    %c3_346 = arith.constant 3 : index
    %c0_347 = arith.constant 0 : index
    %c0_348 = arith.constant 0 : index
    %483 = vector.load %arg8[%c1_345, %c3_346, %c0_347, %c0_348] : memref<2x4x64x16xbf16, #tpu.memory_space<vmem>>, vector<1x1x64x16xbf16>
    %484 = vector.shape_cast %483 : vector<1x1x64x16xbf16> to vector<64x16xbf16>
    %cst_349 = arith.constant dense<0.000000e+00> : vector<16x16xf32>
    %485 = tpu.matmul %334, %484, %cst_349 {dimension_numbers = #tpu.dot_dimension_numbers<[1], [0], [0], [1], [0, 0, 1, 1], [], []>} : vector<16x64xbf16>, vector<64x16xbf16>, vector<16x16xf32> -> vector<16x16xf32>
    %c1_350 = arith.constant 1 : index
    %c3_351 = arith.constant 3 : index
    %c0_352 = arith.constant 0 : index
    %c0_353 = arith.constant 0 : index
    %486 = vector.load %arg11[%c1_350, %c3_351, %c0_352, %c0_353] : memref<2x4x1x16xf32, #tpu.memory_space<vmem>>, vector<1x1x1x16xf32>
    %487 = vector.shape_cast %486 : vector<1x1x1x16xf32> to vector<1x16xf32>
    %488 = vector.broadcast %487 : vector<1x16xf32> to vector<16x16xf32>
    %489 = arith.addf %485, %488 : vector<16x16xf32>
    %490 = arith.truncf %475 : vector<16x16xf32> to vector<16x16xbf16>
    %491 = arith.truncf %482 : vector<16x16xf32> to vector<16x16xbf16>
    %cst_354 = arith.constant dense<0.000000e+00> : vector<16x16xf32>
    %492 = tpu.matmul %490, %491, %cst_354 {dimension_numbers = #tpu.dot_dimension_numbers<[1], [1], [0], [0], [0, 0, 1, 0], [], []>} : vector<16x16xbf16>, vector<16x16xbf16>, vector<16x16xf32> -> vector<16x16xf32>
    %cst_355 = arith.constant 2.500000e-01 : f32
    %493 = vector.broadcast %cst_355 : f32 to vector<16x16xf32>
    %494 = arith.mulf %492, %493 : vector<16x16xf32>
    %495 = arith.addf %494, %62 : vector<16x16xf32>
    %cst_356 = arith.constant dense<0xFF800000> : vector<16xf32>
    %496 = vector.multi_reduction <maximumf>, %495, %cst_356 [1] : vector<16x16xf32> to vector<16xf32>
    %497 = vector.shape_cast %496 : vector<16xf32> to vector<16x1xf32>
    %498 = vector.broadcast %497 : vector<16x1xf32> to vector<16x16xf32>
    %499 = arith.subf %495, %498 : vector<16x16xf32>
    %500 = math.exp %499 : vector<16x16xf32>
    %cst_357 = arith.constant dense<0.000000e+00> : vector<16xf32>
    %501 = vector.multi_reduction <add>, %500, %cst_357 [1] : vector<16x16xf32> to vector<16xf32>
    %502 = vector.shape_cast %501 : vector<16xf32> to vector<16x1xf32>
    %503 = tpu.reciprocal %502 {approx = true} : vector<16x1xf32> -> vector<16x1xf32>
    %504 = vector.broadcast %503 : vector<16x1xf32> to vector<16x16xf32>
    %505 = arith.mulf %500, %504 : vector<16x16xf32>
    %506 = arith.truncf %505 : vector<16x16xf32> to vector<16x16xbf16>
    %507 = arith.truncf %489 : vector<16x16xf32> to vector<16x16xbf16>
    %cst_358 = arith.constant dense<0.000000e+00> : vector<16x16xf32>
    %508 = tpu.matmul %506, %507, %cst_358 {dimension_numbers = #tpu.dot_dimension_numbers<[1], [0], [0], [1], [0, 0, 1, 1], [], []>} : vector<16x16xbf16>, vector<16x16xbf16>, vector<16x16xf32> -> vector<16x16xf32>
    %509 = arith.truncf %508 : vector<16x16xf32> to vector<16x16xbf16>
    %c1_359 = arith.constant 1 : index
    %c3_360 = arith.constant 3 : index
    %c0_361 = arith.constant 0 : index
    %c0_362 = arith.constant 0 : index
    %510 = vector.load %arg12[%c1_359, %c3_360, %c0_361, %c0_362] : memref<2x4x16x64xbf16, #tpu.memory_space<vmem>>, vector<1x1x16x64xbf16>
    %511 = vector.shape_cast %510 : vector<1x1x16x64xbf16> to vector<16x64xbf16>
    %cst_363 = arith.constant dense<0.000000e+00> : vector<16x64xf32>
    %512 = tpu.matmul %509, %511, %cst_363 {dimension_numbers = #tpu.dot_dimension_numbers<[1], [0], [0], [1], [0, 0, 1, 1], [], []>} : vector<16x16xbf16>, vector<16x64xbf16>, vector<16x64xf32> -> vector<16x64xf32>
    %513 = arith.addf %468, %512 : vector<16x64xf32>
    %c1_364 = arith.constant 1 : index
    %c0_365 = arith.constant 0 : index
    %c0_366 = arith.constant 0 : index
    %514 = vector.load %arg13[%c1_364, %c0_365, %c0_366] : memref<2x1x64xf32, #tpu.memory_space<vmem>>, vector<1x1x64xf32>
    %515 = vector.shape_cast %514 : vector<1x1x64xf32> to vector<1x64xf32>
    %516 = vector.broadcast %515 : vector<1x64xf32> to vector<16x64xf32>
    %517 = arith.addf %513, %516 : vector<16x64xf32>
    %518 = arith.addf %517, %333 : vector<16x64xf32>
    %c1_367 = arith.constant 1 : index
    %c0_368 = arith.constant 0 : index
    %c0_369 = arith.constant 0 : index
    %519 = vector.load %arg14[%c1_367, %c0_368, %c0_369] : memref<2x1x64xf32, #tpu.memory_space<vmem>>, vector<1x1x64xf32>
    %520 = vector.shape_cast %519 : vector<1x1x64xf32> to vector<1x64xf32>
    %c1_370 = arith.constant 1 : index
    %c0_371 = arith.constant 0 : index
    %c0_372 = arith.constant 0 : index
    %521 = vector.load %arg15[%c1_370, %c0_371, %c0_372] : memref<2x1x64xf32, #tpu.memory_space<vmem>>, vector<1x1x64xf32>
    %522 = vector.shape_cast %521 : vector<1x1x64xf32> to vector<1x64xf32>
    %cst_373 = arith.constant dense<0.000000e+00> : vector<16xf32>
    %523 = vector.multi_reduction <add>, %518, %cst_373 [1] : vector<16x64xf32> to vector<16xf32>
    %524 = vector.shape_cast %523 : vector<16xf32> to vector<16x1xf32>
    %cst_374 = arith.constant 6.400000e+01 : f32
    %525 = vector.broadcast %cst_374 : f32 to vector<16x1xf32>
    %526 = arith.divf %524, %525 : vector<16x1xf32>
    %527 = arith.mulf %518, %518 : vector<16x64xf32>
    %cst_375 = arith.constant dense<0.000000e+00> : vector<16xf32>
    %528 = vector.multi_reduction <add>, %527, %cst_375 [1] : vector<16x64xf32> to vector<16xf32>
    %529 = vector.shape_cast %528 : vector<16xf32> to vector<16x1xf32>
    %cst_376 = arith.constant 6.400000e+01 : f32
    %530 = vector.broadcast %cst_376 : f32 to vector<16x1xf32>
    %531 = arith.divf %529, %530 : vector<16x1xf32>
    %532 = arith.mulf %526, %526 : vector<16x1xf32>
    %533 = arith.subf %531, %532 : vector<16x1xf32>
    %cst_377 = arith.constant 0.000000e+00 : f32
    %534 = vector.broadcast %cst_377 : f32 to vector<16x1xf32>
    %535 = arith.maximumf %533, %534 : vector<16x1xf32>
    %536 = vector.broadcast %526 : vector<16x1xf32> to vector<16x64xf32>
    %537 = arith.subf %518, %536 : vector<16x64xf32>
    %cst_378 = arith.constant 9.99999996E-13 : f32
    %538 = vector.broadcast %cst_378 : f32 to vector<16x1xf32>
    %539 = arith.addf %535, %538 : vector<16x1xf32>
    %540 = math.rsqrt %539 : vector<16x1xf32>
    %541 = vector.broadcast %540 : vector<16x1xf32> to vector<16x64xf32>
    %542 = arith.mulf %537, %541 : vector<16x64xf32>
    %543 = vector.broadcast %520 : vector<1x64xf32> to vector<16x64xf32>
    %544 = arith.mulf %542, %543 : vector<16x64xf32>
    %545 = vector.broadcast %522 : vector<1x64xf32> to vector<16x64xf32>
    %546 = arith.addf %544, %545 : vector<16x64xf32>
    %547 = arith.truncf %546 : vector<16x64xf32> to vector<16x64xbf16>
    %c1_379 = arith.constant 1 : index
    %c0_380 = arith.constant 0 : index
    %c0_381 = arith.constant 0 : index
    %548 = vector.load %arg16[%c1_379, %c0_380, %c0_381] : memref<2x64x128xbf16, #tpu.memory_space<vmem>>, vector<1x64x128xbf16>
    %549 = vector.shape_cast %548 : vector<1x64x128xbf16> to vector<64x128xbf16>
    %cst_382 = arith.constant dense<0.000000e+00> : vector<16x128xf32>
    %550 = tpu.matmul %547, %549, %cst_382 {dimension_numbers = #tpu.dot_dimension_numbers<[1], [0], [0], [1], [0, 0, 1, 1], [], []>} : vector<16x64xbf16>, vector<64x128xbf16>, vector<16x128xf32> -> vector<16x128xf32>
    %c1_383 = arith.constant 1 : index
    %c0_384 = arith.constant 0 : index
    %c0_385 = arith.constant 0 : index
    %551 = vector.load %arg17[%c1_383, %c0_384, %c0_385] : memref<2x1x128xf32, #tpu.memory_space<vmem>>, vector<1x1x128xf32>
    %552 = vector.shape_cast %551 : vector<1x1x128xf32> to vector<1x128xf32>
    %553 = vector.broadcast %552 : vector<1x128xf32> to vector<16x128xf32>
    %554 = arith.addf %550, %553 : vector<16x128xf32>
    %555 = arith.mulf %554, %554 : vector<16x128xf32>
    %556 = arith.mulf %554, %555 : vector<16x128xf32>
    %cst_386 = arith.constant 4.471500e-02 : f32
    %557 = vector.broadcast %cst_386 : f32 to vector<16x128xf32>
    %558 = arith.mulf %557, %556 : vector<16x128xf32>
    %559 = arith.addf %554, %558 : vector<16x128xf32>
    %cst_387 = arith.constant 0.797884583 : f32
    %560 = vector.broadcast %cst_387 : f32 to vector<16x128xf32>
    %561 = arith.mulf %560, %559 : vector<16x128xf32>
    %562 = math.tanh %561 : vector<16x128xf32>
    %cst_388 = arith.constant 1.000000e+00 : f32
    %563 = vector.broadcast %cst_388 : f32 to vector<16x128xf32>
    %564 = arith.addf %563, %562 : vector<16x128xf32>
    %cst_389 = arith.constant 5.000000e-01 : f32
    %565 = vector.broadcast %cst_389 : f32 to vector<16x128xf32>
    %566 = arith.mulf %565, %564 : vector<16x128xf32>
    %567 = arith.mulf %554, %566 : vector<16x128xf32>
    %568 = arith.truncf %567 : vector<16x128xf32> to vector<16x128xbf16>
    %c1_390 = arith.constant 1 : index
    %c0_391 = arith.constant 0 : index
    %c0_392 = arith.constant 0 : index
    %569 = vector.load %arg18[%c1_390, %c0_391, %c0_392] : memref<2x128x64xbf16, #tpu.memory_space<vmem>>, vector<1x128x64xbf16>
    %570 = vector.shape_cast %569 : vector<1x128x64xbf16> to vector<128x64xbf16>
    %cst_393 = arith.constant dense<0.000000e+00> : vector<16x64xf32>
    %571 = tpu.matmul %568, %570, %cst_393 {dimension_numbers = #tpu.dot_dimension_numbers<[1], [0], [0], [1], [0, 0, 1, 1], [], []>} : vector<16x128xbf16>, vector<128x64xbf16>, vector<16x64xf32> -> vector<16x64xf32>
    %c1_394 = arith.constant 1 : index
    %c0_395 = arith.constant 0 : index
    %c0_396 = arith.constant 0 : index
    %572 = vector.load %arg19[%c1_394, %c0_395, %c0_396] : memref<2x1x64xf32, #tpu.memory_space<vmem>>, vector<1x1x64xf32>
    %573 = vector.shape_cast %572 : vector<1x1x64xf32> to vector<1x64xf32>
    %574 = vector.broadcast %573 : vector<1x64xf32> to vector<16x64xf32>
    %575 = arith.addf %571, %574 : vector<16x64xf32>
    %576 = arith.addf %575, %546 : vector<16x64xf32>
    %c1_397 = arith.constant 1 : index
    %c0_398 = arith.constant 0 : index
    %c0_399 = arith.constant 0 : index
    %577 = vector.load %arg20[%c1_397, %c0_398, %c0_399] : memref<2x1x64xf32, #tpu.memory_space<vmem>>, vector<1x1x64xf32>
    %578 = vector.shape_cast %577 : vector<1x1x64xf32> to vector<1x64xf32>
    %c1_400 = arith.constant 1 : index
    %c0_401 = arith.constant 0 : index
    %c0_402 = arith.constant 0 : index
    %579 = vector.load %arg21[%c1_400, %c0_401, %c0_402] : memref<2x1x64xf32, #tpu.memory_space<vmem>>, vector<1x1x64xf32>
    %580 = vector.shape_cast %579 : vector<1x1x64xf32> to vector<1x64xf32>
    %cst_403 = arith.constant dense<0.000000e+00> : vector<16xf32>
    %581 = vector.multi_reduction <add>, %576, %cst_403 [1] : vector<16x64xf32> to vector<16xf32>
    %582 = vector.shape_cast %581 : vector<16xf32> to vector<16x1xf32>
    %cst_404 = arith.constant 6.400000e+01 : f32
    %583 = vector.broadcast %cst_404 : f32 to vector<16x1xf32>
    %584 = arith.divf %582, %583 : vector<16x1xf32>
    %585 = arith.mulf %576, %576 : vector<16x64xf32>
    %cst_405 = arith.constant dense<0.000000e+00> : vector<16xf32>
    %586 = vector.multi_reduction <add>, %585, %cst_405 [1] : vector<16x64xf32> to vector<16xf32>
    %587 = vector.shape_cast %586 : vector<16xf32> to vector<16x1xf32>
    %cst_406 = arith.constant 6.400000e+01 : f32
    %588 = vector.broadcast %cst_406 : f32 to vector<16x1xf32>
    %589 = arith.divf %587, %588 : vector<16x1xf32>
    %590 = arith.mulf %584, %584 : vector<16x1xf32>
    %591 = arith.subf %589, %590 : vector<16x1xf32>
    %cst_407 = arith.constant 0.000000e+00 : f32
    %592 = vector.broadcast %cst_407 : f32 to vector<16x1xf32>
    %593 = arith.maximumf %591, %592 : vector<16x1xf32>
    %594 = vector.broadcast %584 : vector<16x1xf32> to vector<16x64xf32>
    %595 = arith.subf %576, %594 : vector<16x64xf32>
    %cst_408 = arith.constant 9.99999996E-13 : f32
    %596 = vector.broadcast %cst_408 : f32 to vector<16x1xf32>
    %597 = arith.addf %593, %596 : vector<16x1xf32>
    %598 = math.rsqrt %597 : vector<16x1xf32>
    %599 = vector.broadcast %598 : vector<16x1xf32> to vector<16x64xf32>
    %600 = arith.mulf %595, %599 : vector<16x64xf32>
    %601 = vector.broadcast %578 : vector<1x64xf32> to vector<16x64xf32>
    %602 = arith.mulf %600, %601 : vector<16x64xf32>
    %603 = vector.broadcast %580 : vector<1x64xf32> to vector<16x64xf32>
    %604 = arith.addf %602, %603 : vector<16x64xf32>
    %605 = vector.extract_strided_slice %604 {offsets = [0, 0], sizes = [1, 64], strides = [1, 1]} : vector<16x64xf32> to vector<1x64xf32>
    %606 = vector.extract_strided_slice %604 {offsets = [8, 0], sizes = [1, 64], strides = [1, 1]} : vector<16x64xf32> to vector<1x64xf32>
    %607 = tpu.concatenate %605, %606 in 0 : vector<1x64xf32>, vector<1x64xf32> -> vector<2x64xf32>
    %608 = arith.truncf %607 : vector<2x64xf32> to vector<2x64xbf16>
    %c0_409 = arith.constant 0 : index
    %c0_410 = arith.constant 0 : index
    %609 = vector.load %arg22[%c0_409, %c0_410] : memref<64x3xbf16, #tpu.memory_space<vmem>>, vector<64x3xbf16>
    %cst_411 = arith.constant dense<0.000000e+00> : vector<2x3xf32>
    %610 = tpu.matmul %608, %609, %cst_411 {dimension_numbers = #tpu.dot_dimension_numbers<[1], [0], [0], [1], [0, 0, 1, 1], [], []>} : vector<2x64xbf16>, vector<64x3xbf16>, vector<2x3xf32> -> vector<2x3xf32>
    %c0_412 = arith.constant 0 : index
    %c0_413 = arith.constant 0 : index
    %611 = vector.load %arg23[%c0_412, %c0_413] : memref<1x3xf32, #tpu.memory_space<vmem>>, vector<1x3xf32>
    %612 = vector.broadcast %611 : vector<1x3xf32> to vector<2x3xf32>
    %613 = arith.addf %610, %612 : vector<2x3xf32>
    %c0_414 = arith.constant 0 : index
    %c0_415 = arith.constant 0 : index
    %614 = vector.load %arg24[%c0_414, %c0_415] : memref<2x3xf32, #tpu.memory_space<vmem>>, vector<2x3xf32>
    tpu.vector_store %arg24[%c0_414, %c0_415], %613 {strides = array<i32>} : memref<2x3xf32, #tpu.memory_space<vmem>>, vector<2x3xf32>,
    return
  }
}

</mosaic_0001>

<bundles_post_ra>
// kernel: distilbert_model_forward.1
= control target key start
LH: loop header
LB: loop body
LE: loop exit
PB: predicated region body
PF: predicated region fallthrough
CT: control target
= control target key end

     0   :  { %s7215_s0 = inlined_call_operand.vmem [shape: s32[16,1], index: 0, kind: input, shape index: {}]   ;;  %s7216_s1 = inlined_call_operand.vmem [shape: f32[1,16], index: 1, kind: input, shape index: {}]   ;;  %s7217_s2 = inlined_call_operand.vmem [shape: bf16[128,64], index: 2, kind: input, shape index: {}]   ;;  %s7218_s3 = inlined_call_operand.vmem [shape: bf16[32,64], index: 3, kind: input, shape index: {}]   ;;  %s7219_s4 = inlined_call_operand.vmem [shape: f32[1,64], index: 4, kind: input, shape index: {}]   ;;  %s7220_s5 = inlined_call_operand.vmem [shape: f32[1,64], index: 5, kind: input, shape index: {}]   ;;  %s7221_s6 = inlined_call_operand.vmem [shape: bf16[2,4,64,16], index: 6, kind: input, shape index: {}]   ;;  %s7222_s7 = inlined_call_operand.vmem [shape: bf16[2,4,64,16], index: 7, kind: input, shape index: {}]   ;;  %s7223_s8 = inlined_call_operand.vmem [shape: bf16[2,4,64,16], index: 8, kind: input, shape index: {}]   ;;  %s7224_s9 = inlined_call_operand.vmem [shape: f32[2,4,1,16], index: 9, kind: input, shape index: {}]   ;;  %s7225_s10 = inlined_call_operand.vmem [shape: f32[2,4,1,16], index: 10, kind: input, shape index: {}]   ;;  %s7226_s11 = inlined_call_operand.vmem [shape: f32[2,4,1,16], index: 11, kind: input, shape index: {}]   ;;  %s7227_s12 = inlined_call_operand.vmem [shape: bf16[2,4,16,64], index: 12, kind: input, shape index: {}]   ;;  %s7228_s13 = inlined_call_operand.vmem [shape: f32[2,1,64], index: 13, kind: input, shape index: {}]   ;;  %s7229_s14 = inlined_call_operand.vmem [shape: f32[2,1,64], index: 14, kind: input, shape index: {}]   ;;  %s7230_s15 = inlined_call_operand.vmem [shape: f32[2,1,64], index: 15, kind: input, shape index: {}]   ;;  %s7231_s16 = inlined_call_operand.vmem [shape: bf16[2,64,128], index: 16, kind: input, shape index: {}]   ;;  %s7232_s17 = inlined_call_operand.vmem [shape: f32[2,1,128], index: 17, kind: input, shape index: {}]   ;;  %s7233_s18 = inlined_call_operand.vmem [shape: bf16[2,128,64], index: 18, kind: input, shape index: {}]   ;;  %s7234_s19 = inlined_call_operand.vmem [shape: f32[2,1,64], index: 19, kind: input, shape index: {}]   ;;  %s7235_s20 = inlined_call_operand.vmem [shape: f32[2,1,64], index: 20, kind: input, shape index: {}]   ;;  %s7236_s21 = inlined_call_operand.vmem [shape: f32[2,1,64], index: 21, kind: input, shape index: {}]   ;;  %s7237_s22 = inlined_call_operand.vmem [shape: bf16[64,3], index: 22, kind: input, shape index: {}]   ;;  %s7238_s23 = inlined_call_operand.vmem [shape: f32[1,3], index: 23, kind: input, shape index: {}]   ;;  %s7239_s24 = inlined_call_operand.hbm [shape: f32[2,3], index: 24, kind: output, shape index: {}]  }
   0x1   :  { %7246 = sst [smem:[#allocation5_spill]] %s7215_s0 }
   0x2   :  { %7247 = sst [smem:[#allocation6_spill]] %s7216_s1 }
   0x3   :  { %7248 = sst [smem:[#allocation7_spill]] %s7217_s2 }
   0x4   :  { %7249 = sst [smem:[#allocation8_spill]] %s7218_s3 }
   0x5   :  { %7250 = sst [smem:[#allocation9_spill]] %s7219_s4 }
   0x6   :  { %7251 = sst [smem:[#allocation10_spill]] %s7220_s5 }
   0x7   :  { %7252 = sst [smem:[#allocation11_spill]] %s7221_s6 }
   0x8   :  { %7253 = sst [smem:[#allocation12_spill]] %s7222_s7 }
   0x9   :  { %7254 = sst [smem:[#allocation13_spill]] %s7223_s8 }
   0xa   :  { %s7255_s27 = sld [smem:[#allocation6_spill]]  ;;  %v81_v1 = vlaneseq  ;;  %s7256_s2 = sld [smem:[#allocation5_spill]]  ;;  %v5975_v3 = vmov 0   ;;  %v5976_v9 = vmov 0.0   ;;  %vm5977_vm1 = vmmov 0  }
   0xb   :  { %5716 = vset.pattern.permute.xlu0 %v5975_v3  ;;  %s7257_s7 = sld [smem:[#allocation8_spill]]  ;;  %5170 = vmatprep.subr.bf16.mxu0 %v5976_v9  ;;  %s7258_s5 = sld [smem:[#allocation7_spill]]  ;;  %vm136_vm8 = vcmask 261120  }
   0xc   :  { %v6115_v5 = vand.u32 127, %v81_v1  ;;  %v111_v6 = vshrl.u32 %v81_v1, 7  ;;  %5198 = vmatprep.subr.bf16.mxu1 %v5976_v9  ;;  %5174 = vmatprep.mubr.msk.bf16.mxu0 %vm5977_vm1, %v5976_v9 }
   0xd   :  { %5206 = vmatprep.mubr.msk.bf16.mxu1 %vm5977_vm1, %v5976_v9 }
   0xe   :  { %v112_v11 = vadd.s32 8, %v111_v6  ;;  %v322_v12 = vshra.s32 %v111_v6, 3  ;;  %v324_v13 = vshra.s32 %v6115_v5, 3  ;;  %v332_v14 = vsub.s32 0, %v111_v6 }
   0xf   :  { %v113_v15 = vand.u32 7, %v111_v6 }
  0x10   :  { %v327_v0 = vld [vmem:[%s7255_s27] sm:$0x1]  ;;  %v80_v8 = vld [vmem:[%s7256_s2 + $0x8] sm:$0xff]  ;;  %v114_v16 = vand.u32 7, %v112_v11  ;;  %v323_v17 = vshra.s32 %v112_v11, 3  ;;  %vm325_vm2 = vcmp.eq.s32.totalorder %v322_v12, %v324_v13 }
  0x11   :  { %v79_v2 = vld [vmem:[%s7256_s2] sm:$0xff]  ;;  %vm328_vm0 = vcmp.gt.f32.partialorder %v327_v0, 0.5  ;;  %v5718_v10 = vld [vmem:[%s7257_s7 + $0x8] sm:$0xff]   ;;  %vm115_vm3 = vcmp.eq.s32.totalorder %v6115_v5, %v113_v15  ;;  %v5721_v26 = vld [vmem:[%s7258_s5 + $0x10] sm:$0xff]  }
  0x12   :  { %v5717_v4 = vld [vmem:[%s7257_s7] sm:$0xff]   ;;  %v329_v7 = vsel %vm328_vm0, 1, %v5975_v3  ;;  %84 = vperm.xlu0 %5716, %v79_v2   ;;  %vm326_vm4 = vcmp.eq.s32.totalorder %v323_v17, %v324_v13  ;;  %vm116_vm6 = vcmp.eq.s32.totalorder %v6115_v5, %v114_v16  ;;  %v117_v19 = vsel %vm115_vm3, 1.0, %v5976_v9  ;;  %v5720_v25 = vld [vmem:[%s7258_s5 + $0x8] sm:$0xff]   ;;  %v5722_v27 = vld [vmem:[%s7258_s5 + $0x18] sm:$0xff]  }
  0x13   :  { %5171 = vmatpush3.bf16.msra.mxu0 %v5717_v4  ;;  %v333_v18 = vrot.slane %v329_v7, %v332_v14  ;;  %v5719_v20 = vld [vmem:[%s7258_s5] sm:$0xff]   ;;  %v118_v22 = vsel %vm116_vm6, 1.0, %v5976_v9  ;;  %v5724_v29 = vld [vmem:[%s7258_s5 + $0x28] sm:$0xff]   ;;  %v5725_v30 = vld [vmem:[%s7258_s5 + $0x30] sm:$0xff]  }
  0x14   :  { %5172 = vmatprep.subr.bf16.mxu0 %v5976_v9  ;;  %v119_v24 = vpack.c.bf16 %v118_v22, %v117_v19  ;;  %v5723_v28 = vld [vmem:[%s7258_s5 + $0x20] sm:$0xff]   ;;  %v5726_v31 = vld [vmem:[%s7258_s5 + $0x38] sm:$0xff]  }
  0x15   :  { %vm334_vm5 = vcmp.eq.s32.totalorder %v333_v18, 1 }
  0x16   :  { %87 = vperm.xlu0 %5716, %v80_v8   ;;  %vm6138_vm7 = vmand %vm325_vm2, %vm334_vm5 }
  0x17   :  { %5173 = vmatpush3.bf16.msra.mxu0 %v5718_v10  ;;  %vm6143_vm9 = vmand %vm326_vm4, %vm334_vm5 }
  0x18   :  { %5178 = vmatprep.subr.bf16.mxu0 %v5976_v9 }
  0x1a   :  { %5175 = vmatmul.mubr.msk.bf16.vlgmr.msra.gmra.mrb[0].mxu0 %vm136_vm8, %v119_v24 }
  0x1b   :  { %5179 = vmatpush3.bf16.msra.mxu0 %v5719_v20  ;;  %5194 = vmatprep.mubr.msk.bf16.mxu0 %vm5977_vm1, %v5976_v9 }
  0x1c   :  { %5180 = vmatprep.subr.bf16.mxu0 %v5976_v9 }
  0x1f   :  { %5181 = vmatpush3.bf16.msra.mxu0 %v5720_v25 }
  0x20   :  { %5182 = vmatprep.subr.bf16.mxu0 %v5976_v9 }
  0x23   :  { %5183 = vmatpush3.bf16.msra.mxu0 %v5721_v26 }
  0x24   :  { %5184 = vmatprep.subr.bf16.mxu0 %v5976_v9 }
  0x27   :  { %5185 = vmatpush3.bf16.msra.mxu0 %v5722_v27 }
  0x28   :  { %5186 = vmatprep.subr.bf16.mxu0 %v5976_v9 }
  0x2b   :  { %5187 = vmatpush3.bf16.msra.mxu0 %v5723_v28 }
  0x2c   :  { %5188 = vmatprep.subr.bf16.mxu0 %v5976_v9 }
  0x2f   :  { %5189 = vmatpush3.bf16.msra.mxu0 %v5724_v29 }
  0x30   :  { %5190 = vmatprep.subr.bf16.mxu0 %v5976_v9 }
  0x33   :  { %5191 = vmatpush3.bf16.msra.mxu0 %v5725_v30 }
  0x34   :  { %5192 = vmatprep.subr.bf16.mxu0 %v5976_v9 }
  0x37   :  { %5193 = vmatpush3.bf16.msra.mxu0 %v5726_v31 }
  0x38   :  { %5234 = vmatprep.subr.bf16.mxu0 %v5976_v9 }
  0x39   :  { %29 = vsyncpa [#allocation3], 0  ;;  %v5978_v34 = vmov 1.0|1.0   ;;  %vm272_vm13 = vcmask 523264   ;;  %s7263_s27 = sld [smem:[#allocation11_spill]] }
  0x3a   :  { %s7264_s25 = sld [smem:[#allocation9_spill]]  ;;  %s7265_s1 = sld [smem:[#allocation10_spill]]  ;;  %vm585_vm14 = vcmask 130048   ;;  %vm4385_vm15 = vcmask 1040384   ;;  %vm4470_vm0 = vcmask 17408  }
  0x3b   :  { %s7266_s28 = sld [smem:[#allocation12_spill]]  ;;  %s7267_s8 = sld [smem:[#allocation13_spill]] }
  0x3f   :  { %v5727_v45 = vld [vmem:[%s7263_s27] sm:$0xff]   ;;  %v5728_v46 = vld [vmem:[%s7263_s27 + $0x8] sm:$0xff]   ;;  %v5729_v47 = vld [vmem:[%s7263_s27 + $0x10] sm:$0xff]  }
  0x40   :  { %5199 = vmatpush3.bf16.msra.mxu1 %v5727_v45  ;;  %v5730_v48 = vld [vmem:[%s7263_s27 + $0x18] sm:$0xff]   ;;  %v4499_v4 = vld [vmem:[%s7264_s25] ss:$0 sm:$0xff]  ;;  %v5740_v26 = vld [vmem:[%s7263_s27 + $0x28] sm:$0xff]  }
  0x41   :  { %5200 = vmatprep.subr.bf16.mxu1 %v5976_v9  ;;  %v4500_v10 = vld [vmem:[%s7265_s1] ss:$0 sm:$0xff]  ;;  %v5732_v16 = vld [vmem:[%s7266_s28 + $0x8] sm:$0xff]   ;;  %v5733_v17 = vld [vmem:[%s7266_s28 + $0x10] sm:$0xff]  }
  0x42   :  { %v5731_v14 = vld [vmem:[%s7266_s28] sm:$0xff]   ;;  %v5734_v18 = vld [vmem:[%s7266_s28 + $0x18] sm:$0xff]   ;;  %v5736_v20 = vld [vmem:[%s7267_s8 + $0x8] sm:$0xff]  }
  0x43   :  { %v5735_v19 = vld [vmem:[%s7267_s8] sm:$0xff]   ;;  %v5737_v22 = vld [vmem:[%s7267_s8 + $0x10] sm:$0xff]   ;;  %v5738_v24 = vld [vmem:[%s7267_s8 + $0x18] sm:$0xff]  }
  0x44   :  { %5201 = vmatpush3.bf16.msra.mxu1 %v5728_v46  ;;  %v5739_v25 = vld [vmem:[%s7263_s27 + $0x20] sm:$0xff]   ;;  %v5741_v27 = vld [vmem:[%s7263_s27 + $0x30] sm:$0xff]   ;;  %v5742_v28 = vld [vmem:[%s7263_s27 + $0x38] sm:$0xff]  }
  0x45   :  { %5202 = vmatprep.subr.bf16.mxu1 %v5976_v9  ;;  %v5743_v29 = vld [vmem:[%s7267_s8 + $0x20] sm:$0xff]   ;;  %v5744_v30 = vld [vmem:[%s7267_s8 + $0x28] sm:$0xff]   ;;  %v5745_v31 = vld [vmem:[%s7267_s8 + $0x30] sm:$0xff]  }
  0x48   :  { %5203 = vmatpush3.bf16.msra.mxu1 %v5729_v47 }
  0x49   :  { %5204 = vmatprep.subr.bf16.mxu1 %v5976_v9 }
  0x4c   :  { %5205 = vmatpush3.bf16.msra.mxu1 %v5730_v48 }
  0x4d   :  { %5210 = vmatprep.subr.bf16.mxu1 %v5976_v9 }
  0x91   :  { %v85_v32 = vpop.permute.xlu0 %84 }
  0x92   :  { %vm89_vm10 = vcmp.eq.s32.totalorder %v6115_v5, %v85_v32  ;;  %v5746_v32 = vld [vmem:[%s7267_s8 + $0x38] sm:$0xff]  }
  0x95   :  { %v88_v33 = vpop.permute.xlu0 %87 }
  0x96   :  { %vm90_vm11 = vcmp.eq.s32.totalorder %v6115_v5, %v88_v33  ;;  %v4501_v33 = vld [vmem:[%s7224_s9] ss:$0 sm:$0xff] }
  0x97   :  { %vm4497_vm12 = vmpackc.low %vm90_vm11, %vm89_vm10 }
  0x98   :  { %5195 = vmatmul.mubr.msk.bf16.vlgmr.msra.gmra.mrb[0].mxu0 %vm4497_vm12, %v5978_v34 }
  0x99   :  { %5236 = vmatprep.mubr.msk.bf16.mxu0 %vm5977_vm1, %v5976_v9 }
 0x16b   :  { %v263_v35 = vpop.f32.mrb[0].mxu0 }
 0x16c   :  { %v5196_v36 = vpop.f32.mrb[1].mxu0  ;;  %v273_v37 = vsel %vm272_vm13, %v263_v35, 0.0  ;;  %v282_v38 = vmul.f32 %v263_v35, %v263_v35 }
 0x16d   :  { %274 = vadd.xlane.f32.xlu1 %v273_v37  ;;  %v266_v39 = vpop.f32.mrb[2].mxu0 }
 0x16e   :  { %v5197_v40 = vpop.f32.mrb[3].mxu0  ;;  %v284_v41 = vsel %vm272_vm13, %v282_v38, 0.0  ;;  %v276_v42 = vsel %vm272_vm13, %v266_v39, 0.0  ;;  %v283_v43 = vmul.f32 %v266_v39, %v266_v39 }
 0x16f   :  { %285 = vadd.xlane.f32.xlu0 %v284_v41  ;;  %v4507_v41 = vld [vmem:[%s7225_s10] ss:$0 sm:$0xff] }
 0x170   :  { %v287_v44 = vsel %vm272_vm13, %v283_v43, 0.0 }
 0x171   :  { %277 = vadd.xlane.f32.xlu1 %v276_v42 }
 0x175   :  { %288 = vadd.xlane.f32.xlu1 %v287_v44 }
 0x1fa   :  { %v275_v49 = vpop.xlane.xlu1 %274 }
 0x1fb   :  { %v280_v50 = vmul.f32 0.015625, %v275_v49 }
 0x1fc   :  { %v286_v51 = vpop.xlane.xlu0 %285 }
 0x1fd   :  { %v292_v52 = vmul.f32 %v280_v50, %v280_v50  ;;  %v290_v53 = vmul.f32 0.015625, %v286_v51  ;;  %v298_v2 = vsub.f32 %v263_v35, %v280_v50  ;;  %v4513_v50 = vld [vmem:[%s7226_s11] ss:$0 sm:$0xff] }
 0x1fe   :  { %v278_v54 = vpop.xlane.xlu1 %277 }
 0x1ff   :  { %v294_v55 = vsub.f32 %v290_v53, %v292_v52  ;;  %v281_v56 = vmul.f32 0.015625, %v278_v54 }
 0x201   :  { %v296_v57 = vmax.f32 %v294_v55, 0.0  ;;  %v293_v60 = vmul.f32 %v281_v56, %v281_v56  ;;  %v299_v5 = vsub.f32 %v266_v39, %v281_v56 }
 0x202   :  { %v289_v58 = vpop.xlane.xlu1 %288 }
 0x203   :  { %v300_v59 = vadd.f32 1e-12, %v296_v57  ;;  %v291_v61 = vmul.f32 0.015625, %v289_v58  ;;  %v4530_v58 = vld [vmem:[%s7224_s9 + $0x1] ss:$0 sm:$0xff] }
 0x205   :  { %5859 = vrsqrt.f32 %v300_v59  ;;  %v295_v62 = vsub.f32 %v291_v61, %v293_v60 }
 0x207   :  { %v297_v63 = vmax.f32 %v295_v62, 0.0 }
 0x209   :  { %v301_v0 = vadd.f32 1e-12, %v297_v63 }
 0x20b   :  { %5861 = vrsqrt.f32 %v301_v0 }
 0x20f   :  { %v5860_v1 = vpop.eup %5859 }
 0x210   :  { %v304_v3 = vmul.f32 %v5860_v1, %v298_v2  ;;  %v4560_v2 = vld [vmem:[%s7226_s11 + $0x1] ss:$0 sm:$0xff] }
 0x212   :  { %v312_v7 = vmul.f32 %v4499_v4, %v304_v3 }
 0x214   :  { %v6208_v12 = vadd.f32 %v4500_v10, %v312_v7 }
 0x215   :  { %v5862_v6 = vpop.eup %5861 }
 0x216   :  { %v305_v8 = vmul.f32 %v5862_v6, %v299_v5 }
 0x218   :  { %v313_v11 = vmul.f32 %v4499_v4, %v305_v8 }
 0x21a   :  { %v6210_v13 = vadd.f32 %v4500_v10, %v313_v11  ;;  %v5979_v11 = vmov -1e+30  }
 0x21c   :  { %v6217_v15 = vpack.c.bf16 %v6210_v13, %v6208_v12 }
 0x21e   :  { %5207 = vmatmul.mubr.msk.bf16.vlgmr.msra.gmra.mrb[0].mxu1 %vm272_vm13, %v6217_v15 }
 0x21f   :  { %5211 = vmatpush3.bf16.msra.mxu1 %v5731_v14  ;;  %5218 = vmatprep.mubr.msk.bf16.mxu1 %vm5977_vm1, %v5976_v9  ;;  %v6335_v14 = vsel %vm6138_vm7, 0.0, %v5979_v11 }
 0x220   :  { %5212 = vmatprep.subr.bf16.mxu1 %v5976_v9 }
 0x223   :  { %5213 = vmatpush3.bf16.msra.mxu1 %v5732_v16 }
 0x224   :  { %5214 = vmatprep.subr.bf16.mxu1 %v5976_v9 }
 0x227   :  { %5215 = vmatpush3.bf16.msra.mxu1 %v5733_v17 }
 0x228   :  { %5216 = vmatprep.subr.bf16.mxu1 %v5976_v9 }
 0x22b   :  { %5217 = vmatpush3.bf16.msra.mxu1 %v5734_v18 }
 0x22c   :  { %5222 = vmatprep.subr.bf16.mxu1 %v5976_v9 }
 0x22e   :  { %5219 = vmatmul.mubr.msk.bf16.vlgmr.msra.gmra.mrb[4].mxu1 %vm272_vm13, %v6217_v15 }
 0x22f   :  { %5223 = vmatpush3.bf16.msra.mxu1 %v5735_v19  ;;  %5230 = vmatprep.mubr.msk.bf16.mxu1 %vm5977_vm1, %v5976_v9  ;;  %v6339_v19 = vsel %vm6143_vm9, 0.0, %v5979_v11 }
 0x230   :  { %5224 = vmatprep.subr.bf16.mxu1 %v5976_v9 }
 0x233   :  { %5225 = vmatpush3.bf16.msra.mxu1 %v5736_v20 }
 0x234   :  { %5226 = vmatprep.subr.bf16.mxu1 %v5976_v9 }
 0x237   :  { %5227 = vmatpush3.bf16.msra.mxu1 %v5737_v22 }
 0x238   :  { %5228 = vmatprep.subr.bf16.mxu1 %v5976_v9 }
 0x23b   :  { %5229 = vmatpush3.bf16.msra.mxu1 %v5738_v24 }
 0x23c   :  { %5246 = vmatprep.subr.bf16.mxu1 %v5976_v9 }
 0x23e   :  { %5231 = vmatmul.mubr.msk.bf16.vlgmr.msra.gmra.mrb[8].mxu1 %vm272_vm13, %v6217_v15 }
 0x23f   :  { %5247 = vmatpush3.bf16.msra.mxu1 %v5739_v25  ;;  %5254 = vmatprep.mubr.msk.bf16.mxu1 %vm5977_vm1, %v5976_v9 }
 0x240   :  { %5248 = vmatprep.subr.bf16.mxu1 %v5976_v9 }
 0x243   :  { %5249 = vmatpush3.bf16.msra.mxu1 %v5740_v26 }
 0x244   :  { %5250 = vmatprep.subr.bf16.mxu1 %v5976_v9 }
 0x247   :  { %5251 = vmatpush3.bf16.msra.mxu1 %v5741_v27 }
 0x248   :  { %5252 = vmatprep.subr.bf16.mxu1 %v5976_v9 }
 0x24b   :  { %5253 = vmatpush3.bf16.msra.mxu1 %v5742_v28 }
 0x24c   :  { %5270 = vmatprep.subr.bf16.mxu1 %v5976_v9 }
 0x24e   :  { %5255 = vmatmul.mubr.msk.bf16.vlgmr.msra.gmra.mrb[12].mxu1 %vm272_vm13, %v6217_v15 }
 0x24f   :  { %5271 = vmatpush3.bf16.msra.mxu1 %v5743_v29  ;;  %5278 = vmatprep.mubr.msk.bf16.mxu1 %vm5977_vm1, %v5976_v9 }
 0x250   :  { %5272 = vmatprep.subr.bf16.mxu1 %v5976_v9 }
 0x253   :  { %5273 = vmatpush3.bf16.msra.mxu1 %v5744_v30 }
 0x254   :  { %5274 = vmatprep.subr.bf16.mxu1 %v5976_v9 }
 0x257   :  { %5275 = vmatpush3.bf16.msra.mxu1 %v5745_v31 }
 0x258   :  { %5276 = vmatprep.subr.bf16.mxu1 %v5976_v9 }
 0x25b   :  { %5277 = vmatpush3.bf16.msra.mxu1 %v5746_v32 }
 0x25c   :  { %5294 = vmatprep.subr.bf16.mxu1 %v5976_v9 }
 0x25e   :  { %5279 = vmatmul.mubr.msk.bf16.vlgmr.msra.gmra.mrb[16].mxu1 %vm272_vm13, %v6217_v15 }
 0x25f   :  { %5296 = vmatprep.mubr.msk.bf16.mxu1 %vm5977_vm1, %v5976_v9 }
 0x2f1   :  { %v416_v34 = vpop.f32.mrb[0].mxu1 }
 0x2f2   :  { %v5208_v35 = vpop.f32.mrb[1].mxu1  ;;  %v417_v37 = vadd.f32 %v4501_v33, %v416_v34 }
 0x2f3   :  { %v419_v36 = vpop.f32.mrb[2].mxu1 }
 0x2f4   :  { %v420_v38 = vadd.f32 %v4501_v33, %v419_v36  ;;  %v5209_v39 = vpop.f32.mrb[3].mxu1 }
 0x2f6   :  { %v583_v40 = vpack.c.bf16 %v420_v38, %v417_v37 }
 0x301   :  { %v496_v42 = vpop.f32.mrb[4].mxu1 }
 0x302   :  { %v5220_v43 = vpop.f32.mrb[5].mxu1  ;;  %v497_v45 = vadd.f32 %v4507_v41, %v496_v42 }
 0x303   :  { %v499_v44 = vpop.f32.mrb[6].mxu1  ;;  %v5747_v43 = vld [vmem:[%s7266_s28 + $0x20] sm:$0xff]  }
 0x304   :  { %v500_v46 = vadd.f32 %v4507_v41, %v499_v44  ;;  %v5221_v47 = vpop.f32.mrb[7].mxu1 }
 0x305   :  { %v5750_v47 = vld [vmem:[%s7266_s28 + $0x38] sm:$0xff]  }
 0x306   :  { %v584_v48 = vpack.c.bf16 %v500_v46, %v497_v45  ;;  %v5748_v45 = vld [vmem:[%s7266_s28 + $0x28] sm:$0xff]   ;;  %v5749_v46 = vld [vmem:[%s7266_s28 + $0x30] sm:$0xff]  }
 0x308   :  { %v590_v49 = vsel %vm585_vm14, %v584_v48, 0 }
 0x309   :  { %5235 = vmatpush3.bf16.xpose.msra.mxu0 %v590_v49 }
 0x30a   :  { %5240 = vmatprep.subr.bf16.mxu0 %v5976_v9 }
 0x310   :  { %5237 = vmatmul.mubr.msk.bf16.vlgmr.msra.gmra.mrb[4].mxu0 %vm585_vm14, %v583_v40 }
 0x311   :  { %v576_v51 = vpop.f32.mrb[8].mxu1  ;;  %5242 = vmatprep.mubr.msk.bf16.mxu0 %vm5977_vm1, %v5976_v9 }
 0x312   :  { %v5232_v52 = vpop.f32.mrb[9].mxu1  ;;  %v577_v54 = vadd.f32 %v4513_v50, %v576_v51 }
 0x313   :  { %v579_v53 = vpop.f32.mrb[10].mxu1 }
 0x314   :  { %v580_v55 = vadd.f32 %v4513_v50, %v579_v53  ;;  %v5233_v56 = vpop.f32.mrb[11].mxu1  ;;  %v4545_v53 = vld [vmem:[%s7225_s10 + $0x1] ss:$0 sm:$0xff] }
 0x316   :  { %v660_v57 = vpack.c.bf16 %v580_v55, %v577_v54 }
 0x318   :  { %5241 = vmatpush3.bf16.msra.mxu0 %v660_v57 }
 0x319   :  { %5258 = vmatprep.subr.bf16.mxu0 %v5976_v9 }
 0x321   :  { %v783_v59 = vpop.f32.mrb[12].mxu1 }
 0x322   :  { %v5256_v60 = vpop.f32.mrb[13].mxu1  ;;  %v6318_v62 = vadd.f32 %v4530_v58, %v783_v59 }
 0x323   :  { %v786_v61 = vpop.f32.mrb[14].mxu1 }
 0x324   :  { %v6320_v63 = vadd.f32 %v4530_v58, %v786_v61  ;;  %v5257_v0 = vpop.f32.mrb[15].mxu1 }
 0x326   :  { %v954_v1 = vpack.c.bf16 %v6320_v63, %v6318_v62 }
 0x331   :  { %v947_v3 = vpop.f32.mrb[16].mxu1 }
 0x332   :  { %v5280_v4 = vpop.f32.mrb[17].mxu1  ;;  %v6327_v6 = vadd.f32 %v4560_v2, %v947_v3 }
 0x333   :  { %v950_v5 = vpop.f32.mrb[18].mxu1 }
 0x334   :  { %v6329_v7 = vadd.f32 %v4560_v2, %v950_v5  ;;  %v5281_v8 = vpop.f32.mrb[19].mxu1 }
 0x336   :  { %v1030_v10 = vpack.c.bf16 %v6329_v7, %v6327_v6 }
 0x3e3   :  { %v626_v16 = vpop.f32.mrb[4].mxu0 }
 0x3e4   :  { %v633_v17 = vmul.f32 0.25, %v626_v16  ;;  %v5238_v18 = vpop.f32.mrb[5].mxu0 }
 0x3e5   :  { %v629_v20 = vpop.f32.mrb[6].mxu0 }
 0x3e6   :  { %v634_v22 = vmul.f32 0.25, %v629_v20  ;;  %v5239_v24 = vpop.f32.mrb[7].mxu0  ;;  %v635_v25 = vadd.f32 %v633_v17, %v6335_v14 }
 0x3e8   :  { %v637_v26 = vsel %vm585_vm14, %v635_v25, -inf  ;;  %v636_v27 = vadd.f32 %v634_v22, %v6339_v19 }
 0x3e9   :  { %638 = vmax.xlane.f32.xlu1 %v637_v26  ;;  %v5756_v26 = vld [vmem:[%s7227_s12 + $0x8] sm:$0xff]  }
 0x3ea   :  { %v640_v21 = vsel %vm585_vm14, %v636_v27, -inf  ;;  %5295 = vmatpush3.bf16.msra.mxu1 %v5756_v26 }
 0x3eb   :  { %5306 = vmatprep.subr.bf16.mxu1 %v5976_v9 }
 0x3ed   :  { %641 = vmax.xlane.f32.xlu1 %v640_v21 }
 0x476   :  { %v639_v28 = vpop.xlane.xlu1 %638 }
 0x477   :  { %v643_v29 = vsub.f32 %v635_v25, %v639_v28 }
 0x479   :  { %v645_v30 = vmul.f32 1.442695, %v643_v29 }
 0x47a   :  { %v642_v31 = vpop.xlane.xlu1 %641 }
 0x47b   :  { %5863 = vpow2.f32 %v645_v30  ;;  %v644_v23 = vsub.f32 %v636_v27, %v642_v31 }
 0x47d   :  { %v647_v32 = vmul.f32 1.442695, %v644_v23  ;;  %v5751_v23 = vld [vmem:[%s7227_s12] sm:$0xff]  }
 0x47f   :  { %5865 = vpow2.f32 %v647_v32 }
 0x485   :  { %v5864_v33 = vpop.eup %5863 }
 0x486   :  { %v649_v34 = vsel %vm585_vm14, %v5864_v33, 0.0 }
 0x487   :  { %650 = vadd.xlane.f32.xlu1 %v649_v34  ;;  %v5753_v34 = vld [vmem:[%s7266_s28 + $0x48] sm:$0xff]  }
 0x489   :  { %v5866_v35 = vpop.eup %5865 }
 0x48a   :  { %v652_v36 = vsel %vm585_vm14, %v5866_v35, 0.0 }
 0x48b   :  { %653 = vadd.xlane.f32.xlu1 %v652_v36  ;;  %v5755_v36 = vld [vmem:[%s7266_s28 + $0x58] sm:$0xff]  }
 0x514   :  { %v651_v37 = vpop.xlane.xlu1 %650 }
 0x515   :  { %5867 = vrcp.f32 %v651_v37 }
 0x518   :  { %v654_v38 = vpop.xlane.xlu1 %653 }
 0x519   :  { %5869 = vrcp.f32 %v654_v38 }
 0x51f   :  { %v5868_v39 = vpop.eup %5867 }
 0x520   :  { %v657_v41 = vmul.f32 %v5868_v39, %v5864_v33  ;;  %v5752_v33 = vld [vmem:[%s7266_s28 + $0x40] sm:$0xff]  }
 0x523   :  { %v5870_v40 = vpop.eup %5869 }
 0x524   :  { %v658_v42 = vmul.f32 %v5870_v40, %v5866_v35  ;;  %v5754_v35 = vld [vmem:[%s7266_s28 + $0x50] sm:$0xff]   ;;  %v5757_v40 = vld [vmem:[%s7263_s27 + $0x40] sm:$0xff]  }
 0x526   :  { %v659_v44 = vpack.c.bf16 %v658_v42, %v657_v41 }
 0x528   :  { %5243 = vmatmul.mubr.msk.bf16.vlgmr.msra.gmra.mrb[8].mxu0 %vm585_vm14, %v659_v44 }
 0x529   :  { %5259 = vmatpush3.bf16.msra.mxu0 %v5747_v43  ;;  %5266 = vmatprep.mubr.msk.bf16.mxu0 %vm5977_vm1, %v5976_v9  ;;  %v5758_v43 = vld [vmem:[%s7263_s27 + $0x48] sm:$0xff]  }
 0x52a   :  { %5260 = vmatprep.subr.bf16.mxu0 %v5976_v9 }
 0x52d   :  { %5261 = vmatpush3.bf16.msra.mxu0 %v5748_v45 }
 0x52e   :  { %5262 = vmatprep.subr.bf16.mxu0 %v5976_v9 }
 0x531   :  { %5263 = vmatpush3.bf16.msra.mxu0 %v5749_v46 }
 0x532   :  { %5264 = vmatprep.subr.bf16.mxu0 %v5976_v9 }
 0x535   :  { %5265 = vmatpush3.bf16.msra.mxu0 %v5750_v47  ;;  %v5759_v47 = vld [vmem:[%s7263_s27 + $0x50] sm:$0xff]  }
 0x536   :  { %5282 = vmatprep.subr.bf16.mxu0 %v5976_v9 }
 0x538   :  { %5267 = vmatmul.mubr.msk.bf16.vlgmr.msra.gmra.mrb[12].mxu0 %vm272_vm13, %v6217_v15 }
 0x539   :  { %5284 = vmatprep.mubr.msk.bf16.mxu0 %vm5977_vm1, %v5976_v9 }
 0x5fb   :  { %v6370_v48 = vpop.f32.mrb[8].mxu0 }
 0x5fc   :  { %v5244_v49 = vpop.f32.mrb[9].mxu0 }
 0x5fd   :  { %v6372_v50 = vpop.f32.mrb[10].mxu0  ;;  %v5760_v49 = vld [vmem:[%s7263_s27 + $0x58] sm:$0xff]  }
 0x5fe   :  { %v705_v51 = vpack.c.bf16 %v6372_v50, %v6370_v48  ;;  %v5245_v52 = vpop.f32.mrb[11].mxu0  ;;  %v5761_v50 = vld [vmem:[%s7267_s8 + $0x40] sm:$0xff]  }
 0x5ff   :  { %v4598_v52 = vld [vmem:[%s7225_s10 + $0x2] ss:$0 sm:$0xff] }
 0x60b   :  { %v865_v54 = vpop.f32.mrb[12].mxu0 }
 0x60c   :  { %v5268_v55 = vpop.f32.mrb[13].mxu0  ;;  %v866_v57 = vadd.f32 %v4545_v53, %v865_v54 }
 0x60d   :  { %v868_v56 = vpop.f32.mrb[14].mxu0 }
 0x60e   :  { %v869_v58 = vadd.f32 %v4545_v53, %v868_v56  ;;  %v5269_v59 = vpop.f32.mrb[15].mxu0  ;;  %v5763_v56 = vld [vmem:[%s7267_s8 + $0x50] sm:$0xff]  }
 0x610   :  { %v955_v60 = vpack.c.bf16 %v869_v58, %v866_v57 }
 0x612   :  { %v960_v61 = vsel %vm585_vm14, %v955_v60, 0 }
 0x613   :  { %5283 = vmatpush3.bf16.xpose.msra.mxu0 %v960_v61  ;;  %v5764_v61 = vld [vmem:[%s7267_s8 + $0x58] sm:$0xff]  }
 0x614   :  { %5288 = vmatprep.subr.bf16.mxu0 %v5976_v9 }
 0x61a   :  { %5285 = vmatmul.mubr.msk.bf16.vlgmr.msra.gmra.mrb[16].mxu0 %vm585_vm14, %v954_v1 }
 0x61b   :  { %5289 = vmatpush3.bf16.msra.mxu0 %v1030_v10  ;;  %5290 = vmatprep.mubr.msk.bf16.mxu0 %vm5977_vm1, %v5976_v9 }
 0x61c   :  { %5300 = vmatprep.subr.bf16.mxu0 %v5976_v9 }
 0x6ed   :  { %v996_v0 = vpop.f32.mrb[16].mxu0 }
 0x6ee   :  { %v1003_v2 = vmul.f32 0.25, %v996_v0  ;;  %v5286_v3 = vpop.f32.mrb[17].mxu0 }
 0x6ef   :  { %v999_v4 = vpop.f32.mrb[18].mxu0 }
 0x6f0   :  { %v1004_v5 = vmul.f32 0.25, %v999_v4  ;;  %v5287_v8 = vpop.f32.mrb[19].mxu0  ;;  %v1005_v11 = vadd.f32 %v1003_v2, %v6335_v14 }
 0x6f2   :  { %v1007_v62 = vsel %vm585_vm14, %v1005_v11, -inf  ;;  %v1006_v63 = vadd.f32 %v1004_v5, %v6339_v19 }
 0x6f3   :  { %1008 = vmax.xlane.f32.xlu1 %v1007_v62  ;;  %v4583_v62 = vld [vmem:[%s7224_s9 + $0x2] ss:$0 sm:$0xff] }
 0x6f4   :  { %v1010_v1 = vsel %vm585_vm14, %v1006_v63, -inf }
 0x6f7   :  { %1011 = vmax.xlane.f32.xlu1 %v1010_v1 }
 0x780   :  { %v1009_v6 = vpop.xlane.xlu1 %1008 }
 0x781   :  { %v1013_v7 = vsub.f32 %v1005_v11, %v1009_v6 }
 0x783   :  { %v1015_v10 = vmul.f32 1.442695, %v1013_v7 }
 0x784   :  { %v1012_v16 = vpop.xlane.xlu1 %1011 }
 0x785   :  { %5871 = vpow2.f32 %v1015_v10  ;;  %v1014_v17 = vsub.f32 %v1006_v63, %v1012_v16 }
 0x787   :  { %v1017_v18 = vmul.f32 1.442695, %v1014_v17 }
 0x789   :  { %5873 = vpow2.f32 %v1017_v18  ;;  %v4613_v18 = vld [vmem:[%s7226_s11 + $0x2] ss:$0 sm:$0xff] }
 0x78f   :  { %v5872_v20 = vpop.eup %5871 }
 0x790   :  { %v1019_v22 = vsel %vm585_vm14, %v5872_v20, 0.0 }
 0x791   :  { %1020 = vadd.xlane.f32.xlu1 %v1019_v22 }
 0x793   :  { %v5874_v24 = vpop.eup %5873 }
 0x794   :  { %v1022_v25 = vsel %vm585_vm14, %v5874_v24, 0.0 }
 0x795   :  { %1023 = vadd.xlane.f32.xlu0 %v1022_v25 }
 0x81e   :  { %v1021_v27 = vpop.xlane.xlu1 %1020 }
 0x81f   :  { %5875 = vrcp.f32 %v1021_v27 }
 0x822   :  { %v1024_v21 = vpop.xlane.xlu0 %1023 }
 0x823   :  { %5877 = vrcp.f32 %v1024_v21 }
 0x829   :  { %v5876_v28 = vpop.eup %5875 }
 0x82a   :  { %v1027_v30 = vmul.f32 %v5876_v28, %v5872_v20 }
 0x82d   :  { %v5878_v29 = vpop.eup %5877 }
 0x82e   :  { %v1028_v31 = vmul.f32 %v5878_v29, %v5874_v24 }
 0x830   :  { %v1029_v32 = vpack.c.bf16 %v1028_v31, %v1027_v30 }
 0x832   :  { %5291 = vmatmul.mubr.msk.bf16.vlgmr.msra.gmra.mrb[20].mxu0 %vm585_vm14, %v1029_v32 }
 0x833   :  { %5301 = vmatpush3.bf16.msra.mxu0 %v5751_v23  ;;  %5302 = vmatprep.mubr.msk.bf16.mxu0 %vm5977_vm1, %v5976_v9 }
 0x834   :  { %5318 = vmatprep.subr.bf16.mxu0 %v5976_v9 }
 0x83a   :  { %5303 = vmatmul.mubr.msk.bf16.vlgmr.msra.gmra.mrb[24].mxu0 %vm585_vm14, %v705_v51  ;;  %v5762_v51 = vld [vmem:[%s7267_s8 + $0x48] sm:$0xff]  }
 0x83b   :  { %5319 = vmatpush3.bf16.msra.mxu0 %v5752_v33  ;;  %5326 = vmatprep.mubr.msk.bf16.mxu0 %vm5977_vm1, %v5976_v9 }
 0x83c   :  { %5320 = vmatprep.subr.bf16.mxu0 %v5976_v9 }
 0x83f   :  { %5321 = vmatpush3.bf16.msra.mxu0 %v5753_v34 }
 0x840   :  { %5322 = vmatprep.subr.bf16.mxu0 %v5976_v9 }
 0x843   :  { %5323 = vmatpush3.bf16.msra.mxu0 %v5754_v35 }
 0x844   :  { %5324 = vmatprep.subr.bf16.mxu0 %v5976_v9 }
 0x847   :  { %5325 = vmatpush3.bf16.msra.mxu0 %v5755_v36 }
 0x848   :  { %5342 = vmatprep.subr.bf16.mxu0 %v5976_v9 }
 0x84a   :  { %5327 = vmatmul.mubr.msk.bf16.vlgmr.msra.gmra.mrb[28].mxu0 %vm272_vm13, %v6217_v15 }
 0x84b   :  { %5344 = vmatprep.mubr.msk.bf16.mxu0 %vm5977_vm1, %v5976_v9 }
 0x905   :  { %v1068_v37 = vpop.f32.mrb[20].mxu0 }
 0x906   :  { %v5292_v38 = vpop.f32.mrb[21].mxu0 }
 0x907   :  { %v1071_v39 = vpop.f32.mrb[22].mxu0 }
 0x908   :  { %v1075_v41 = vpack.c.bf16 %v1071_v39, %v1068_v37  ;;  %v5293_v42 = vpop.f32.mrb[23].mxu0 }
 0x90a   :  { %5297 = vmatmul.mubr.msk.bf16.vlgmr.msra.gmra.mrb[20].mxu1 %vm585_vm14, %v1075_v41 }
 0x90b   :  { %5307 = vmatpush3.bf16.msra.mxu1 %v5757_v40  ;;  %5314 = vmatprep.mubr.msk.bf16.mxu1 %vm5977_vm1, %v5976_v9 }
 0x90c   :  { %5308 = vmatprep.subr.bf16.mxu1 %v5976_v9 }
 0x90d   :  { %v1172_v44 = vpop.f32.mrb[24].mxu0 }
 0x90e   :  { %v5304_v45 = vpop.f32.mrb[25].mxu0 }
 0x90f   :  { %5309 = vmatpush3.bf16.msra.mxu1 %v5758_v43  ;;  %v1175_v46 = vpop.f32.mrb[26].mxu0 }
 0x910   :  { %v5305_v48 = vpop.f32.mrb[27].mxu0  ;;  %5310 = vmatprep.subr.bf16.mxu1 %v5976_v9 }
 0x913   :  { %5311 = vmatpush3.bf16.msra.mxu1 %v5759_v47  ;;  %v5773_v47 = vld [vmem:[%s7227_s12 + $0x10] sm:$0xff]  }
 0x914   :  { %5312 = vmatprep.subr.bf16.mxu1 %v5976_v9 }
 0x917   :  { %5313 = vmatpush3.bf16.msra.mxu1 %v5760_v49 }
 0x918   :  { %5330 = vmatprep.subr.bf16.mxu1 %v5976_v9 }
 0x91a   :  { %5315 = vmatmul.mubr.msk.bf16.vlgmr.msra.gmra.mrb[24].mxu1 %vm272_vm13, %v6217_v15 }
 0x91b   :  { %5331 = vmatpush3.bf16.msra.mxu1 %v5761_v50  ;;  %5338 = vmatprep.mubr.msk.bf16.mxu1 %vm5977_vm1, %v5976_v9 }
 0x91c   :  { %5332 = vmatprep.subr.bf16.mxu1 %v5976_v9 }
 0x91d   :  { %v1336_v53 = vpop.f32.mrb[28].mxu0 }
 0x91e   :  { %v5328_v54 = vpop.f32.mrb[29].mxu0  ;;  %v1337_v57 = vadd.f32 %v4598_v52, %v1336_v53 }
 0x91f   :  { %v1339_v55 = vpop.f32.mrb[30].mxu0  ;;  %5333 = vmatpush3.bf16.msra.mxu1 %v5762_v51  ;;  %v5765_v54 = vld [vmem:[%s7263_s27 + $0x60] sm:$0xff]  }
 0x920   :  { %v1340_v58 = vadd.f32 %v4598_v52, %v1339_v55  ;;  %v5329_v59 = vpop.f32.mrb[31].mxu0  ;;  %5334 = vmatprep.subr.bf16.mxu1 %v5976_v9 }
 0x921   :  { %v5769_v59 = vld [vmem:[%s7267_s8 + $0x60] sm:$0xff]  }
 0x922   :  { %v1426_v60 = vpack.c.bf16 %v1340_v58, %v1337_v57  ;;  %v5767_v57 = vld [vmem:[%s7263_s27 + $0x70] sm:$0xff]   ;;  %v5768_v58 = vld [vmem:[%s7263_s27 + $0x78] sm:$0xff]  }
 0x923   :  { %5335 = vmatpush3.bf16.msra.mxu1 %v5763_v56  ;;  %v5766_v56 = vld [vmem:[%s7263_s27 + $0x68] sm:$0xff]  }
 0x924   :  { %v1431_v0 = vsel %vm585_vm14, %v1426_v60, 0  ;;  %5336 = vmatprep.subr.bf16.mxu1 %v5976_v9  ;;  %v5770_v60 = vld [vmem:[%s7267_s8 + $0x68] sm:$0xff]  }
 0x925   :  { %5343 = vmatpush3.bf16.xpose.msra.mxu0 %v1431_v0  ;;  %v5772_v0 = vld [vmem:[%s7267_s8 + $0x78] sm:$0xff]  }
 0x926   :  { %5348 = vmatprep.subr.bf16.mxu0 %v5976_v9 }
 0x927   :  { %5337 = vmatpush3.bf16.msra.mxu1 %v5764_v61  ;;  %v5771_v61 = vld [vmem:[%s7267_s8 + $0x70] sm:$0xff]  }
 0x928   :  { %5354 = vmatprep.subr.bf16.mxu1 %v5976_v9 }
 0x92a   :  { %5339 = vmatmul.mubr.msk.bf16.vlgmr.msra.gmra.mrb[28].mxu1 %vm272_vm13, %v6217_v15 }
 0x92b   :  { %5356 = vmatprep.mubr.msk.bf16.mxu1 %vm5977_vm1, %v5976_v9  ;;  %5355 = vmatpush3.bf16.msra.mxu1 %v5773_v47 }
 0x92c   :  { %5372 = vmatprep.subr.bf16.mxu1 %v5976_v9 }
 0x9dd   :  { %v1122_v2 = vpop.f32.mrb[20].mxu1 }
 0x9de   :  { %v6479_v3 = vadd.f32 %v1172_v44, %v1122_v2  ;;  %v5298_v4 = vpop.f32.mrb[21].mxu1 }
 0x9df   :  { %v1125_v5 = vpop.f32.mrb[22].mxu1 }
 0x9e0   :  { %v6481_v8 = vadd.f32 %v1175_v46, %v1125_v5  ;;  %v5299_v11 = vpop.f32.mrb[23].mxu1 }
 0x9e1   :  { %v5774_v11 = vld [vmem:[%s7266_s28 + $0x60] sm:$0xff]  }
 0x9ed   :  { %v1254_v63 = vpop.f32.mrb[24].mxu1 }
 0x9ee   :  { %v5316_v1 = vpop.f32.mrb[25].mxu1  ;;  %v1255_v7 = vadd.f32 %v4583_v62, %v1254_v63 }
 0x9ef   :  { %v1257_v6 = vpop.f32.mrb[26].mxu1  ;;  %v5775_v1 = vld [vmem:[%s7266_s28 + $0x68] sm:$0xff]  }
 0x9f0   :  { %v1258_v10 = vadd.f32 %v4583_v62, %v1257_v6  ;;  %v5317_v16 = vpop.f32.mrb[27].mxu1  ;;  %v5776_v6 = vld [vmem:[%s7266_s28 + $0x70] sm:$0xff]  }
 0x9f2   :  { %v1425_v17 = vpack.c.bf16 %v1258_v10, %v1255_v7  ;;  %v5777_v7 = vld [vmem:[%s7266_s28 + $0x78] sm:$0xff]   ;;  %v4634_v10 = vld [vmem:[%s7224_s9 + $0x3] ss:$0 sm:$0xff] }
 0x9f4   :  { %5345 = vmatmul.mubr.msk.bf16.vlgmr.msra.gmra.mrb[32].mxu0 %vm585_vm14, %v1425_v17 }
 0x9f5   :  { %5350 = vmatprep.mubr.msk.bf16.mxu0 %vm5977_vm1, %v5976_v9 }
 0x9fd   :  { %v1418_v20 = vpop.f32.mrb[28].mxu1 }
 0x9fe   :  { %v5340_v22 = vpop.f32.mrb[29].mxu1  ;;  %v1419_v25 = vadd.f32 %v4613_v18, %v1418_v20 }
 0x9ff   :  { %v1421_v24 = vpop.f32.mrb[30].mxu1 }
 0xa00   :  { %v1422_v26 = vadd.f32 %v4613_v18, %v1421_v24  ;;  %v5341_v27 = vpop.f32.mrb[31].mxu1 }
 0xa02   :  { %v1501_v21 = vpack.c.bf16 %v1422_v26, %v1419_v25  ;;  %v4664_v26 = vld [vmem:[%s7226_s11 + $0x3] ss:$0 sm:$0xff] }
 0xa04   :  { %5349 = vmatpush3.bf16.msra.mxu0 %v1501_v21 }
 0xa05   :  { %5360 = vmatprep.subr.bf16.mxu0 %v5976_v9 }
 0xac7   :  { %v1467_v28 = vpop.f32.mrb[32].mxu0 }
 0xac8   :  { %v1474_v29 = vmul.f32 0.25, %v1467_v28  ;;  %v5346_v30 = vpop.f32.mrb[33].mxu0 }
 0xac9   :  { %v1470_v31 = vpop.f32.mrb[34].mxu0 }
 0xaca   :  { %v1475_v23 = vmul.f32 0.25, %v1470_v31  ;;  %v5347_v32 = vpop.f32.mrb[35].mxu0  ;;  %v1476_v33 = vadd.f32 %v1474_v29, %v6335_v14 }
 0xacc   :  { %v1478_v34 = vsel %vm585_vm14, %v1476_v33, -inf  ;;  %v1477_v35 = vadd.f32 %v1475_v23, %v6339_v19 }
 0xacd   :  { %1479 = vmax.xlane.f32.xlu1 %v1478_v34 }
 0xace   :  { %v1481_v36 = vsel %vm585_vm14, %v1477_v35, -inf }
 0xacf   :  { %1482 = vmax.xlane.f32.xlu0 %v1481_v36 }
 0xb5a   :  { %v1480_v37 = vpop.xlane.xlu1 %1479 }
 0xb5b   :  { %v1484_v38 = vsub.f32 %v1476_v33, %v1480_v37  ;;  %v4649_v37 = vld [vmem:[%s7225_s10 + $0x3] ss:$0 sm:$0xff] }
 0xb5c   :  { %v1483_v39 = vpop.xlane.xlu0 %1482 }
 0xb5d   :  { %v1486_v40 = vmul.f32 1.442695, %v1484_v38  ;;  %v1485_v41 = vsub.f32 %v1477_v35, %v1483_v39 }
 0xb5f   :  { %5879 = vpow2.f32 %v1486_v40  ;;  %v1488_v42 = vmul.f32 1.442695, %v1485_v41 }
 0xb61   :  { %5881 = vpow2.f32 %v1488_v42 }
 0xb69   :  { %v5880_v43 = vpop.eup %5879 }
 0xb6a   :  { %v1490_v44 = vsel %vm585_vm14, %v5880_v43, 0.0 }
 0xb6b   :  { %v5882_v45 = vpop.eup %5881  ;;  %1491 = vadd.xlane.f32.xlu1 %v1490_v44 }
 0xb6c   :  { %v1493_v46 = vsel %vm585_vm14, %v5882_v45, 0.0 }
 0xb6d   :  { %1494 = vadd.xlane.f32.xlu0 %v1493_v46 }
 0xbf8   :  { %v1492_v48 = vpop.xlane.xlu1 %1491 }
 0xbf9   :  { %5883 = vrcp.f32 %v1492_v48 }
 0xbfa   :  { %v1495_v49 = vpop.xlane.xlu0 %1494 }
 0xbfb   :  { %5885 = vrcp.f32 %v1495_v49 }
 0xc03   :  { %v5884_v50 = vpop.eup %5883 }
 0xc04   :  { %v1498_v52 = vmul.f32 %v5884_v50, %v5880_v43 }
 0xc05   :  { %v5886_v51 = vpop.eup %5885 }
 0xc06   :  { %v1499_v53 = vmul.f32 %v5886_v51, %v5882_v45 }
 0xc08   :  { %v1500_v55 = vpack.c.bf16 %v1499_v53, %v1498_v52 }
 0xc0a   :  { %5351 = vmatmul.mubr.msk.bf16.vlgmr.msra.gmra.mrb[36].mxu0 %vm585_vm14, %v1500_v55 }
 0xc0b   :  { %5361 = vmatpush3.bf16.msra.mxu0 %v5765_v54  ;;  %5368 = vmatprep.mubr.msk.bf16.mxu0 %vm5977_vm1, %v5976_v9 }
 0xc0c   :  { %5362 = vmatprep.subr.bf16.mxu0 %v5976_v9 }
 0xc0f   :  { %5363 = vmatpush3.bf16.msra.mxu0 %v5766_v56 }
 0xc10   :  { %5364 = vmatprep.subr.bf16.mxu0 %v5976_v9 }
 0xc13   :  { %5365 = vmatpush3.bf16.msra.mxu0 %v5767_v57 }
 0xc14   :  { %5366 = vmatprep.subr.bf16.mxu0 %v5976_v9 }
 0xc17   :  { %5367 = vmatpush3.bf16.msra.mxu0 %v5768_v58 }
 0xc18   :  { %5384 = vmatprep.subr.bf16.mxu0 %v5976_v9 }
 0xc1a   :  { %5369 = vmatmul.mubr.msk.bf16.vlgmr.msra.gmra.mrb[40].mxu0 %vm272_vm13, %v6217_v15 }
 0xc1b   :  { %5385 = vmatpush3.bf16.msra.mxu0 %v5769_v59  ;;  %5392 = vmatprep.mubr.msk.bf16.mxu0 %vm5977_vm1, %v5976_v9 }
 0xc1c   :  { %5386 = vmatprep.subr.bf16.mxu0 %v5976_v9 }
 0xc1f   :  { %5387 = vmatpush3.bf16.msra.mxu0 %v5770_v60 }
 0xc20   :  { %5388 = vmatprep.subr.bf16.mxu0 %v5976_v9 }
 0xc23   :  { %5389 = vmatpush3.bf16.msra.mxu0 %v5771_v61 }
 0xc24   :  { %5390 = vmatprep.subr.bf16.mxu0 %v5976_v9 }
 0xc27   :  { %5391 = vmatpush3.bf16.msra.mxu0 %v5772_v0 }
 0xc28   :  { %5408 = vmatprep.subr.bf16.mxu0 %v5976_v9 }
 0xc2a   :  { %5393 = vmatmul.mubr.msk.bf16.vlgmr.msra.gmra.mrb[44].mxu0 %vm272_vm13, %v6217_v15 }
 0xc2b   :  { %5410 = vmatprep.mubr.msk.bf16.mxu0 %vm5977_vm1, %v5976_v9 }
 0xcdd   :  { %v1539_v2 = vpop.f32.mrb[36].mxu0 }
 0xcde   :  { %v5352_v4 = vpop.f32.mrb[37].mxu0 }
 0xcdf   :  { %v1542_v5 = vpop.f32.mrb[38].mxu0  ;;  %v5778_v4 = vld [vmem:[%s7227_s12 + $0x18] sm:$0xff]  }
 0xce0   :  { %v1546_v62 = vpack.c.bf16 %v1542_v5, %v1539_v2  ;;  %v5353_v63 = vpop.f32.mrb[39].mxu0  ;;  %5409 = vmatpush3.bf16.msra.mxu0 %v5778_v4 }
 0xce1   :  { %5426 = vmatprep.subr.bf16.mxu0 %v5976_v9 }
 0xce2   :  { %5357 = vmatmul.mubr.msk.bf16.vlgmr.msra.gmra.mrb[32].mxu1 %vm585_vm14, %v1546_v62 }
 0xce3   :  { %5373 = vmatpush3.bf16.msra.mxu1 %v5774_v11  ;;  %5380 = vmatprep.mubr.msk.bf16.mxu1 %vm5977_vm1, %v5976_v9 }
 0xce4   :  { %5374 = vmatprep.subr.bf16.mxu1 %v5976_v9 }
 0xce7   :  { %5375 = vmatpush3.bf16.msra.mxu1 %v5775_v1 }
 0xce8   :  { %5376 = vmatprep.subr.bf16.mxu1 %v5976_v9 }
 0xceb   :  { %5377 = vmatpush3.bf16.msra.mxu1 %v5776_v6 }
 0xcec   :  { %5378 = vmatprep.subr.bf16.mxu1 %v5976_v9 }
 0xced   :  { %v1677_v16 = vpop.f32.mrb[40].mxu0 }
 0xcee   :  { %v5370_v17 = vpop.f32.mrb[41].mxu0  ;;  %v1678_v20 = vadd.f32 %v4634_v10, %v1677_v16 }
 0xcef   :  { %v1680_v18 = vpop.f32.mrb[42].mxu0  ;;  %5379 = vmatpush3.bf16.msra.mxu1 %v5777_v7 }
 0xcf0   :  { %v1681_v22 = vadd.f32 %v4634_v10, %v1680_v18  ;;  %v5371_v24 = vpop.f32.mrb[43].mxu0  ;;  %5396 = vmatprep.subr.bf16.mxu1 %v5976_v9 }
 0xcf1   :  { %v4676_v24 = vld [vmem:[%s7228_s13] ss:$0 sm:$0xff] }
 0xcf2   :  { %v1848_v25 = vpack.c.bf16 %v1681_v22, %v1678_v20  ;;  %5381 = vmatmul.mubr.msk.bf16.vlgmr.msra.gmra.mrb[36].mxu1 %vm272_vm13, %v6217_v15 }
 0xcf3   :  { %5398 = vmatprep.mubr.msk.bf16.mxu1 %vm5977_vm1, %v5976_v9 }
 0xcfd   :  { %v1841_v27 = vpop.f32.mrb[44].mxu0 }
 0xcfe   :  { %v5394_v21 = vpop.f32.mrb[45].mxu0  ;;  %v1842_v29 = vadd.f32 %v4664_v26, %v1841_v27 }
 0xcff   :  { %v1844_v28 = vpop.f32.mrb[46].mxu0 }
 0xd00   :  { %v1845_v30 = vadd.f32 %v4664_v26, %v1844_v28  ;;  %v5395_v31 = vpop.f32.mrb[47].mxu0 }
 0xd02   :  { %v1924_v23 = vpack.c.bf16 %v1845_v30, %v1842_v29 }
 0xdb5   :  { %v1593_v32 = vpop.f32.mrb[32].mxu1 }
 0xdb6   :  { %v6576_v33 = vadd.f32 %v1593_v32, %v6479_v3  ;;  %v5358_v34 = vpop.f32.mrb[33].mxu1 }
 0xdb7   :  { %v1596_v15 = vpop.f32.mrb[34].mxu1 }
 0xdb8   :  { %v6579_v35 = vadd.f32 %v1596_v15, %v6481_v8  ;;  %v5359_v36 = vpop.f32.mrb[35].mxu1 }
 0xdc5   :  { %v1759_v38 = vpop.f32.mrb[36].mxu1 }
 0xdc6   :  { %v5382_v39 = vpop.f32.mrb[37].mxu1  ;;  %v1760_v41 = vadd.f32 %v4649_v37, %v1759_v38  ;;  %v5782_v38 = vld [vmem:[%s7231_s16 + $0x18] sm:$0xff]  }
 0xdc7   :  { %v1762_v40 = vpop.f32.mrb[38].mxu1 }
 0xdc8   :  { %v1763_v42 = vadd.f32 %v4649_v37, %v1762_v40  ;;  %v5383_v43 = vpop.f32.mrb[39].mxu1 }
 0xdca   :  { %v1849_v44 = vpack.c.bf16 %v1763_v42, %v1760_v41 }
 0xdcc   :  { %v1854_v3 = vsel %vm585_vm14, %v1849_v44, 0 }
 0xdcd   :  { %5397 = vmatpush3.bf16.xpose.msra.mxu1 %v1854_v3 }
 0xdce   :  { %5402 = vmatprep.subr.bf16.mxu1 %v5976_v9 }
 0xdd4   :  { %5399 = vmatmul.mubr.msk.bf16.vlgmr.msra.gmra.mrb[40].mxu1 %vm585_vm14, %v1848_v25 }
 0xdd5   :  { %5403 = vmatpush3.bf16.msra.mxu1 %v1924_v23  ;;  %5404 = vmatprep.mubr.msk.bf16.mxu1 %vm5977_vm1, %v5976_v9 }
 0xdd6   :  { %5414 = vmatprep.subr.bf16.mxu1 %v5976_v9 }
 0xea7   :  { %v1890_v8 = vpop.f32.mrb[40].mxu1 }
 0xea8   :  { %v1897_v45 = vmul.f32 0.25, %v1890_v8  ;;  %v5400_v46 = vpop.f32.mrb[41].mxu1 }
 0xea9   :  { %v1893_v47 = vpop.f32.mrb[42].mxu1 }
 0xeaa   :  { %v1898_v48 = vmul.f32 0.25, %v1893_v47  ;;  %v5401_v49 = vpop.f32.mrb[43].mxu1  ;;  %v1899_v50 = vadd.f32 %v1897_v45, %v6335_v14 }
 0xeac   :  { %v1901_v51 = vsel %vm585_vm14, %v1899_v50, -inf  ;;  %v1900_v52 = vadd.f32 %v1898_v48, %v6339_v19 }
 0xead   :  { %1902 = vmax.xlane.f32.xlu1 %v1901_v51 }
 0xeae   :  { %v1904_v53 = vsel %vm585_vm14, %v1900_v52, -inf }
 0xeaf   :  { %1905 = vmax.xlane.f32.xlu0 %v1904_v53 }
 0xf3a   :  { %v1903_v54 = vpop.xlane.xlu1 %1902 }
 0xf3b   :  { %v1907_v55 = vsub.f32 %v1899_v50, %v1903_v54 }
 0xf3c   :  { %v1906_v56 = vpop.xlane.xlu0 %1905 }
 0xf3d   :  { %v1909_v57 = vmul.f32 1.442695, %v1907_v55  ;;  %v1908_v58 = vsub.f32 %v1900_v52, %v1906_v56  ;;  %v4677_v55 = vld [vmem:[%s7229_s14] ss:$0 sm:$0xff] }
 0xf3f   :  { %5887 = vpow2.f32 %v1909_v57  ;;  %v1911_v59 = vmul.f32 1.442695, %v1908_v58 }
 0xf41   :  { %5889 = vpow2.f32 %v1911_v59 }
 0xf49   :  { %v5888_v60 = vpop.eup %5887 }
 0xf4a   :  { %v1913_v61 = vsel %vm585_vm14, %v5888_v60, 0.0 }
 0xf4b   :  { %v5890_v0 = vpop.eup %5889  ;;  %1914 = vadd.xlane.f32.xlu1 %v1913_v61  ;;  %v4678_v61 = vld [vmem:[%s7230_s15] ss:$0 sm:$0xff] }
 0xf4c   :  { %v1916_v2 = vsel %vm585_vm14, %v5890_v0, 0.0 }
 0xf4d   :  { %1917 = vadd.xlane.f32.xlu0 %v1916_v2 }
 0xfd8   :  { %v1915_v5 = vpop.xlane.xlu1 %1914 }
 0xfd9   :  { %5891 = vrcp.f32 %v1915_v5 }
 0xfda   :  { %v1918_v11 = vpop.xlane.xlu0 %1917 }
 0xfdb   :  { %5893 = vrcp.f32 %v1918_v11  ;;  %v5783_v11 = vld [vmem:[%s7233_s18] sm:$0xff]  }
 0xfe3   :  { %v5892_v62 = vpop.eup %5891 }
 0xfe4   :  { %v1921_v1 = vmul.f32 %v5892_v62, %v5888_v60  ;;  %v5784_v62 = vld [vmem:[%s7233_s18 + $0x8] sm:$0xff]  }
 0xfe5   :  { %v5894_v63 = vpop.eup %5893 }
 0xfe6   :  { %v1922_v6 = vmul.f32 %v5894_v63, %v5890_v0  ;;  %v5785_v63 = vld [vmem:[%s7233_s18 + $0x10] sm:$0xff]  }
 0xfe8   :  { %v1923_v7 = vpack.c.bf16 %v1922_v6, %v1921_v1  ;;  %v5786_v1 = vld [vmem:[%s7233_s18 + $0x18] sm:$0xff]   ;;  %v5787_v6 = vld [vmem:[%s7233_s18 + $0x20] sm:$0xff]  }
 0xfea   :  { %5405 = vmatmul.mubr.msk.bf16.vlgmr.msra.gmra.mrb[44].mxu1 %vm585_vm14, %v1923_v7  ;;  %v5788_v7 = vld [vmem:[%s7233_s18 + $0x28] sm:$0xff]  }
 0xfeb   :  { %5422 = vmatprep.mubr.msk.bf16.mxu1 %vm5977_vm1, %v5976_v9 }
0x10bd   :  { %v1962_v10 = vpop.f32.mrb[44].mxu1 }
0x10be   :  { %v5406_v16 = vpop.f32.mrb[45].mxu1 }
0x10bf   :  { %v1965_v17 = vpop.f32.mrb[46].mxu1  ;;  %v5790_v16 = vld [vmem:[%s7233_s18 + $0x38] sm:$0xff]  }
0x10c0   :  { %v1969_v18 = vpack.c.bf16 %v1965_v17, %v1962_v10  ;;  %v5407_v20 = vpop.f32.mrb[47].mxu1  ;;  %v5789_v10 = vld [vmem:[%s7233_s18 + $0x30] sm:$0xff]   ;;  %v4679_v17 = vld [vmem:[%s7232_s17] ss:$0 sm:$0xff] }
0x10c2   :  { %5411 = vmatmul.mubr.msk.bf16.vlgmr.msra.gmra.mrb[48].mxu0 %vm585_vm14, %v1969_v18 }
0x10c3   :  { %5442 = vmatprep.mubr.msk.bf16.mxu0 %vm5977_vm1, %v5976_v9  ;;  %5427 = vmatpush3.bf16.msra.mxu0 %v5783_v11 }
0x10c4   :  { %5428 = vmatprep.subr.bf16.mxu0 %v5976_v9 }
0x10c7   :  { %5429 = vmatpush3.bf16.msra.mxu0 %v5784_v62 }
0x10c8   :  { %5430 = vmatprep.subr.bf16.mxu0 %v5976_v9 }
0x10cb   :  { %5431 = vmatpush3.bf16.msra.mxu0 %v5785_v63 }
0x10cc   :  { %5432 = vmatprep.subr.bf16.mxu0 %v5976_v9 }
0x10cf   :  { %5433 = vmatpush3.bf16.msra.mxu0 %v5786_v1 }
0x10d0   :  { %5434 = vmatprep.subr.bf16.mxu0 %v5976_v9 }
0x10d3   :  { %5435 = vmatpush3.bf16.msra.mxu0 %v5787_v6 }
0x10d4   :  { %5436 = vmatprep.subr.bf16.mxu0 %v5976_v9 }
0x10d7   :  { %5437 = vmatpush3.bf16.msra.mxu0 %v5788_v7 }
0x10d8   :  { %5438 = vmatprep.subr.bf16.mxu0 %v5976_v9 }
0x10db   :  { %5439 = vmatpush3.bf16.msra.mxu0 %v5789_v10 }
0x10dc   :  { %5440 = vmatprep.subr.bf16.mxu0 %v5976_v9 }
0x10df   :  { %5441 = vmatpush3.bf16.msra.mxu0 %v5790_v16 }
0x10e0   :  { %5470 = vmatprep.subr.bf16.mxu0 %v5976_v9 }
0x1195   :  { %v2016_v22 = vpop.f32.mrb[48].mxu0 }
0x1196   :  { %v2023_v25 = vadd.f32 %v2016_v22, %v6576_v33  ;;  %v5412_v26 = vpop.f32.mrb[49].mxu0 }
0x1197   :  { %v2019_v27 = vpop.f32.mrb[50].mxu0 }
0x1198   :  { %v2032_v21 = vadd.f32 %v4676_v24, %v2023_v25  ;;  %v2024_v28 = vadd.f32 %v2019_v27, %v6579_v35  ;;  %v5413_v29 = vpop.f32.mrb[51].mxu0  ;;  %v5781_v35 = vld [vmem:[%s7231_s16 + $0x10] sm:$0xff]  }
0x119a   :  { %v2034_v30 = vadd.f32 %v2032_v21, %v6208_v12  ;;  %v2033_v31 = vadd.f32 %v4676_v24, %v2024_v28  ;;  %v5779_v12 = vld [vmem:[%s7231_s16] sm:$0xff]  }
0x119b   :  { %5415 = vmatpush3.bf16.msra.mxu1 %v5779_v12 }
0x119c   :  { %v2035_v23 = vadd.f32 %v2033_v31, %v6210_v13  ;;  %v2038_v32 = vsel %vm272_vm13, %v2034_v30, 0.0  ;;  %v2046_v34 = vmul.f32 %v2034_v30, %v2034_v30  ;;  %5416 = vmatprep.subr.bf16.mxu1 %v5976_v9  ;;  %v5780_v13 = vld [vmem:[%s7231_s16 + $0x8] sm:$0xff]  }
0x119d   :  { %2039 = vadd.xlane.f32.xlu1 %v2038_v32 }
0x119e   :  { %v2041_v15 = vsel %vm272_vm13, %v2035_v23, 0.0  ;;  %v2047_v36 = vmul.f32 %v2035_v23, %v2035_v23  ;;  %v2048_v33 = vsel %vm272_vm13, %v2046_v34, 0.0 }
0x119f   :  { %2042 = vadd.xlane.f32.xlu0 %v2041_v15  ;;  %5417 = vmatpush3.bf16.msra.mxu1 %v5780_v13 }
0x11a0   :  { %v2051_v37 = vsel %vm272_vm13, %v2047_v36, 0.0  ;;  %5418 = vmatprep.subr.bf16.mxu1 %v5976_v9 }
0x11a1   :  { %2049 = vadd.xlane.f32.xlu1 %v2048_v33 }
0x11a3   :  { %2052 = vadd.xlane.f32.xlu0 %v2051_v37  ;;  %5419 = vmatpush3.bf16.msra.mxu1 %v5781_v35 }
0x11a4   :  { %5420 = vmatprep.subr.bf16.mxu1 %v5976_v9 }
0x11a7   :  { %5421 = vmatpush3.bf16.msra.mxu1 %v5782_v38 }
0x11a8   :  { %5446 = vmatprep.subr.bf16.mxu1 %v5976_v9 }
0x122a   :  { %v2040_v39 = vpop.xlane.xlu1 %2039 }
0x122b   :  { %v2044_v40 = vmul.f32 0.015625, %v2040_v39 }
0x122c   :  { %v2043_v41 = vpop.xlane.xlu0 %2042 }
0x122d   :  { %v2045_v42 = vmul.f32 0.015625, %v2043_v41  ;;  %v2056_v44 = vmul.f32 %v2044_v40, %v2044_v40  ;;  %v2062_v53 = vsub.f32 %v2034_v30, %v2044_v40  ;;  %v4685_v41 = vld [vmem:[%s7234_s19] ss:$0 sm:$0xff] }
0x122e   :  { %v2050_v43 = vpop.xlane.xlu1 %2049 }
0x122f   :  { %v2054_v3 = vmul.f32 0.015625, %v2050_v43  ;;  %v2057_v45 = vmul.f32 %v2045_v42, %v2045_v42  ;;  %v2063_v56 = vsub.f32 %v2035_v23, %v2045_v42 }
0x1230   :  { %v2053_v8 = vpop.xlane.xlu0 %2052 }
0x1231   :  { %v2058_v46 = vsub.f32 %v2054_v3, %v2056_v44  ;;  %v2055_v47 = vmul.f32 0.015625, %v2053_v8 }
0x1233   :  { %v2060_v48 = vmax.f32 %v2058_v46, 0.0  ;;  %v2059_v49 = vsub.f32 %v2055_v47, %v2057_v45 }
0x1235   :  { %v2064_v50 = vadd.f32 1e-12, %v2060_v48  ;;  %v2061_v51 = vmax.f32 %v2059_v49, 0.0 }
0x1237   :  { %5895 = vrsqrt.f32 %v2064_v50  ;;  %v2065_v52 = vadd.f32 1e-12, %v2061_v51 }
0x1239   :  { %5897 = vrsqrt.f32 %v2065_v52 }
0x1241   :  { %v5896_v54 = vpop.eup %5895 }
0x1242   :  { %v2068_v57 = vmul.f32 %v5896_v54, %v2062_v53  ;;  %v5791_v54 = vld [vmem:[%s7263_s27 + $0x80] sm:$0xff]  }
0x1243   :  { %v5898_v58 = vpop.eup %5897 }
0x1244   :  { %v2069_v59 = vmul.f32 %v5898_v58, %v2063_v56  ;;  %v2076_v60 = vmul.f32 %v4677_v55, %v2068_v57  ;;  %v5793_v56 = vld [vmem:[%s7263_s27 + $0x88] sm:$0xff]   ;;  %v5795_v58 = vld [vmem:[%s7263_s27 + $0x90] sm:$0xff]  }
0x1245   :  { %v5794_v57 = vld [vmem:[%s7267_s8 + $0x88] sm:$0xff]  }
0x1246   :  { %v2077_v0 = vmul.f32 %v4677_v55, %v2069_v59  ;;  %v6639_v2 = vadd.f32 %v4678_v61, %v2076_v60  ;;  %v5792_v55 = vld [vmem:[%s7267_s8 + $0x80] sm:$0xff]   ;;  %v5796_v59 = vld [vmem:[%s7267_s8 + $0x90] sm:$0xff]   ;;  %v5797_v60 = vld [vmem:[%s7263_s27 + $0x98] sm:$0xff]  }
0x1248   :  { %v6641_v4 = vadd.f32 %v4678_v61, %v2077_v0  ;;  %v5798_v61 = vld [vmem:[%s7267_s8 + $0x98] sm:$0xff]  }
0x124a   :  { %v2086_v5 = vpack.c.bf16 %v6641_v4, %v6639_v2 }
0x124c   :  { %5423 = vmatmul.mubr.msk.bf16.vlgmr.msra.gmra.mrb[48].mxu1 %vm272_vm13, %v2086_v5 }
0x124d   :  { %5454 = vmatprep.mubr.msk.bf16.mxu1 %vm5977_vm1, %v5976_v9  ;;  %5447 = vmatpush3.bf16.msra.mxu1 %v5791_v54 }
0x124e   :  { %5448 = vmatprep.subr.bf16.mxu1 %v5976_v9 }
0x1251   :  { %5449 = vmatpush3.bf16.msra.mxu1 %v5793_v56 }
0x1252   :  { %5450 = vmatprep.subr.bf16.mxu1 %v5976_v9 }
0x1255   :  { %5451 = vmatpush3.bf16.msra.mxu1 %v5795_v58 }
0x1256   :  { %5452 = vmatprep.subr.bf16.mxu1 %v5976_v9 }
0x1259   :  { %5453 = vmatpush3.bf16.msra.mxu1 %v5797_v60  ;;  %v5804_v60 = vld [vmem:[%s7263_s27 + $0xa8] sm:$0xff]  }
0x125a   :  { %5458 = vmatprep.subr.bf16.mxu1 %v5976_v9 }
0x131f   :  { %v2163_v18 = vpop.f32.mrb[48].mxu1 }
0x1320   :  { %v2164_v20 = vadd.f32 %v4679_v17, %v2163_v18  ;;  %v5424_v22 = vpop.f32.mrb[49].mxu1 }
0x1321   :  { %v2166_v24 = vpop.f32.mrb[50].mxu1 }
0x1322   :  { %v2170_v25 = vmul.f32 %v2164_v20, %v2164_v20  ;;  %v2167_v26 = vadd.f32 %v4679_v17, %v2166_v24  ;;  %v5425_v27 = vpop.f32.mrb[51].mxu1 }
0x1324   :  { %v2172_v21 = vmul.f32 %v2170_v25, %v2164_v20  ;;  %v2171_v28 = vmul.f32 %v2167_v26, %v2167_v26 }
0x1326   :  { %v2174_v29 = vmul.f32 0.044715, %v2172_v21  ;;  %v2173_v30 = vmul.f32 %v2171_v28, %v2167_v26 }
0x1328   :  { %v2176_v31 = vadd.f32 %v2174_v29, %v2164_v20  ;;  %v2175_v23 = vmul.f32 0.044715, %v2173_v30 }
0x132a   :  { %v2178_v32 = vmul.f32 0.7978846, %v2176_v31  ;;  %v2177_v34 = vadd.f32 %v2175_v23, %v2167_v26  ;;  %v4695_v31 = vld [vmem:[%s7236_s21] ss:$0 sm:$0xff] }
0x132c   :  { %5899 = vtanh.f32 %v2178_v32  ;;  %v2179_v15 = vmul.f32 0.7978846, %v2177_v34 }
0x132e   :  { %5901 = vtanh.f32 %v2179_v15  ;;  %v5799_v15 = vld [vmem:[%s7266_s28 + $0x80] sm:$0xff]  }
0x1336   :  { %v5900_v36 = vpop.eup %5899 }
0x1337   :  { %v2182_v33 = vadd.f32 1.0, %v5900_v36 }
0x1338   :  { %v5902_v37 = vpop.eup %5901 }
0x1339   :  { %v2184_v12 = vmul.f32 0.5, %v2182_v33  ;;  %v2183_v13 = vadd.f32 1.0, %v5902_v37  ;;  %v5800_v33 = vld [vmem:[%s7266_s28 + $0x88] sm:$0xff]   ;;  %v5801_v37 = vld [vmem:[%s7266_s28 + $0x90] sm:$0xff]  }
0x133b   :  { %v2185_v35 = vmul.f32 0.5, %v2183_v13  ;;  %v2186_v38 = vmul.f32 %v2184_v12, %v2164_v20  ;;  %v5802_v12 = vld [vmem:[%s7266_s28 + $0x98] sm:$0xff]   ;;  %v4705_v13 = vld [vmem:[%s7224_s9 + $0x4] ss:$0 sm:$0xff] }
0x133d   :  { %v2187_v39 = vmul.f32 %v2185_v35, %v2167_v26  ;;  %v4694_v26 = vld [vmem:[%s7235_s20] ss:$0 sm:$0xff] }
0x133f   :  { %v2188_v40 = vpack.c.bf16 %v2187_v39, %v2186_v38  ;;  %v4735_v38 = vld [vmem:[%s7226_s11 + $0x4] ss:$0 sm:$0xff] }
0x1341   :  { %5443 = vmatmul.mubr.bf16.vlgmr.msra.gmra.mrb[52].mxu0 %v2188_v40 }
0x1342   :  { %5478 = vmatprep.mubr.msk.bf16.mxu0 %vm5977_vm1, %v5976_v9  ;;  %5471 = vmatpush3.bf16.msra.mxu0 %v5792_v55 }
0x1343   :  { %5472 = vmatprep.subr.bf16.mxu0 %v5976_v9 }
0x1346   :  { %5473 = vmatpush3.bf16.msra.mxu0 %v5794_v57 }
0x1347   :  { %5474 = vmatprep.subr.bf16.mxu0 %v5976_v9 }
0x134a   :  { %5475 = vmatpush3.bf16.msra.mxu0 %v5796_v59  ;;  %v5803_v59 = vld [vmem:[%s7263_s27 + $0xa0] sm:$0xff]  }
0x134b   :  { %5476 = vmatprep.subr.bf16.mxu0 %v5976_v9 }
0x134e   :  { %5477 = vmatpush3.bf16.msra.mxu0 %v5798_v61  ;;  %v5805_v61 = vld [vmem:[%s7263_s27 + $0xb0] sm:$0xff]  }
0x134f   :  { %5488 = vmatprep.subr.bf16.mxu0 %v5976_v9 }
0x1414   :  { %v2294_v42 = vpop.f32.mrb[52].mxu0 }
0x1415   :  { %v2295_v43 = vadd.f32 %v4685_v41, %v2294_v42  ;;  %v5444_v44 = vpop.f32.mrb[53].mxu0 }
0x1416   :  { %v2297_v3 = vpop.f32.mrb[54].mxu0 }
0x1417   :  { %v2301_v8 = vadd.f32 %v2295_v43, %v6639_v2  ;;  %v2298_v45 = vadd.f32 %v4685_v41, %v2297_v3  ;;  %v5445_v46 = vpop.f32.mrb[55].mxu0 }
0x1419   :  { %v2302_v47 = vadd.f32 %v2298_v45, %v6641_v4  ;;  %v2305_v48 = vsel %vm272_vm13, %v2301_v8, 0.0  ;;  %v2313_v49 = vmul.f32 %v2301_v8, %v2301_v8 }
0x141a   :  { %2306 = vadd.xlane.f32.xlu1 %v2305_v48 }
0x141b   :  { %v2308_v50 = vsel %vm272_vm13, %v2302_v47, 0.0  ;;  %v2314_v51 = vmul.f32 %v2302_v47, %v2302_v47  ;;  %v2315_v52 = vsel %vm272_vm13, %v2313_v49, 0.0 }
0x141c   :  { %2309 = vadd.xlane.f32.xlu0 %v2308_v50  ;;  %v4720_v50 = vld [vmem:[%s7225_s10 + $0x4] ss:$0 sm:$0xff] }
0x141d   :  { %v2318_v53 = vsel %vm272_vm13, %v2314_v51, 0.0 }
0x141e   :  { %2316 = vadd.xlane.f32.xlu1 %v2315_v52 }
0x1420   :  { %2319 = vadd.xlane.f32.xlu0 %v2318_v53 }
0x14a7   :  { %v2307_v0 = vpop.xlane.xlu1 %2306 }
0x14a8   :  { %v2311_v2 = vmul.f32 0.015625, %v2307_v0  ;;  %v5806_v0 = vld [vmem:[%s7263_s27 + $0xb8] sm:$0xff]  }
0x14a9   :  { %v2310_v4 = vpop.xlane.xlu0 %2309 }
0x14aa   :  { %v2312_v5 = vmul.f32 0.015625, %v2310_v4  ;;  %v2323_v62 = vmul.f32 %v2311_v2, %v2311_v2  ;;  %v2329_v24 = vsub.f32 %v2301_v8, %v2311_v2  ;;  %v5807_v2 = vld [vmem:[%s7267_s8 + $0xa0] sm:$0xff]   ;;  %v5808_v4 = vld [vmem:[%s7267_s8 + $0xa8] sm:$0xff]  }
0x14ab   :  { %v2317_v11 = vpop.xlane.xlu1 %2316 }
0x14ac   :  { %v2321_v63 = vmul.f32 0.015625, %v2317_v11  ;;  %v2324_v6 = vmul.f32 %v2312_v5, %v2312_v5  ;;  %v2330_v27 = vsub.f32 %v2302_v47, %v2312_v5  ;;  %v5809_v5 = vld [vmem:[%s7267_s8 + $0xb0] sm:$0xff]   ;;  %v5810_v11 = vld [vmem:[%s7267_s8 + $0xb8] sm:$0xff]  }
0x14ad   :  { %v2320_v1 = vpop.xlane.xlu0 %2319 }
0x14ae   :  { %v2325_v7 = vsub.f32 %v2321_v63, %v2323_v62  ;;  %v2322_v10 = vmul.f32 0.015625, %v2320_v1 }
0x14b0   :  { %v2327_v16 = vmax.f32 %v2325_v7, 0.0  ;;  %v2326_v17 = vsub.f32 %v2322_v10, %v2324_v6 }
0x14b2   :  { %v2331_v18 = vadd.f32 1e-12, %v2327_v16  ;;  %v2328_v20 = vmax.f32 %v2326_v17, 0.0 }
0x14b4   :  { %5903 = vrsqrt.f32 %v2331_v18  ;;  %v2332_v22 = vadd.f32 1e-12, %v2328_v20 }
0x14b6   :  { %5905 = vrsqrt.f32 %v2332_v22  ;;  %v4754_v22 = vld [vmem:[%s7224_s9 + $0x5] ss:$0 sm:$0xff] }
0x14be   :  { %v5904_v25 = vpop.eup %5903 }
0x14bf   :  { %v2335_v21 = vmul.f32 %v5904_v25, %v2329_v24 }
0x14c0   :  { %v5906_v28 = vpop.eup %5905 }
0x14c1   :  { %v2343_v29 = vmul.f32 %v4694_v26, %v2335_v21  ;;  %v2336_v30 = vmul.f32 %v5906_v28, %v2330_v27 }
0x14c3   :  { %v2344_v23 = vmul.f32 %v4694_v26, %v2336_v30  ;;  %v6732_v32 = vadd.f32 %v4695_v31, %v2343_v29  ;;  %v4784_v30 = vld [vmem:[%s7226_s11 + $0x5] ss:$0 sm:$0xff] }
0x14c5   :  { %v6734_v34 = vadd.f32 %v4695_v31, %v2344_v23 }
0x14c7   :  { %v6741_v36 = vpack.c.bf16 %v6734_v34, %v6732_v32 }
0x14c9   :  { %5455 = vmatmul.mubr.msk.bf16.vlgmr.msra.gmra.mrb[52].mxu1 %vm272_vm13, %v6741_v36  ;;  %5479 = vmatmul.mubr.msk.bf16.vlgmr.msra.gmra.mrb[56].mxu0 %vm272_vm13, %v6741_v36 }
0x14ca   :  { %5459 = vmatpush3.bf16.msra.mxu1 %v5799_v15  ;;  %5466 = vmatprep.mubr.msk.bf16.mxu1 %vm5977_vm1, %v5976_v9 }
0x14cb   :  { %5460 = vmatprep.subr.bf16.mxu1 %v5976_v9  ;;  %5490 = vmatprep.mubr.msk.bf16.mxu0 %vm5977_vm1, %v5976_v9 }
0x14ce   :  { %5461 = vmatpush3.bf16.msra.mxu1 %v5800_v33 }
0x14cf   :  { %5462 = vmatprep.subr.bf16.mxu1 %v5976_v9 }
0x14d2   :  { %5463 = vmatpush3.bf16.msra.mxu1 %v5801_v37 }
0x14d3   :  { %5464 = vmatprep.subr.bf16.mxu1 %v5976_v9 }
0x14d6   :  { %5465 = vmatpush3.bf16.msra.mxu1 %v5802_v12 }
0x14d7   :  { %5482 = vmatprep.subr.bf16.mxu1 %v5976_v9 }
0x14d9   :  { %5467 = vmatmul.mubr.msk.bf16.vlgmr.msra.gmra.mrb[56].mxu1 %vm272_vm13, %v6741_v36 }
0x14da   :  { %5484 = vmatprep.mubr.msk.bf16.mxu1 %vm5977_vm1, %v5976_v9 }
0x159c   :  { %v2432_v35 = vpop.f32.mrb[52].mxu1  ;;  %v2596_v39 = vpop.f32.mrb[56].mxu0 }
0x159d   :  { %v5456_v40 = vpop.f32.mrb[53].mxu1  ;;  %v5480_v41 = vpop.f32.mrb[57].mxu0  ;;  %v2433_v44 = vadd.f32 %v4705_v13, %v2432_v35  ;;  %v2597_v3 = vadd.f32 %v4735_v38, %v2596_v39 }
0x159e   :  { %v2435_v42 = vpop.f32.mrb[54].mxu1  ;;  %v2599_v43 = vpop.f32.mrb[58].mxu0 }
0x159f   :  { %v2436_v8 = vadd.f32 %v4705_v13, %v2435_v42  ;;  %v2600_v45 = vadd.f32 %v4735_v38, %v2599_v43  ;;  %v5457_v46 = vpop.f32.mrb[55].mxu1  ;;  %v5481_v47 = vpop.f32.mrb[59].mxu0 }
0x15a1   :  { %v2603_v48 = vpack.c.bf16 %v2436_v8, %v2433_v44  ;;  %v2679_v49 = vpack.c.bf16 %v2600_v45, %v2597_v3 }
0x15a3   :  { %5489 = vmatpush3.bf16.msra.mxu0 %v2679_v49 }
0x15a4   :  { %5506 = vmatprep.subr.bf16.mxu0 %v5976_v9 }
0x15ac   :  { %v2514_v51 = vpop.f32.mrb[56].mxu1 }
0x15ad   :  { %v5468_v52 = vpop.f32.mrb[57].mxu1  ;;  %v2515_v54 = vadd.f32 %v4720_v50, %v2514_v51  ;;  %v5811_v51 = vld [vmem:[%s7266_s28 + $0xa0] sm:$0xff]  }
0x15ae   :  { %v2517_v53 = vpop.f32.mrb[58].mxu1 }
0x15af   :  { %v2518_v55 = vadd.f32 %v4720_v50, %v2517_v53  ;;  %v5469_v56 = vpop.f32.mrb[59].mxu1  ;;  %v5812_v53 = vld [vmem:[%s7266_s28 + $0xa8] sm:$0xff]  }
0x15b1   :  { %v2604_v57 = vpack.c.bf16 %v2518_v55, %v2515_v54  ;;  %v5813_v54 = vld [vmem:[%s7266_s28 + $0xb0] sm:$0xff]   ;;  %v5814_v55 = vld [vmem:[%s7266_s28 + $0xb8] sm:$0xff]  }
0x15b3   :  { %v2609_v58 = vsel %vm585_vm14, %v2604_v57, 0 }
0x15b4   :  { %5483 = vmatpush3.bf16.xpose.msra.mxu1 %v2609_v58 }
0x15b5   :  { %5494 = vmatprep.subr.bf16.mxu1 %v5976_v9 }
0x15bb   :  { %5485 = vmatmul.mubr.msk.bf16.vlgmr.msra.gmra.mrb[60].mxu1 %vm585_vm14, %v2603_v48 }
0x15bc   :  { %5495 = vmatpush3.bf16.msra.mxu1 %v5803_v59  ;;  %5502 = vmatprep.mubr.msk.bf16.mxu1 %vm5977_vm1, %v5976_v9 }
0x15bd   :  { %5496 = vmatprep.subr.bf16.mxu1 %v5976_v9 }
0x15c0   :  { %5497 = vmatpush3.bf16.msra.mxu1 %v5804_v60 }
0x15c1   :  { %5498 = vmatprep.subr.bf16.mxu1 %v5976_v9 }
0x15c4   :  { %5499 = vmatpush3.bf16.msra.mxu1 %v5805_v61  ;;  %v4769_v61 = vld [vmem:[%s7225_s10 + $0x5] ss:$0 sm:$0xff] }
0x15c5   :  { %5500 = vmatprep.subr.bf16.mxu1 %v5976_v9 }
0x15c8   :  { %5501 = vmatpush3.bf16.msra.mxu1 %v5806_v0 }
0x15c9   :  { %5518 = vmatprep.subr.bf16.mxu1 %v5976_v9 }
0x15cb   :  { %5503 = vmatmul.mubr.msk.bf16.vlgmr.msra.gmra.mrb[64].mxu1 %vm272_vm13, %v6741_v36 }
0x15cc   :  { %5519 = vmatpush3.bf16.msra.mxu1 %v5807_v2  ;;  %5526 = vmatprep.mubr.msk.bf16.mxu1 %vm5977_vm1, %v5976_v9 }
0x15cd   :  { %5520 = vmatprep.subr.bf16.mxu1 %v5976_v9 }
0x15d0   :  { %5521 = vmatpush3.bf16.msra.mxu1 %v5808_v4 }
0x15d1   :  { %5522 = vmatprep.subr.bf16.mxu1 %v5976_v9 }
0x15d4   :  { %5523 = vmatpush3.bf16.msra.mxu1 %v5809_v5 }
0x15d5   :  { %5524 = vmatprep.subr.bf16.mxu1 %v5976_v9 }
0x15d8   :  { %5525 = vmatpush3.bf16.msra.mxu1 %v5810_v11 }
0x15d9   :  { %5542 = vmatprep.subr.bf16.mxu1 %v5976_v9 }
0x15db   :  { %5527 = vmatmul.mubr.msk.bf16.vlgmr.msra.gmra.mrb[68].mxu1 %vm272_vm13, %v6741_v36 }
0x15dc   :  { %5544 = vmatprep.mubr.msk.bf16.mxu1 %vm5977_vm1, %v5976_v9 }
0x168e   :  { %v2645_v62 = vpop.f32.mrb[60].mxu1 }
0x168f   :  { %v2652_v63 = vmul.f32 0.25, %v2645_v62  ;;  %v5486_v1 = vpop.f32.mrb[61].mxu1 }
0x1690   :  { %v2648_v6 = vpop.f32.mrb[62].mxu1 }
0x1691   :  { %v2653_v7 = vmul.f32 0.25, %v2648_v6  ;;  %v5487_v10 = vpop.f32.mrb[63].mxu1  ;;  %v2654_v16 = vadd.f32 %v2652_v63, %v6335_v14 }
0x1693   :  { %v2656_v17 = vsel %vm585_vm14, %v2654_v16, -inf  ;;  %v2655_v18 = vadd.f32 %v2653_v7, %v6339_v19 }
0x1694   :  { %2657 = vmax.xlane.f32.xlu1 %v2656_v17 }
0x1695   :  { %v2659_v20 = vsel %vm585_vm14, %v2655_v18, -inf }
0x1696   :  { %2660 = vmax.xlane.f32.xlu0 %v2659_v20 }
0x169e   :  { %v2803_v24 = vpop.f32.mrb[64].mxu1 }
0x169f   :  { %v5504_v25 = vpop.f32.mrb[65].mxu1  ;;  %v6830_v27 = vadd.f32 %v4754_v22, %v2803_v24 }
0x16a0   :  { %v2806_v26 = vpop.f32.mrb[66].mxu1 }
0x16a1   :  { %v6832_v21 = vadd.f32 %v4754_v22, %v2806_v26  ;;  %v5505_v28 = vpop.f32.mrb[67].mxu1 }
0x16a3   :  { %v2974_v29 = vpack.c.bf16 %v6832_v21, %v6830_v27 }
0x16ae   :  { %v2967_v31 = vpop.f32.mrb[68].mxu1 }
0x16af   :  { %v5528_v23 = vpop.f32.mrb[69].mxu1  ;;  %v2968_v33 = vadd.f32 %v4784_v30, %v2967_v31 }
0x16b0   :  { %v2970_v15 = vpop.f32.mrb[70].mxu1 }
0x16b1   :  { %v2971_v37 = vadd.f32 %v4784_v30, %v2970_v15  ;;  %v5529_v12 = vpop.f32.mrb[71].mxu1 }
0x16b3   :  { %v3050_v13 = vpack.c.bf16 %v2971_v37, %v2968_v33  ;;  %v5820_v37 = vld [vmem:[%s7227_s12 + $0x28] sm:$0xff]  }
0x16b4   :  { %5543 = vmatpush3.bf16.msra.mxu1 %v5820_v37 }
0x16b5   :  { %5554 = vmatprep.subr.bf16.mxu1 %v5976_v9 }
0x1721   :  { %v2658_v35 = vpop.xlane.xlu1 %2657 }
0x1722   :  { %v2662_v38 = vsub.f32 %v2654_v16, %v2658_v35 }
0x1723   :  { %v2661_v39 = vpop.xlane.xlu0 %2660 }
0x1724   :  { %v2664_v40 = vmul.f32 1.442695, %v2662_v38  ;;  %v2663_v41 = vsub.f32 %v2655_v18, %v2661_v39 }
0x1726   :  { %5907 = vpow2.f32 %v2664_v40  ;;  %v2666_v42 = vmul.f32 1.442695, %v2663_v41  ;;  %v5815_v41 = vld [vmem:[%s7227_s12 + $0x20] sm:$0xff]  }
0x1728   :  { %5909 = vpow2.f32 %v2666_v42 }
0x1730   :  { %v5908_v43 = vpop.eup %5907 }
0x1731   :  { %v2668_v44 = vsel %vm585_vm14, %v5908_v43, 0.0 }
0x1732   :  { %v5910_v3 = vpop.eup %5909  ;;  %2669 = vadd.xlane.f32.xlu1 %v2668_v44  ;;  %v5817_v44 = vld [vmem:[%s7266_s28 + $0xc8] sm:$0xff]  }
0x1733   :  { %v2671_v8 = vsel %vm585_vm14, %v5910_v3, 0.0 }
0x1734   :  { %2672 = vadd.xlane.f32.xlu0 %v2671_v8  ;;  %v5819_v8 = vld [vmem:[%s7266_s28 + $0xd8] sm:$0xff]  }
0x17bf   :  { %v2670_v45 = vpop.xlane.xlu1 %2669 }
0x17c0   :  { %5911 = vrcp.f32 %v2670_v45 }
0x17c1   :  { %v2673_v46 = vpop.xlane.xlu0 %2672 }
0x17c2   :  { %5913 = vrcp.f32 %v2673_v46 }
0x17ca   :  { %v5912_v47 = vpop.eup %5911 }
0x17cb   :  { %v2676_v49 = vmul.f32 %v5912_v47, %v5908_v43  ;;  %v5816_v43 = vld [vmem:[%s7266_s28 + $0xc0] sm:$0xff]  }
0x17cc   :  { %v5914_v48 = vpop.eup %5913 }
0x17cd   :  { %v2677_v50 = vmul.f32 %v5914_v48, %v5910_v3  ;;  %v5818_v3 = vld [vmem:[%s7266_s28 + $0xd0] sm:$0xff]   ;;  %v5821_v48 = vld [vmem:[%s7263_s27 + $0xc0] sm:$0xff]  }
0x17cf   :  { %v2678_v52 = vpack.c.bf16 %v2677_v50, %v2676_v49 }
0x17d1   :  { %5491 = vmatmul.mubr.msk.bf16.vlgmr.msra.gmra.mrb[60].mxu0 %vm585_vm14, %v2678_v52 }
0x17d2   :  { %5507 = vmatpush3.bf16.msra.mxu0 %v5811_v51  ;;  %5514 = vmatprep.mubr.msk.bf16.mxu0 %vm5977_vm1, %v5976_v9  ;;  %v5822_v51 = vld [vmem:[%s7263_s27 + $0xc8] sm:$0xff]  }
0x17d3   :  { %5508 = vmatprep.subr.bf16.mxu0 %v5976_v9 }
0x17d6   :  { %5509 = vmatpush3.bf16.msra.mxu0 %v5812_v53 }
0x17d7   :  { %5510 = vmatprep.subr.bf16.mxu0 %v5976_v9 }
0x17da   :  { %5511 = vmatpush3.bf16.msra.mxu0 %v5813_v54 }
0x17db   :  { %5512 = vmatprep.subr.bf16.mxu0 %v5976_v9 }
0x17de   :  { %5513 = vmatpush3.bf16.msra.mxu0 %v5814_v55  ;;  %v5823_v55 = vld [vmem:[%s7263_s27 + $0xd0] sm:$0xff]  }
0x17df   :  { %5530 = vmatprep.subr.bf16.mxu0 %v5976_v9 }
0x17e1   :  { %5515 = vmatmul.mubr.msk.bf16.vlgmr.msra.gmra.mrb[64].mxu0 %vm272_vm13, %v6741_v36 }
0x17e2   :  { %5532 = vmatprep.mubr.msk.bf16.mxu0 %vm5977_vm1, %v5976_v9 }
0x18a4   :  { %v6864_v56 = vpop.f32.mrb[60].mxu0 }
0x18a5   :  { %v5492_v57 = vpop.f32.mrb[61].mxu0 }
0x18a6   :  { %v6866_v58 = vpop.f32.mrb[62].mxu0  ;;  %v5824_v57 = vld [vmem:[%s7263_s27 + $0xd8] sm:$0xff]  }
0x18a7   :  { %v2724_v59 = vpack.c.bf16 %v6866_v58, %v6864_v56  ;;  %v5493_v60 = vpop.f32.mrb[63].mxu0  ;;  %v5825_v58 = vld [vmem:[%s7267_s8 + $0xc0] sm:$0xff]  }
0x18a8   :  { %v4822_v60 = vld [vmem:[%s7225_s10 + $0x6] ss:$0 sm:$0xff] }
0x18b4   :  { %v2885_v0 = vpop.f32.mrb[64].mxu0 }
0x18b5   :  { %v5516_v2 = vpop.f32.mrb[65].mxu0  ;;  %v2886_v5 = vadd.f32 %v4769_v61, %v2885_v0 }
0x18b6   :  { %v2888_v4 = vpop.f32.mrb[66].mxu0 }
0x18b7   :  { %v2889_v11 = vadd.f32 %v4769_v61, %v2888_v4  ;;  %v5517_v62 = vpop.f32.mrb[67].mxu0  ;;  %v5827_v4 = vld [vmem:[%s7267_s8 + $0xd0] sm:$0xff]  }
0x18b9   :  { %v2975_v63 = vpack.c.bf16 %v2889_v11, %v2886_v5 }
0x18bb   :  { %v2980_v1 = vsel %vm585_vm14, %v2975_v63, 0 }
0x18bc   :  { %5531 = vmatpush3.bf16.xpose.msra.mxu0 %v2980_v1  ;;  %v5828_v1 = vld [vmem:[%s7267_s8 + $0xd8] sm:$0xff]  }
0x18bd   :  { %5536 = vmatprep.subr.bf16.mxu0 %v5976_v9 }
0x18c3   :  { %5533 = vmatmul.mubr.msk.bf16.vlgmr.msra.gmra.mrb[68].mxu0 %vm585_vm14, %v2974_v29 }
0x18c4   :  { %5537 = vmatpush3.bf16.msra.mxu0 %v3050_v13  ;;  %5538 = vmatprep.mubr.msk.bf16.mxu0 %vm5977_vm1, %v5976_v9 }
0x18c5   :  { %5548 = vmatprep.subr.bf16.mxu0 %v5976_v9 }
0x1996   :  { %v3016_v6 = vpop.f32.mrb[68].mxu0 }
0x1997   :  { %v3023_v7 = vmul.f32 0.25, %v3016_v6  ;;  %v5534_v10 = vpop.f32.mrb[69].mxu0 }
0x1998   :  { %v3019_v16 = vpop.f32.mrb[70].mxu0 }
0x1999   :  { %v3024_v17 = vmul.f32 0.25, %v3019_v16  ;;  %v5535_v18 = vpop.f32.mrb[71].mxu0  ;;  %v3025_v20 = vadd.f32 %v3023_v7, %v6335_v14 }
0x199b   :  { %v3027_v22 = vsel %vm585_vm14, %v3025_v20, -inf  ;;  %v3026_v24 = vadd.f32 %v3024_v17, %v6339_v19 }
0x199c   :  { %3028 = vmax.xlane.f32.xlu1 %v3027_v22  ;;  %v4807_v22 = vld [vmem:[%s7224_s9 + $0x6] ss:$0 sm:$0xff] }
0x199d   :  { %v3030_v25 = vsel %vm585_vm14, %v3026_v24, -inf }
0x199e   :  { %3031 = vmax.xlane.f32.xlu0 %v3030_v25 }
0x1a29   :  { %v3029_v26 = vpop.xlane.xlu1 %3028 }
0x1a2a   :  { %v3033_v27 = vsub.f32 %v3025_v20, %v3029_v26 }
0x1a2b   :  { %v3032_v21 = vpop.xlane.xlu0 %3031 }
0x1a2c   :  { %v3035_v28 = vmul.f32 1.442695, %v3033_v27  ;;  %v3034_v29 = vsub.f32 %v3026_v24, %v3032_v21 }
0x1a2e   :  { %5915 = vpow2.f32 %v3035_v28  ;;  %v3037_v30 = vmul.f32 1.442695, %v3034_v29 }
0x1a30   :  { %5917 = vpow2.f32 %v3037_v30  ;;  %v4837_v30 = vld [vmem:[%s7226_s11 + $0x6] ss:$0 sm:$0xff] }
0x1a38   :  { %v5916_v31 = vpop.eup %5915 }
0x1a39   :  { %v3039_v23 = vsel %vm585_vm14, %v5916_v31, 0.0 }
0x1a3a   :  { %v5918_v15 = vpop.eup %5917  ;;  %3040 = vadd.xlane.f32.xlu1 %v3039_v23 }
0x1a3b   :  { %v3042_v33 = vsel %vm585_vm14, %v5918_v15, 0.0 }
0x1a3c   :  { %3043 = vadd.xlane.f32.xlu0 %v3042_v33 }
0x1ac7   :  { %v3041_v12 = vpop.xlane.xlu1 %3040 }
0x1ac8   :  { %5919 = vrcp.f32 %v3041_v12 }
0x1ac9   :  { %v3044_v13 = vpop.xlane.xlu0 %3043 }
0x1aca   :  { %5921 = vrcp.f32 %v3044_v13 }
0x1ad2   :  { %v5920_v35 = vpop.eup %5919 }
0x1ad3   :  { %v3047_v39 = vmul.f32 %v5920_v35, %v5916_v31 }
0x1ad4   :  { %v5922_v38 = vpop.eup %5921 }
0x1ad5   :  { %v3048_v40 = vmul.f32 %v5922_v38, %v5918_v15 }
0x1ad7   :  { %v3049_v42 = vpack.c.bf16 %v3048_v40, %v3047_v39 }
0x1ad9   :  { %5539 = vmatmul.mubr.msk.bf16.vlgmr.msra.gmra.mrb[72].mxu0 %vm585_vm14, %v3049_v42 }
0x1ada   :  { %5549 = vmatpush3.bf16.msra.mxu0 %v5815_v41  ;;  %5550 = vmatprep.mubr.msk.bf16.mxu0 %vm5977_vm1, %v5976_v9 }
0x1adb   :  { %5566 = vmatprep.subr.bf16.mxu0 %v5976_v9 }
0x1ae1   :  { %5551 = vmatmul.mubr.msk.bf16.vlgmr.msra.gmra.mrb[76].mxu0 %vm585_vm14, %v2724_v59  ;;  %v5826_v59 = vld [vmem:[%s7267_s8 + $0xc8] sm:$0xff]  }
0x1ae2   :  { %5567 = vmatpush3.bf16.msra.mxu0 %v5816_v43  ;;  %5574 = vmatprep.mubr.msk.bf16.mxu0 %vm5977_vm1, %v5976_v9 }
0x1ae3   :  { %5568 = vmatprep.subr.bf16.mxu0 %v5976_v9 }
0x1ae6   :  { %5569 = vmatpush3.bf16.msra.mxu0 %v5817_v44 }
0x1ae7   :  { %5570 = vmatprep.subr.bf16.mxu0 %v5976_v9 }
0x1aea   :  { %5571 = vmatpush3.bf16.msra.mxu0 %v5818_v3 }
0x1aeb   :  { %5572 = vmatprep.subr.bf16.mxu0 %v5976_v9 }
0x1aee   :  { %5573 = vmatpush3.bf16.msra.mxu0 %v5819_v8 }
0x1aef   :  { %5590 = vmatprep.subr.bf16.mxu0 %v5976_v9 }
0x1af1   :  { %5575 = vmatmul.mubr.msk.bf16.vlgmr.msra.gmra.mrb[80].mxu0 %vm272_vm13, %v6741_v36 }
0x1af2   :  { %5592 = vmatprep.mubr.msk.bf16.mxu0 %vm5977_vm1, %v5976_v9 }
0x1bac   :  { %v3088_v45 = vpop.f32.mrb[72].mxu0 }
0x1bad   :  { %v5540_v46 = vpop.f32.mrb[73].mxu0 }
0x1bae   :  { %v3091_v47 = vpop.f32.mrb[74].mxu0 }
0x1baf   :  { %v3095_v49 = vpack.c.bf16 %v3091_v47, %v3088_v45  ;;  %v5541_v50 = vpop.f32.mrb[75].mxu0 }
0x1bb1   :  { %5545 = vmatmul.mubr.msk.bf16.vlgmr.msra.gmra.mrb[72].mxu1 %vm585_vm14, %v3095_v49 }
0x1bb2   :  { %5555 = vmatpush3.bf16.msra.mxu1 %v5821_v48  ;;  %5562 = vmatprep.mubr.msk.bf16.mxu1 %vm5977_vm1, %v5976_v9 }
0x1bb3   :  { %5556 = vmatprep.subr.bf16.mxu1 %v5976_v9 }
0x1bb4   :  { %v3192_v52 = vpop.f32.mrb[76].mxu0 }
0x1bb5   :  { %v5552_v53 = vpop.f32.mrb[77].mxu0 }
0x1bb6   :  { %5557 = vmatpush3.bf16.msra.mxu1 %v5822_v51  ;;  %v3195_v54 = vpop.f32.mrb[78].mxu0 }
0x1bb7   :  { %v5553_v56 = vpop.f32.mrb[79].mxu0  ;;  %5558 = vmatprep.subr.bf16.mxu1 %v5976_v9 }
0x1bba   :  { %5559 = vmatpush3.bf16.msra.mxu1 %v5823_v55  ;;  %v5837_v55 = vld [vmem:[%s7227_s12 + $0x30] sm:$0xff]  }
0x1bbb   :  { %5560 = vmatprep.subr.bf16.mxu1 %v5976_v9 }
0x1bbe   :  { %5561 = vmatpush3.bf16.msra.mxu1 %v5824_v57 }
0x1bbf   :  { %5578 = vmatprep.subr.bf16.mxu1 %v5976_v9 }
0x1bc1   :  { %5563 = vmatmul.mubr.msk.bf16.vlgmr.msra.gmra.mrb[76].mxu1 %vm272_vm13, %v6741_v36 }
0x1bc2   :  { %5579 = vmatpush3.bf16.msra.mxu1 %v5825_v58  ;;  %5586 = vmatprep.mubr.msk.bf16.mxu1 %vm5977_vm1, %v5976_v9 }
0x1bc3   :  { %5580 = vmatprep.subr.bf16.mxu1 %v5976_v9 }
0x1bc4   :  { %v3356_v61 = vpop.f32.mrb[80].mxu0 }
0x1bc5   :  { %v5576_v0 = vpop.f32.mrb[81].mxu0  ;;  %v3357_v5 = vadd.f32 %v4822_v60, %v3356_v61 }
0x1bc6   :  { %v3359_v2 = vpop.f32.mrb[82].mxu0  ;;  %5581 = vmatpush3.bf16.msra.mxu1 %v5826_v59  ;;  %v5829_v0 = vld [vmem:[%s7263_s27 + $0xe0] sm:$0xff]  }
0x1bc7   :  { %v3360_v11 = vadd.f32 %v4822_v60, %v3359_v2  ;;  %v5577_v62 = vpop.f32.mrb[83].mxu0  ;;  %5582 = vmatprep.subr.bf16.mxu1 %v5976_v9 }
0x1bc8   :  { %v5833_v62 = vld [vmem:[%s7267_s8 + $0xe0] sm:$0xff]  }
0x1bc9   :  { %v3446_v63 = vpack.c.bf16 %v3360_v11, %v3357_v5  ;;  %v5831_v5 = vld [vmem:[%s7263_s27 + $0xf0] sm:$0xff]   ;;  %v5832_v11 = vld [vmem:[%s7263_s27 + $0xf8] sm:$0xff]  }
0x1bca   :  { %5583 = vmatpush3.bf16.msra.mxu1 %v5827_v4  ;;  %v5830_v4 = vld [vmem:[%s7263_s27 + $0xe8] sm:$0xff]  }
0x1bcb   :  { %v3451_v6 = vsel %vm585_vm14, %v3446_v63, 0  ;;  %5584 = vmatprep.subr.bf16.mxu1 %v5976_v9  ;;  %v5834_v63 = vld [vmem:[%s7267_s8 + $0xe8] sm:$0xff]  }
0x1bcc   :  { %5591 = vmatpush3.bf16.xpose.msra.mxu0 %v3451_v6  ;;  %v5836_v6 = vld [vmem:[%s7267_s8 + $0xf8] sm:$0xff]  }
0x1bcd   :  { %5596 = vmatprep.subr.bf16.mxu0 %v5976_v9 }
0x1bce   :  { %5585 = vmatpush3.bf16.msra.mxu1 %v5828_v1  ;;  %v5835_v1 = vld [vmem:[%s7267_s8 + $0xf0] sm:$0xff]  }
0x1bcf   :  { %5602 = vmatprep.subr.bf16.mxu1 %v5976_v9 }
0x1bd1   :  { %5587 = vmatmul.mubr.msk.bf16.vlgmr.msra.gmra.mrb[80].mxu1 %vm272_vm13, %v6741_v36 }
0x1bd2   :  { %5604 = vmatprep.mubr.msk.bf16.mxu1 %vm5977_vm1, %v5976_v9  ;;  %5603 = vmatpush3.bf16.msra.mxu1 %v5837_v55 }
0x1bd3   :  { %5620 = vmatprep.subr.bf16.mxu1 %v5976_v9 }
0x1c84   :  { %v3142_v7 = vpop.f32.mrb[72].mxu1 }
0x1c85   :  { %v6970_v10 = vadd.f32 %v3192_v52, %v3142_v7  ;;  %v5546_v16 = vpop.f32.mrb[73].mxu1 }
0x1c86   :  { %v3145_v17 = vpop.f32.mrb[74].mxu1 }
0x1c87   :  { %v6972_v18 = vadd.f32 %v3195_v54, %v3145_v17  ;;  %v5547_v20 = vpop.f32.mrb[75].mxu1 }
0x1c88   :  { %v5838_v20 = vld [vmem:[%s7266_s28 + $0xe0] sm:$0xff]  }
0x1c94   :  { %v3274_v24 = vpop.f32.mrb[76].mxu1 }
0x1c95   :  { %v5564_v25 = vpop.f32.mrb[77].mxu1  ;;  %v3275_v27 = vadd.f32 %v4807_v22, %v3274_v24 }
0x1c96   :  { %v3277_v26 = vpop.f32.mrb[78].mxu1  ;;  %v5839_v25 = vld [vmem:[%s7266_s28 + $0xe8] sm:$0xff]  }
0x1c97   :  { %v3278_v21 = vadd.f32 %v4807_v22, %v3277_v26  ;;  %v5565_v28 = vpop.f32.mrb[79].mxu1  ;;  %v5840_v26 = vld [vmem:[%s7266_s28 + $0xf0] sm:$0xff]  }
0x1c99   :  { %v3445_v29 = vpack.c.bf16 %v3278_v21, %v3275_v27  ;;  %v5841_v27 = vld [vmem:[%s7266_s28 + $0xf8] sm:$0xff]   ;;  %v4858_v21 = vld [vmem:[%s7224_s9 + $0x7] ss:$0 sm:$0xff] }
0x1c9b   :  { %5593 = vmatmul.mubr.msk.bf16.vlgmr.msra.gmra.mrb[84].mxu0 %vm585_vm14, %v3445_v29 }
0x1c9c   :  { %5598 = vmatprep.mubr.msk.bf16.mxu0 %vm5977_vm1, %v5976_v9 }
0x1ca4   :  { %v3438_v31 = vpop.f32.mrb[80].mxu1 }
0x1ca5   :  { %v5588_v23 = vpop.f32.mrb[81].mxu1  ;;  %v3439_v33 = vadd.f32 %v4837_v30, %v3438_v31 }
0x1ca6   :  { %v3441_v15 = vpop.f32.mrb[82].mxu1 }
0x1ca7   :  { %v3442_v37 = vadd.f32 %v4837_v30, %v3441_v15  ;;  %v5589_v12 = vpop.f32.mrb[83].mxu1 }
0x1ca9   :  { %v3521_v13 = vpack.c.bf16 %v3442_v37, %v3439_v33  ;;  %v4888_v37 = vld [vmem:[%s7226_s11 + $0x7] ss:$0 sm:$0xff] }
0x1cab   :  { %5597 = vmatpush3.bf16.msra.mxu0 %v3521_v13 }
0x1cac   :  { %5608 = vmatprep.subr.bf16.mxu0 %v5976_v9 }
0x1d6e   :  { %v3487_v35 = vpop.f32.mrb[84].mxu0 }
0x1d6f   :  { %v3494_v38 = vmul.f32 0.25, %v3487_v35  ;;  %v5594_v39 = vpop.f32.mrb[85].mxu0 }
0x1d70   :  { %v3490_v40 = vpop.f32.mrb[86].mxu0 }
0x1d71   :  { %v3495_v41 = vmul.f32 0.25, %v3490_v40  ;;  %v5595_v42 = vpop.f32.mrb[87].mxu0  ;;  %v3496_v43 = vadd.f32 %v3494_v38, %v6335_v14 }
0x1d73   :  { %v3498_v44 = vsel %vm585_vm14, %v3496_v43, -inf  ;;  %v3497_v3 = vadd.f32 %v3495_v41, %v6339_v19 }
0x1d74   :  { %3499 = vmax.xlane.f32.xlu1 %v3498_v44 }
0x1d75   :  { %v3501_v8 = vsel %vm585_vm14, %v3497_v3, -inf }
0x1d76   :  { %3502 = vmax.xlane.f32.xlu0 %v3501_v8 }
0x1e01   :  { %v3500_v45 = vpop.xlane.xlu1 %3499 }
0x1e02   :  { %v3504_v46 = vsub.f32 %v3496_v43, %v3500_v45  ;;  %v4873_v45 = vld [vmem:[%s7225_s10 + $0x7] ss:$0 sm:$0xff] }
0x1e03   :  { %v3503_v47 = vpop.xlane.xlu0 %3502 }
0x1e04   :  { %v3506_v48 = vmul.f32 1.442695, %v3504_v46  ;;  %v3505_v49 = vsub.f32 %v3497_v3, %v3503_v47 }
0x1e06   :  { %5923 = vpow2.f32 %v3506_v48  ;;  %v3508_v50 = vmul.f32 1.442695, %v3505_v49 }
0x1e08   :  { %5925 = vpow2.f32 %v3508_v50 }
0x1e10   :  { %v5924_v51 = vpop.eup %5923 }
0x1e11   :  { %v3510_v52 = vsel %vm585_vm14, %v5924_v51, 0.0 }
0x1e12   :  { %v5926_v53 = vpop.eup %5925  ;;  %3511 = vadd.xlane.f32.xlu1 %v3510_v52 }
0x1e13   :  { %v3513_v54 = vsel %vm585_vm14, %v5926_v53, 0.0 }
0x1e14   :  { %3514 = vadd.xlane.f32.xlu0 %v3513_v54 }
0x1e9f   :  { %v3512_v56 = vpop.xlane.xlu1 %3511 }
0x1ea0   :  { %5927 = vrcp.f32 %v3512_v56 }
0x1ea1   :  { %v3515_v57 = vpop.xlane.xlu0 %3514 }
0x1ea2   :  { %5929 = vrcp.f32 %v3515_v57 }
0x1eaa   :  { %v5928_v58 = vpop.eup %5927 }
0x1eab   :  { %v3518_v60 = vmul.f32 %v5928_v58, %v5924_v51 }
0x1eac   :  { %v5930_v59 = vpop.eup %5929 }
0x1ead   :  { %v3519_v61 = vmul.f32 %v5930_v59, %v5926_v53 }
0x1eaf   :  { %v3520_v2 = vpack.c.bf16 %v3519_v61, %v3518_v60 }
0x1eb1   :  { %5599 = vmatmul.mubr.msk.bf16.vlgmr.msra.gmra.mrb[88].mxu0 %vm585_vm14, %v3520_v2 }
0x1eb2   :  { %5609 = vmatpush3.bf16.msra.mxu0 %v5829_v0  ;;  %5616 = vmatprep.mubr.msk.bf16.mxu0 %vm5977_vm1, %v5976_v9 }
0x1eb3   :  { %5610 = vmatprep.subr.bf16.mxu0 %v5976_v9 }
0x1eb6   :  { %5611 = vmatpush3.bf16.msra.mxu0 %v5830_v4 }
0x1eb7   :  { %5612 = vmatprep.subr.bf16.mxu0 %v5976_v9 }
0x1eba   :  { %5613 = vmatpush3.bf16.msra.mxu0 %v5831_v5 }
0x1ebb   :  { %5614 = vmatprep.subr.bf16.mxu0 %v5976_v9 }
0x1ebe   :  { %5615 = vmatpush3.bf16.msra.mxu0 %v5832_v11 }
0x1ebf   :  { %5632 = vmatprep.subr.bf16.mxu0 %v5976_v9 }
0x1ec1   :  { %5617 = vmatmul.mubr.msk.bf16.vlgmr.msra.gmra.mrb[92].mxu0 %vm272_vm13, %v6741_v36 }
0x1ec2   :  { %5633 = vmatpush3.bf16.msra.mxu0 %v5833_v62  ;;  %5640 = vmatprep.mubr.msk.bf16.mxu0 %vm5977_vm1, %v5976_v9 }
0x1ec3   :  { %5634 = vmatprep.subr.bf16.mxu0 %v5976_v9 }
0x1ec6   :  { %5635 = vmatpush3.bf16.msra.mxu0 %v5834_v63 }
0x1ec7   :  { %5636 = vmatprep.subr.bf16.mxu0 %v5976_v9 }
0x1eca   :  { %5637 = vmatpush3.bf16.msra.mxu0 %v5835_v1 }
0x1ecb   :  { %5638 = vmatprep.subr.bf16.mxu0 %v5976_v9 }
0x1ece   :  { %5639 = vmatpush3.bf16.msra.mxu0 %v5836_v6 }
0x1ecf   :  { %5656 = vmatprep.subr.bf16.mxu0 %v5976_v9 }
0x1ed1   :  { %5641 = vmatmul.mubr.msk.bf16.vlgmr.msra.gmra.mrb[96].mxu0 %vm272_vm13, %v6741_v36 }
0x1ed2   :  { %5658 = vmatprep.mubr.msk.bf16.mxu0 %vm5977_vm1, %v5976_v9 }
0x1f84   :  { %v3559_v7 = vpop.f32.mrb[88].mxu0 }
0x1f85   :  { %v5600_v16 = vpop.f32.mrb[89].mxu0 }
0x1f86   :  { %v3562_v17 = vpop.f32.mrb[90].mxu0 }
0x1f87   :  { %v3566_v22 = vpack.c.bf16 %v3562_v17, %v3559_v7  ;;  %v5601_v24 = vpop.f32.mrb[91].mxu0 }
0x1f89   :  { %5605 = vmatmul.mubr.msk.bf16.vlgmr.msra.gmra.mrb[84].mxu1 %vm585_vm14, %v3566_v22 }
0x1f8a   :  { %5621 = vmatpush3.bf16.msra.mxu1 %v5838_v20  ;;  %5628 = vmatprep.mubr.msk.bf16.mxu1 %vm5977_vm1, %v5976_v9 }
0x1f8b   :  { %5622 = vmatprep.subr.bf16.mxu1 %v5976_v9 }
0x1f8e   :  { %5623 = vmatpush3.bf16.msra.mxu1 %v5839_v25 }
0x1f8f   :  { %5624 = vmatprep.subr.bf16.mxu1 %v5976_v9 }
0x1f92   :  { %5625 = vmatpush3.bf16.msra.mxu1 %v5840_v26 }
0x1f93   :  { %5626 = vmatprep.subr.bf16.mxu1 %v5976_v9 }
0x1f94   :  { %v3697_v28 = vpop.f32.mrb[92].mxu0 }
0x1f95   :  { %v5618_v29 = vpop.f32.mrb[93].mxu0  ;;  %v3698_v31 = vadd.f32 %v4858_v21, %v3697_v28 }
0x1f96   :  { %v3700_v30 = vpop.f32.mrb[94].mxu0  ;;  %5627 = vmatpush3.bf16.msra.mxu1 %v5841_v27 }
0x1f97   :  { %v3701_v23 = vadd.f32 %v4858_v21, %v3700_v30  ;;  %v5619_v15 = vpop.f32.mrb[95].mxu0  ;;  %5644 = vmatprep.subr.bf16.mxu1 %v5976_v9 }
0x1f99   :  { %v3868_v33 = vpack.c.bf16 %v3701_v23, %v3698_v31  ;;  %5629 = vmatmul.mubr.msk.bf16.vlgmr.msra.gmra.mrb[88].mxu1 %vm272_vm13, %v6741_v36  ;;  %v4901_v31 = vld [vmem:[%s7228_s13 + $0x1] ss:$0 sm:$0xff] }
0x1f9a   :  { %5646 = vmatprep.mubr.msk.bf16.mxu1 %vm5977_vm1, %v5976_v9 }
0x1fa4   :  { %v3861_v12 = vpop.f32.mrb[96].mxu0 }
0x1fa5   :  { %v5642_v13 = vpop.f32.mrb[97].mxu0  ;;  %v3862_v38 = vadd.f32 %v4888_v37, %v3861_v12 }
0x1fa6   :  { %v3864_v35 = vpop.f32.mrb[98].mxu0 }
0x1fa7   :  { %v3865_v39 = vadd.f32 %v4888_v37, %v3864_v35  ;;  %v5643_v40 = vpop.f32.mrb[99].mxu0 }
0x1fa9   :  { %v3944_v41 = vpack.c.bf16 %v3865_v39, %v3862_v38 }
0x205c   :  { %v3613_v42 = vpop.f32.mrb[84].mxu1 }
0x205d   :  { %v7067_v43 = vadd.f32 %v3613_v42, %v6970_v10  ;;  %v5606_v44 = vpop.f32.mrb[85].mxu1 }
0x205e   :  { %v3616_v36 = vpop.f32.mrb[86].mxu1 }
0x205f   :  { %v7070_v3 = vadd.f32 %v3616_v36, %v6972_v18  ;;  %v5607_v8 = vpop.f32.mrb[87].mxu1 }
0x2060   :  { %v5846_v8 = vld [vmem:[%s7231_s16 + $0x38] sm:$0xff]  }
0x206c   :  { %v3779_v46 = vpop.f32.mrb[88].mxu1 }
0x206d   :  { %v5630_v47 = vpop.f32.mrb[89].mxu1  ;;  %v3780_v49 = vadd.f32 %v4873_v45, %v3779_v46 }
0x206e   :  { %v3782_v48 = vpop.f32.mrb[90].mxu1 }
0x206f   :  { %v3783_v50 = vadd.f32 %v4873_v45, %v3782_v48  ;;  %v5631_v51 = vpop.f32.mrb[91].mxu1 }
0x2071   :  { %v3869_v52 = vpack.c.bf16 %v3783_v50, %v3780_v49 }
0x2073   :  { %v3874_v10 = vsel %vm585_vm14, %v3869_v52, 0 }
0x2074   :  { %5645 = vmatpush3.bf16.xpose.msra.mxu1 %v3874_v10 }
0x2075   :  { %5650 = vmatprep.subr.bf16.mxu1 %v5976_v9 }
0x207b   :  { %5647 = vmatmul.mubr.msk.bf16.vlgmr.msra.gmra.mrb[92].mxu1 %vm585_vm14, %v3868_v33 }
0x207c   :  { %5651 = vmatpush3.bf16.msra.mxu1 %v3944_v41  ;;  %5652 = vmatprep.mubr.msk.bf16.mxu1 %vm5977_vm1, %v5976_v9 }
0x207d   :  { %5662 = vmatprep.subr.bf16.mxu1 %v5976_v9 }
0x214e   :  { %v3910_v18 = vpop.f32.mrb[92].mxu1 }
0x214f   :  { %v3917_v53 = vmul.f32 0.25, %v3910_v18  ;;  %v5648_v54 = vpop.f32.mrb[93].mxu1 }
0x2150   :  { %v3913_v55 = vpop.f32.mrb[94].mxu1 }
0x2151   :  { %v3918_v56 = vmul.f32 0.25, %v3913_v55  ;;  %v5649_v57 = vpop.f32.mrb[95].mxu1  ;;  %v3919_v58 = vadd.f32 %v3917_v53, %v6335_v14 }
0x2153   :  { %v3921_v59 = vsel %vm585_vm14, %v3919_v58, -inf  ;;  %v3920_v60 = vadd.f32 %v3918_v56, %v6339_v19  ;;  %v5842_v19 = vld [vmem:[%s7227_s12 + $0x38] sm:$0xff]  }
0x2154   :  { %3922 = vmax.xlane.f32.xlu1 %v3921_v59  ;;  %5657 = vmatpush3.bf16.msra.mxu0 %v5842_v19  ;;  %v5847_v19 = vld [vmem:[%s7233_s18 + $0x40] sm:$0xff]  }
0x2155   :  { %v3924_v61 = vsel %vm585_vm14, %v3920_v60, -inf  ;;  %5674 = vmatprep.subr.bf16.mxu0 %v5976_v9 }
0x2156   :  { %3925 = vmax.xlane.f32.xlu0 %v3924_v61  ;;  %v4904_v61 = vld [vmem:[%s7229_s14 + $0x1] ss:$0 sm:$0xff] }
0x21e1   :  { %v3923_v0 = vpop.xlane.xlu1 %3922 }
0x21e2   :  { %v3927_v2 = vsub.f32 %v3919_v58, %v3923_v0 }
0x21e3   :  { %v3926_v4 = vpop.xlane.xlu0 %3925 }
0x21e4   :  { %v3929_v5 = vmul.f32 1.442695, %v3927_v2  ;;  %v3928_v11 = vsub.f32 %v3920_v60, %v3926_v4 }
0x21e6   :  { %5931 = vpow2.f32 %v3929_v5  ;;  %v3931_v62 = vmul.f32 1.442695, %v3928_v11 }
0x21e8   :  { %5933 = vpow2.f32 %v3931_v62  ;;  %v4905_v62 = vld [vmem:[%s7230_s15 + $0x1] ss:$0 sm:$0xff] }
0x21f0   :  { %v5932_v63 = vpop.eup %5931 }
0x21f1   :  { %v3933_v1 = vsel %vm585_vm14, %v5932_v63, 0.0 }
0x21f2   :  { %v5934_v14 = vpop.eup %5933  ;;  %3934 = vadd.xlane.f32.xlu1 %v3933_v1 }
0x21f3   :  { %v3936_v6 = vsel %vm585_vm14, %v5934_v14, 0.0 }
0x21f4   :  { %3937 = vadd.xlane.f32.xlu0 %v3936_v6 }
0x227f   :  { %v3935_v7 = vpop.xlane.xlu1 %3934 }
0x2280   :  { %5935 = vrcp.f32 %v3935_v7  ;;  %v5848_v7 = vld [vmem:[%s7233_s18 + $0x48] sm:$0xff]  }
0x2281   :  { %v3938_v16 = vpop.xlane.xlu0 %3937 }
0x2282   :  { %5937 = vrcp.f32 %v3938_v16  ;;  %v5849_v16 = vld [vmem:[%s7233_s18 + $0x50] sm:$0xff]  }
0x228a   :  { %v5936_v17 = vpop.eup %5935 }
0x228b   :  { %v3941_v22 = vmul.f32 %v5936_v17, %v5932_v63  ;;  %v5850_v17 = vld [vmem:[%s7233_s18 + $0x58] sm:$0xff]  }
0x228c   :  { %v5938_v20 = vpop.eup %5937 }
0x228d   :  { %v3942_v24 = vmul.f32 %v5938_v20, %v5934_v14  ;;  %v5851_v20 = vld [vmem:[%s7233_s18 + $0x60] sm:$0xff]  }
0x228f   :  { %v3943_v25 = vpack.c.bf16 %v3942_v24, %v3941_v22  ;;  %v5852_v22 = vld [vmem:[%s7233_s18 + $0x68] sm:$0xff]   ;;  %v5853_v24 = vld [vmem:[%s7233_s18 + $0x70] sm:$0xff]  }
0x2291   :  { %5653 = vmatmul.mubr.msk.bf16.vlgmr.msra.gmra.mrb[96].mxu1 %vm585_vm14, %v3943_v25  ;;  %v5854_v25 = vld [vmem:[%s7233_s18 + $0x78] sm:$0xff]  }
0x2292   :  { %5670 = vmatprep.mubr.msk.bf16.mxu1 %vm5977_vm1, %v5976_v9 }
0x2364   :  { %v3982_v26 = vpop.f32.mrb[96].mxu1 }
0x2365   :  { %v5654_v27 = vpop.f32.mrb[97].mxu1 }
0x2366   :  { %v3985_v21 = vpop.f32.mrb[98].mxu1 }
0x2367   :  { %v3989_v28 = vpack.c.bf16 %v3985_v21, %v3982_v26  ;;  %v5655_v29 = vpop.f32.mrb[99].mxu1  ;;  %v4915_v26 = vld [vmem:[%s7232_s17 + $0x1] ss:$0 sm:$0xff] }
0x2369   :  { %5659 = vmatmul.mubr.msk.bf16.vlgmr.msra.gmra.mrb[100].mxu0 %vm585_vm14, %v3989_v28 }
0x236a   :  { %5690 = vmatprep.mubr.msk.bf16.mxu0 %vm5977_vm1, %v5976_v9  ;;  %5675 = vmatpush3.bf16.msra.mxu0 %v5847_v19 }
0x236b   :  { %5676 = vmatprep.subr.bf16.mxu0 %v5976_v9 }
0x236e   :  { %5677 = vmatpush3.bf16.msra.mxu0 %v5848_v7 }
0x236f   :  { %5678 = vmatprep.subr.bf16.mxu0 %v5976_v9 }
0x2372   :  { %5679 = vmatpush3.bf16.msra.mxu0 %v5849_v16 }
0x2373   :  { %5680 = vmatprep.subr.bf16.mxu0 %v5976_v9 }
0x2376   :  { %5681 = vmatpush3.bf16.msra.mxu0 %v5850_v17 }
0x2377   :  { %5682 = vmatprep.subr.bf16.mxu0 %v5976_v9 }
0x237a   :  { %5683 = vmatpush3.bf16.msra.mxu0 %v5851_v20 }
0x237b   :  { %5684 = vmatprep.subr.bf16.mxu0 %v5976_v9 }
0x237e   :  { %5685 = vmatpush3.bf16.msra.mxu0 %v5852_v22 }
0x237f   :  { %5686 = vmatprep.subr.bf16.mxu0 %v5976_v9 }
0x2382   :  { %5687 = vmatpush3.bf16.msra.mxu0 %v5853_v24 }
0x2383   :  { %5688 = vmatprep.subr.bf16.mxu0 %v5976_v9 }
0x2386   :  { %5689 = vmatpush3.bf16.msra.mxu0 %v5854_v25 }
0x243c   :  { %v4036_v30 = vpop.f32.mrb[100].mxu0 }
0x243d   :  { %v4043_v23 = vadd.f32 %v4036_v30, %v7067_v43  ;;  %v5660_v15 = vpop.f32.mrb[101].mxu0 }
0x243e   :  { %v4039_v33 = vpop.f32.mrb[102].mxu0 }
0x243f   :  { %v4053_v37 = vadd.f32 %v4901_v31, %v4043_v23  ;;  %v4044_v12 = vadd.f32 %v4039_v33, %v7070_v3  ;;  %v5661_v13 = vpop.f32.mrb[103].mxu0  ;;  %v5845_v3 = vld [vmem:[%s7231_s16 + $0x30] sm:$0xff]  }
0x2441   :  { %v4055_v35 = vadd.f32 %v4053_v37, %v6732_v32  ;;  %v4054_v38 = vadd.f32 %v4901_v31, %v4044_v12  ;;  %v5843_v32 = vld [vmem:[%s7231_s16 + $0x20] sm:$0xff]  }
0x2442   :  { %5663 = vmatpush3.bf16.msra.mxu1 %v5843_v32 }
0x2443   :  { %v4056_v39 = vadd.f32 %v4054_v38, %v6734_v34  ;;  %v4061_v40 = vsel %vm272_vm13, %v4055_v35, 0.0  ;;  %v4069_v41 = vmul.f32 %v4055_v35, %v4055_v35  ;;  %5664 = vmatprep.subr.bf16.mxu1 %v5976_v9  ;;  %v5844_v34 = vld [vmem:[%s7231_s16 + $0x28] sm:$0xff]  }
0x2444   :  { %4062 = vadd.xlane.f32.xlu1 %v4061_v40 }
0x2445   :  { %v4064_v42 = vsel %vm272_vm13, %v4056_v39, 0.0  ;;  %v4070_v44 = vmul.f32 %v4056_v39, %v4056_v39  ;;  %v4071_v43 = vsel %vm272_vm13, %v4069_v41, 0.0 }
0x2446   :  { %4065 = vadd.xlane.f32.xlu0 %v4064_v42  ;;  %5665 = vmatpush3.bf16.msra.mxu1 %v5844_v34 }
0x2447   :  { %v4074_v36 = vsel %vm272_vm13, %v4070_v44, 0.0  ;;  %5666 = vmatprep.subr.bf16.mxu1 %v5976_v9 }
0x2448   :  { %4072 = vadd.xlane.f32.xlu1 %v4071_v43 }
0x244a   :  { %4075 = vadd.xlane.f32.xlu0 %v4074_v36  ;;  %5667 = vmatpush3.bf16.msra.mxu1 %v5845_v3 }
0x244b   :  { %5668 = vmatprep.subr.bf16.mxu1 %v5976_v9 }
0x244e   :  { %5669 = vmatpush3.bf16.msra.mxu1 %v5846_v8 }
0x244f   :  { %5694 = vmatprep.subr.bf16.mxu1 %v5976_v9 }
0x24d1   :  { %v4063_v45 = vpop.xlane.xlu1 %4062 }
0x24d2   :  { %v4067_v46 = vmul.f32 0.015625, %v4063_v45  ;;  %v4938_v45 = vld [vmem:[%s7234_s19 + $0x1] ss:$0 sm:$0xff] }
0x24d3   :  { %v4066_v47 = vpop.xlane.xlu0 %4065 }
0x24d4   :  { %v4068_v48 = vmul.f32 0.015625, %v4066_v47  ;;  %v4079_v50 = vmul.f32 %v4067_v46, %v4067_v46  ;;  %v4085_v59 = vsub.f32 %v4055_v35, %v4067_v46 }
0x24d5   :  { %v4073_v49 = vpop.xlane.xlu1 %4072 }
0x24d6   :  { %v4077_v51 = vmul.f32 0.015625, %v4073_v49  ;;  %v4080_v10 = vmul.f32 %v4068_v48, %v4068_v48  ;;  %v4086_v0 = vsub.f32 %v4056_v39, %v4068_v48 }
0x24d7   :  { %v4076_v52 = vpop.xlane.xlu0 %4075 }
0x24d8   :  { %v4081_v18 = vsub.f32 %v4077_v51, %v4079_v50  ;;  %v4078_v53 = vmul.f32 0.015625, %v4076_v52 }
0x24da   :  { %v4083_v54 = vmax.f32 %v4081_v18, 0.0  ;;  %v4082_v55 = vsub.f32 %v4078_v53, %v4080_v10 }
0x24dc   :  { %v4087_v56 = vadd.f32 1e-12, %v4083_v54  ;;  %v4084_v57 = vmax.f32 %v4082_v55, 0.0 }
0x24de   :  { %5939 = vrsqrt.f32 %v4087_v56  ;;  %v4088_v58 = vadd.f32 1e-12, %v4084_v57 }
0x24e0   :  { %5941 = vrsqrt.f32 %v4088_v58  ;;  %v5855_v58 = vld [vmem:[%s7237_s22] sm:$0xff]  }
0x24e8   :  { %v5940_v60 = vpop.eup %5939 }
0x24e9   :  { %v4091_v2 = vmul.f32 %v5940_v60, %v4085_v59  ;;  %v5856_v59 = vld [vmem:[%s7237_s22 + $0x8] sm:$0xff]   ;;  %v5857_v60 = vld [vmem:[%s7237_s22 + $0x10] sm:$0xff]  }
0x24ea   :  { %v5942_v4 = vpop.eup %5941 }
0x24eb   :  { %v4092_v5 = vmul.f32 %v5942_v4, %v4086_v0  ;;  %v4099_v11 = vmul.f32 %v4904_v61, %v4091_v2 }
0x24ed   :  { %v4100_v63 = vmul.f32 %v4904_v61, %v4092_v5  ;;  %v4107_v1 = vadd.f32 %v4905_v62, %v4099_v11  ;;  %v5858_v61 = vld [vmem:[%s7237_s22 + $0x18] sm:$0xff]  }
0x24ef   :  { %v7130_v14 = vadd.f32 %v4905_v62, %v4100_v63 }
0x24f1   :  { %v4109_v6 = vpack.c.bf16 %v7130_v14, %v4107_v1 }
0x24f3   :  { %5671 = vmatmul.mubr.msk.bf16.vlgmr.msra.gmra.mrb[100].mxu1 %vm272_vm13, %v4109_v6 }
0x24f4   :  { %5702 = vmatprep.mubr.msk.bf16.mxu1 %vm5977_vm1, %v5976_v9  ;;  %5695 = vmatpush3.bf16.msra.mxu1 %v5855_v58 }
0x24f5   :  { %5696 = vmatprep.subr.bf16.mxu1 %v5976_v9 }
0x24f8   :  { %5697 = vmatpush3.bf16.msra.mxu1 %v5856_v59 }
0x24f9   :  { %5698 = vmatprep.subr.bf16.mxu1 %v5976_v9 }
0x24fc   :  { %5699 = vmatpush3.bf16.msra.mxu1 %v5857_v60 }
0x24fd   :  { %5700 = vmatprep.subr.bf16.mxu1 %v5976_v9 }
0x2500   :  { %5701 = vmatpush3.bf16.msra.mxu1 %v5858_v61 }
0x25c6   :  { %v4188_v27 = vpop.f32.mrb[100].mxu1 }
0x25c7   :  { %v4189_v21 = vadd.f32 %v4915_v26, %v4188_v27  ;;  %v5672_v28 = vpop.f32.mrb[101].mxu1 }
0x25c8   :  { %v4191_v29 = vpop.f32.mrb[102].mxu1 }
0x25c9   :  { %v4195_v30 = vmul.f32 %v4189_v21, %v4189_v21  ;;  %v4192_v31 = vadd.f32 %v4915_v26, %v4191_v29  ;;  %v5673_v23 = vpop.f32.mrb[103].mxu1 }
0x25cb   :  { %v4197_v15 = vmul.f32 %v4195_v30, %v4189_v21  ;;  %v4196_v33 = vmul.f32 %v4192_v31, %v4192_v31 }
0x25cd   :  { %v4199_v37 = vmul.f32 0.044715, %v4197_v15  ;;  %v4198_v12 = vmul.f32 %v4196_v33, %v4192_v31 }
0x25cf   :  { %v4201_v13 = vadd.f32 %v4199_v37, %v4189_v21  ;;  %v4200_v35 = vmul.f32 0.044715, %v4198_v12 }
0x25d1   :  { %v4203_v38 = vmul.f32 0.7978846, %v4201_v13  ;;  %v4202_v39 = vadd.f32 %v4200_v35, %v4192_v31  ;;  %v4951_v13 = vld [vmem:[%s7238_s23] ss:$0 sm:$0xff] }
0x25d3   :  { %5943 = vtanh.f32 %v4203_v38  ;;  %v4204_v40 = vmul.f32 0.7978846, %v4202_v39 }
0x25d5   :  { %5945 = vtanh.f32 %v4204_v40 }
0x25dd   :  { %v5944_v41 = vpop.eup %5943 }
0x25de   :  { %v4207_v42 = vadd.f32 1.0, %v5944_v41 }
0x25df   :  { %v5946_v44 = vpop.eup %5945 }
0x25e0   :  { %v4209_v43 = vmul.f32 0.5, %v4207_v42  ;;  %v4208_v36 = vadd.f32 1.0, %v5946_v44 }
0x25e2   :  { %v4210_v32 = vmul.f32 0.5, %v4208_v36  ;;  %v4211_v34 = vmul.f32 %v4209_v43, %v4189_v21  ;;  %v4949_v21 = vld [vmem:[%s7235_s20 + $0x1] ss:$0 sm:$0xff]  ;;  %s5980_s20 = smov [#allocation2]  }
0x25e3   :  { %s4478_s10 = sshll.u32 %s5980_s20, 4  ;;  %s4479_s10 = int_to_ptr.vmem [resolvable:$true] %s4478_s10 }
0x25e4   :  { %v4212_v3 = vmul.f32 %v4210_v32, %v4192_v31  ;;  %v4950_v31 = vld [vmem:[%s7236_s21 + $0x1] ss:$0 sm:$0xff]  ;;  %s5951_s21 = scalar_lea.vmem %s4479_s10, 32  ;;  %p5956_p1 = scmp.lt.s32.totalorder %s4479_s10, %s4479_s10 }
0x25e5   :  { %p5952_p0 = scmp.ne.s32.totalorder %s4479_s10, %s5951_s21  ;;  %p5957_p2 = scmp.lt.s32.totalorder %s5951_s21, %s5951_s21 }
0x25e6   :  { %v4213_v8 = vpack.c.bf16 %v4212_v3, %v4211_v34 }
0x25e7   :  { %p5958_p3 = por %p5957_p2, %p5956_p1 }
0x25e8   :  { %5691 = vmatmul.mubr.bf16.vlgmr.msra.gmra.mrb[104].mxu0 %v4213_v8 }
0x25e9   :  { %p5959_p4 = pnand %p5958_p3, %p5952_p0 }
0x26bb   :  { %v4321_v46 = vpop.f32.mrb[104].mxu0 }
0x26bc   :  { %v4322_v47 = vadd.f32 %v4938_v45, %v4321_v46  ;;  %v5692_v48 = vpop.f32.mrb[105].mxu0 }
0x26bd   :  { %v4324_v49 = vpop.f32.mrb[106].mxu0 }
0x26be   :  { %v4328_v50 = vadd.f32 %v4322_v47, %v4107_v1  ;;  %v4325_v51 = vadd.f32 %v4938_v45, %v4324_v49  ;;  %v5693_v52 = vpop.f32.mrb[107].mxu0 }
0x26c0   :  { %v4329_v10 = vadd.f32 %v4325_v51, %v7130_v14  ;;  %v4334_v18 = vsel %vm272_vm13, %v4328_v50, 0.0  ;;  %v4342_v53 = vmul.f32 %v4328_v50, %v4328_v50 }
0x26c1   :  { %4335 = vadd.xlane.f32.xlu0 %v4334_v18 }
0x26c2   :  { %v4337_v54 = vsel %vm272_vm13, %v4329_v10, 0.0  ;;  %v4343_v55 = vmul.f32 %v4329_v10, %v4329_v10  ;;  %v4344_v56 = vsel %vm272_vm13, %v4342_v53, 0.0 }
0x26c3   :  { %4338 = vadd.xlane.f32.xlu1 %v4337_v54 }
0x26c4   :  { %v4347_v57 = vsel %vm272_vm13, %v4343_v55, 0.0 }
0x26c5   :  { %4345 = vadd.xlane.f32.xlu0 %v4344_v56 }
0x26c7   :  { %4348 = vadd.xlane.f32.xlu1 %v4347_v57 }
0x274e   :  { %v4336_v0 = vpop.xlane.xlu0 %4335 }
0x274f   :  { %v4340_v2 = vmul.f32 0.015625, %v4336_v0 }
0x2750   :  { %v4339_v4 = vpop.xlane.xlu1 %4338 }
0x2751   :  { %v4341_v5 = vmul.f32 0.015625, %v4339_v4  ;;  %v4352_v62 = vmul.f32 %v4340_v2, %v4340_v2  ;;  %v4358_v9 = vsub.f32 %v4328_v50, %v4340_v2 }
0x2752   :  { %v4346_v11 = vpop.xlane.xlu0 %4345 }
0x2753   :  { %v4350_v63 = vmul.f32 0.015625, %v4346_v11  ;;  %v4353_v14 = vmul.f32 %v4341_v5, %v4341_v5  ;;  %v4359_v25 = vsub.f32 %v4329_v10, %v4341_v5 }
0x2754   :  { %v4349_v1 = vpop.xlane.xlu1 %4348 }
0x2755   :  { %v4354_v6 = vsub.f32 %v4350_v63, %v4352_v62  ;;  %v4351_v19 = vmul.f32 0.015625, %v4349_v1 }
0x2757   :  { %v4356_v7 = vmax.f32 %v4354_v6, 0.0  ;;  %v4355_v16 = vsub.f32 %v4351_v19, %v4353_v14 }
0x2759   :  { %v4360_v17 = vadd.f32 1e-12, %v4356_v7  ;;  %v4357_v20 = vmax.f32 %v4355_v16, 0.0 }
0x275b   :  { %5947 = vrsqrt.f32 %v4360_v17  ;;  %v4361_v22 = vadd.f32 1e-12, %v4357_v20 }
0x275d   :  { %5949 = vrsqrt.f32 %v4361_v22 }
0x2765   :  { %v5948_v24 = vpop.eup %5947 }
0x2766   :  { %v4364_v26 = vmul.f32 %v5948_v24, %v4358_v9 }
0x2767   :  { %v5950_v27 = vpop.eup %5949 }
0x2768   :  { %v4365_v28 = vmul.f32 %v5950_v27, %v4359_v25  ;;  %v4372_v29 = vmul.f32 %v4949_v21, %v4364_v26 }
0x276a   :  { %v4373_v30 = vmul.f32 %v4949_v21, %v4365_v28  ;;  %v4380_v15 = vadd.f32 %v4950_v31, %v4372_v29 }
0x276c   :  { %v4381_v23 = vadd.f32 %v4950_v31, %v4373_v30 }
0x276e   :  { %v4383_v33 = vrot.slane %v4381_v23, 7 }
0x2770   :  { %v4386_v37 = vsel %vm4385_vm15, %v4380_v15, %v4383_v33 }
0x2771   :  { %v4387_v12 = vpack.c.bf16 %v4386_v37, %v4386_v37 }
0x2773   :  { %5703 = vmatmul.mubr.msk.bf16.vlgmr.msra.gmra.mrb[104].mxu1 %vm272_vm13, %v4387_v12 }
0x2846   :  { %v4464_v35 = vpop.f32.mrb[104].mxu1 }
0x2847   :  { %v4465_v38 = vadd.f32 %v4951_v13, %v4464_v35  ;;  %v5704_v39 = vpop.f32.mrb[105].mxu1 }
0x2848   :  { %v4467_v40 = vpop.f32.mrb[106].mxu1 }
0x2849   :  { %v5705_v41 = vpop.f32.mrb[107].mxu1  ;;  %4471 = vst.msk [vmem:[#allocation2] sm:$0x3] %vm4470_vm0, %v4465_v38 }
0x284a   :  { %5962 = shalt.err (!%p5959_p4)
}
0x284b   :  { %s5963_s23 = scalar_lea.hbm %s7239_s24, 32 }
0x284c   :  { %p5964_p5 = scmp.ne.s32.totalorder %s7239_s24, %s5963_s23  ;;  %p5967_p6 = scmp.lt.u32.totalorder %s5963_s23, %s7239_s24 }
0x284e   :  { %p5969_p7 = pnand %p5967_p6, %p5964_p5 }
0x2850   :  { %5972 = shalt.err (!%p5969_p7)
}
0x2851   :  { %4481 = dma.vmem_to_hbm [thread:$0]  %s4479_s10, 32, %s7239_s24, [#allocation3]  }
0x2852   :  { %5973 = dma.done.wait [#allocation3], 32  }
0x2853   :  { %5974 = vsyncadd [#allocation3], 4294967264 }
0x2854   :  { %4485 = vsyncpa [#allocation3], 1 }

</bundles_post_ra>
